<compile_context>
chip_gen: v5e
topology: v5e:2x2
jax: 0.10.0
libtpu: 0.0.40
codegen_flags: <defaults>
</compile_context>

<pallas_src>
import functools

import jax
import jax.numpy as jnp
from jax.experimental import pallas as pl
from jax.experimental.pallas import tpu as pltpu

LANE = 128


def _fill_padded(pad_ref, interior, H, W, Cp):
    """Write `interior` (H, W, Cp) into pad_ref (H+2, W+2, Cp) with a zero halo.

    Only the halo ring is zeroed each step (cheap); this stays correct even if
    the batch grid axis is split across TensorCores (each core owns its scratch).
    """
    z_row = jnp.zeros((1, W + 2, Cp), pad_ref.dtype)
    pad_ref[0:1, :, :] = z_row
    pad_ref[H + 1:H + 2, :, :] = z_row
    z_col = jnp.zeros((H + 2, 1, Cp), pad_ref.dtype)
    pad_ref[:, 0:1, :] = z_col
    pad_ref[:, W + 1:W + 2, :] = z_col
    pad_ref[1:H + 1, 1:W + 1, :] = interior.astype(pad_ref.dtype)


def _conv3x3_accumulate(pad_ref, w_ref, acc_ref, H, W, Cp):
    """3x3 same-conv as 9 shifted (H*W, Cp) @ (Cp, Cp) MXU matmuls.

    Operands are cast to bf16 (MXU fast path); accumulation is f32 into a VMEM
    scratch accumulator.
    """
    acc_ref[...] = jnp.zeros_like(acc_ref)
    for kh in range(3):
        for kw in range(3):
            patch = pad_ref[kh:kh + H, kw:kw + W, :].astype(jnp.bfloat16)
            acc_ref[...] += jnp.dot(patch.reshape(H * W, Cp),
                                    w_ref[kh * 3 + kw],
                                    preferred_element_type=jnp.float32)


def _conv1_kernel(x_ref, w_ref, y_ref, sum_ref, sumsq_ref, pad_ref, acc_ref,
                  *, H, W, Cp):
    _fill_padded(pad_ref, x_ref[...], H, W, Cp)
    _conv3x3_accumulate(pad_ref, w_ref, acc_ref, H, W, Cp)
    acc = acc_ref[...]
    y_ref[...] = acc.reshape(H, W, Cp)
    sum_ref[...] = jnp.sum(acc, axis=0, keepdims=True)
    sumsq_ref[...] = jnp.sum(acc * acc, axis=0, keepdims=True)


def _bn_relu_conv2_kernel(y1_ref, scale_ref, shift_ref, w_ref,
                          y_ref, sum_ref, sumsq_ref, pad_ref, acc_ref,
                          *, H, W, Cp):
    # Fused BN1 (per-channel scale/shift FMA) + ReLU, folded into the halo fill.
    act = jnp.maximum(y1_ref[...] * scale_ref[...] + shift_ref[...], 0.0)
    _fill_padded(pad_ref, act, H, W, Cp)
    _conv3x3_accumulate(pad_ref, w_ref, acc_ref, H, W, Cp)
    acc = acc_ref[...]
    y_ref[...] = acc.reshape(H, W, Cp)
    sum_ref[...] = jnp.sum(acc, axis=0, keepdims=True)
    sumsq_ref[...] = jnp.sum(acc * acc, axis=0, keepdims=True)


def _bn_add_relu_kernel(y2_ref, x_ref, scale_ref, shift_ref, out_ref):
    out_ref[...] = jnp.maximum(
        y2_ref[...] * scale_ref[...] + shift_ref[...] + x_ref[...], 0.0)


def basic_block_forward(x_nchw, w1, g1, b1, w2, g2, b2, eps=1e-5):
    """x_nchw: (N, C, H, W); w1/w2: (Cout, Cin, 3, 3) OIHW; BN in training mode."""
    N, Cin, H, W = x_nchw.shape
    Cout = w1.shape[0]
    assert Cin == Cout, "downsample=None requires inplanes == planes"
    Cp = ((Cout + LANE - 1) // LANE) * LANE  # lane-dense channel count

    # NCHW -> NHWC; zero-pad channels to Cp.  Padded channels stay exactly 0
    # through both convs / BNs and are sliced off at the end.
    x = jnp.transpose(x_nchw, (0, 2, 3, 1)).astype(jnp.float32)
    x = jnp.pad(x, ((0, 0), (0, 0), (0, 0), (0, Cp - Cin)))

    def prep_w(w):  # OIHW -> (9, Cp_in, Cp_out) bf16 for the MXU
        w_hwio = jnp.transpose(w, (2, 3, 1, 0)).astype(jnp.float32)
        w_hwio = jnp.pad(w_hwio, ((0, 0), (0, 0), (0, Cp - Cin), (0, Cp - Cout)))
        return w_hwio.reshape(9, Cp, Cp).astype(jnp.bfloat16)

    w1_k, w2_k = prep_w(w1), prep_w(w2)
    g1p = jnp.pad(g1.astype(jnp.float32), (0, Cp - Cout), constant_values=1.0)
    b1p = jnp.pad(b1.astype(jnp.float32), (0, Cp - Cout))
    g2p = jnp.pad(g2.astype(jnp.float32), (0, Cp - Cout), constant_values=1.0)
    b2p = jnp.pad(b2.astype(jnp.float32), (0, Cp - Cout))

    cparams = pltpu.CompilerParams(
        dimension_semantics=("parallel",),           # v7x: split batch over 2 TCs
        vmem_limit_bytes=32 * 1024 * 1024,
    )

    img_spec = pl.BlockSpec((None, H, W, Cp), lambda n: (n, 0, 0, 0))
    stat_spec = pl.BlockSpec((None, 1, Cp), lambda n: (n, 0, 0))
    vec_spec = pl.BlockSpec((1, Cp), lambda n: (0, 0))
    w_spec = pl.BlockSpec((9, Cp, Cp), lambda n: (0, 0, 0))
    conv_out_shape = (
        jax.ShapeDtypeStruct((N, H, W, Cp), jnp.float32),   # conv output
        jax.ShapeDtypeStruct((N, 1, Cp), jnp.float32),      # per-tile sum
        jax.ShapeDtypeStruct((N, 1, Cp), jnp.float32),      # per-tile sum of squares
    )
    conv_scratch = [
        pltpu.VMEM((H + 2, W + 2, Cp), jnp.float32),  # in-kernel padded activation
        pltpu.VMEM((H * W, Cp), jnp.float32),         # f32 matmul accumulator
    ]

    # ---- pass 1: conv1 + partial BN1 statistics ----
    y1, s1, ss1 = pl.pallas_call(
        functools.partial(_conv1_kernel, H=H, W=W, Cp=Cp),
        grid=(N,),
        in_specs=[img_spec, w_spec],
        out_specs=(img_spec, stat_spec, stat_spec),
        out_shape=conv_out_shape,
        scratch_shapes=conv_scratch,
        compiler_params=cparams,
    )(x, w1_k)

    count = float(N * H * W)

    def bn_scale_shift(s, ss, g, b):
        # training-mode BN (biased variance), folded into per-channel FMA coeffs
        mean = jnp.sum(s, axis=(0, 1)) / count
        var = jnp.maximum(jnp.sum(ss, axis=(0, 1)) / count - mean * mean, 0.0)
        scale = g * jax.lax.rsqrt(var + eps)
        shift = b - mean * scale
        return scale.reshape(1, Cp), shift.reshape(1, Cp)

    sc1, sh1 = bn_scale_shift(s1, ss1, g1p, b1p)

    # ---- pass 2: fused BN1+ReLU -> conv2 + partial BN2 statistics ----
    y2, s2, ss2 = pl.pallas_call(
        functools.partial(_bn_relu_conv2_kernel, H=H, W=W, Cp=Cp),
        grid=(N,),
        in_specs=[img_spec, vec_spec, vec_spec, w_spec],
        out_specs=(img_spec, stat_spec, stat_spec),
        out_shape=conv_out_shape,
        scratch_shapes=conv_scratch,
        compiler_params=cparams,
    )(y1, sc1, sh1, w2_k)

    sc2, sh2 = bn_scale_shift(s2, ss2, g2p, b2p)

    # ---- pass 3: BN2 + residual add + ReLU ----
    out = pl.pallas_call(
        _bn_add_relu_kernel,
        grid=(N,),
        in_specs=[img_spec, img_spec, vec_spec, vec_spec],
        out_specs=img_spec,
        out_shape=jax.ShapeDtypeStruct((N, H, W, Cp), jnp.float32),
        compiler_params=cparams,
    )(y2, x, sc2, sh2)

    return jnp.transpose(out[..., :Cout], (0, 3, 1, 2))     # back to NCHW


def _reference(x, w1, g1, b1, w2, g2, b2, eps=1e-5):
    """Pure-JAX NCHW reference with matching numerics (bf16 conv operands,
    f32 accumulation, training-mode BatchNorm)."""
    def conv(x, w):
        return jax.lax.conv_general_dilated(
            x.astype(jnp.bfloat16), w.astype(jnp.bfloat16),
            window_strides=(1, 1), padding=((1, 1), (1, 1)),
            dimension_numbers=("NCHW", "OIHW", "NCHW"),
            preferred_element_type=jnp.float32)

    def bn(x, g, b):
        mean = jnp.mean(x, axis=(0, 2, 3), keepdims=True)
        var = jnp.mean((x - mean) ** 2, axis=(0, 2, 3), keepdims=True)
        return ((x - mean) * jax.lax.rsqrt(var + eps)
                * g.reshape(1, -1, 1, 1) + b.reshape(1, -1, 1, 1))

    out = jnp.maximum(bn(conv(x, w1), g1, b1), 0.0)
    out = bn(conv(out, w2), g2, b2)
    return jnp.maximum(out + x, 0.0)


if __name__ == "__main__":
    key = jax.random.PRNGKey(0)
    k_x, k_w1, k_w2, k_g1, k_b1, k_g2, k_b2 = jax.random.split(key, 7)

    N, C, H, W = 2, 4, 16, 16          # inplanes = planes = 4, stride = 1
    x = jax.random.normal(k_x, (N, C, H, W), dtype=jnp.float32)

    # conv3x3 weights (bias=False); BN affine params (nontrivial for testing)
    w1 = jax.random.normal(k_w1, (C, C, 3, 3), dtype=jnp.float32) * 0.1
    w2 = jax.random.normal(k_w2, (C, C, 3, 3), dtype=jnp.float32) * 0.1
    g1 = 1.0 + 0.1 * jax.random.normal(k_g1, (C,), dtype=jnp.float32)
    b1 = 0.1 * jax.random.normal(k_b1, (C,), dtype=jnp.float32)
    g2 = 1.0 + 0.1 * jax.random.normal(k_g2, (C,), dtype=jnp.float32)
    b2 = 0.1 * jax.random.normal(k_b2, (C,), dtype=jnp.float32)

    out = jax.block_until_ready(basic_block_forward(x, w1, g1, b1, w2, g2, b2))
    ref = jax.block_until_ready(_reference(x, w1, g1, b1, w2, g2, b2))

    assert out.shape == (N, C, H, W)
    assert bool(jnp.all(jnp.isfinite(out))), "non-finite values in output"
    assert jnp.allclose(out, ref, rtol=3e-2, atol=3e-2), "mismatch vs reference"

    print("KERNEL_OK")
</pallas_src>

<mosaic_0001>
module attributes {stable_mosaic.version = 11 : i64} {
  func.func @_conv1_kernel(%arg0: i32, %arg1: memref<1x16x16x128xf32, #tpu.memory_space<vmem>>, %arg2: memref<9x128x128xbf16, #tpu.memory_space<vmem>>, %arg3: memref<1x16x16x128xf32, #tpu.memory_space<vmem>>, %arg4: memref<1x1x128xf32, #tpu.memory_space<vmem>>, %arg5: memref<1x1x128xf32, #tpu.memory_space<vmem>>, %arg6: memref<18x18x128xf32, #tpu.memory_space<vmem>>, %arg7: memref<256x128xf32, #tpu.memory_space<vmem>>) attributes {dimension_semantics = [#tpu.dimension_semantics<parallel>], iteration_bounds = array<i64: 2>, scalar_prefetch = 0 : i64, scratch_operands = 2 : i64, tpu.core_type = #tpu.core_type<tc>, window_params = [{transform_indices = @transform_0, window_bounds = array<i64: 1, 16, 16, 128>}, {pipeline_mode = #tpu.pipeline_mode<synchronous>, transform_indices = @transform_1, window_bounds = array<i64: 9, 128, 128>}, {transform_indices = @transform_2, window_bounds = array<i64: 1, 16, 16, 128>}, {transform_indices = @transform_3, window_bounds = array<i64: 1, 1, 128>}, {transform_indices = @transform_4, window_bounds = array<i64: 1, 1, 128>}]} {
    %c0 = arith.constant 0 : index
    %c0_0 = arith.constant 0 : index
    %c0_1 = arith.constant 0 : index
    %c0_2 = arith.constant 0 : index
    %0 = vector.load %arg1[%c0, %c0_0, %c0_1, %c0_2] : memref<1x16x16x128xf32, #tpu.memory_space<vmem>>, vector<1x16x16x128xf32>
    %1 = vector.shape_cast %0 : vector<1x16x16x128xf32> to vector<16x16x128xf32>
    %cst = arith.constant 0.000000e+00 : f32
    %2 = vector.broadcast %cst : f32 to vector<1x18x128xf32>
    %c0_3 = arith.constant 0 : index
    %c0_4 = arith.constant 0 : index
    %c0_5 = arith.constant 0 : index
    %3 = vector.load %arg6[%c0_3, %c0_4, %c0_5] : memref<18x18x128xf32, #tpu.memory_space<vmem>>, vector<1x18x128xf32>
    tpu.vector_store %arg6[%c0_3, %c0_4, %c0_5], %2 {strides = array<i32>} : memref<18x18x128xf32, #tpu.memory_space<vmem>>, vector<1x18x128xf32>,
    %c17 = arith.constant 17 : index
    %c0_6 = arith.constant 0 : index
    %c0_7 = arith.constant 0 : index
    %4 = vector.load %arg6[%c17, %c0_6, %c0_7] : memref<18x18x128xf32, #tpu.memory_space<vmem>>, vector<1x18x128xf32>
    tpu.vector_store %arg6[%c17, %c0_6, %c0_7], %2 {strides = array<i32>} : memref<18x18x128xf32, #tpu.memory_space<vmem>>, vector<1x18x128xf32>,
    %cst_8 = arith.constant 0.000000e+00 : f32
    %5 = vector.broadcast %cst_8 : f32 to vector<18x1x128xf32>
    %c0_9 = arith.constant 0 : index
    %c0_10 = arith.constant 0 : index
    %c0_11 = arith.constant 0 : index
    %6 = vector.load %arg6[%c0_9, %c0_10, %c0_11] : memref<18x18x128xf32, #tpu.memory_space<vmem>>, vector<18x1x128xf32>
    tpu.vector_store %arg6[%c0_9, %c0_10, %c0_11], %5 {strides = array<i32>} : memref<18x18x128xf32, #tpu.memory_space<vmem>>, vector<18x1x128xf32>,
    %c0_12 = arith.constant 0 : index
    %c17_13 = arith.constant 17 : index
    %c0_14 = arith.constant 0 : index
    %7 = vector.load %arg6[%c0_12, %c17_13, %c0_14] : memref<18x18x128xf32, #tpu.memory_space<vmem>>, vector<18x1x128xf32>
    tpu.vector_store %arg6[%c0_12, %c17_13, %c0_14], %5 {strides = array<i32>} : memref<18x18x128xf32, #tpu.memory_space<vmem>>, vector<18x1x128xf32>,
    %c1 = arith.constant 1 : index
    %c1_15 = arith.constant 1 : index
    %c0_16 = arith.constant 0 : index
    %8 = vector.load %arg6[%c1, %c1_15, %c0_16] : memref<18x18x128xf32, #tpu.memory_space<vmem>>, vector<16x16x128xf32>
    tpu.vector_store %arg6[%c1, %c1_15, %c0_16], %1 {strides = array<i32>} : memref<18x18x128xf32, #tpu.memory_space<vmem>>, vector<16x16x128xf32>,
    %cst_17 = arith.constant 0.000000e+00 : f32
    %9 = vector.broadcast %cst_17 : f32 to vector<256x128xf32>
    %c0_18 = arith.constant 0 : index
    %c0_19 = arith.constant 0 : index
    %10 = vector.load %arg7[%c0_18, %c0_19] : memref<256x128xf32, #tpu.memory_space<vmem>>, vector<256x128xf32>
    tpu.vector_store %arg7[%c0_18, %c0_19], %9 {strides = array<i32>} : memref<256x128xf32, #tpu.memory_space<vmem>>, vector<256x128xf32>,
    %c0_20 = arith.constant 0 : index
    %c0_21 = arith.constant 0 : index
    %c0_22 = arith.constant 0 : index
    %11 = vector.load %arg6[%c0_20, %c0_21, %c0_22] : memref<18x18x128xf32, #tpu.memory_space<vmem>>, vector<16x16x128xf32>
    %12 = arith.truncf %11 : vector<16x16x128xf32> to vector<16x16x128xbf16>
    %c0_23 = arith.constant 0 : index
    %c0_24 = arith.constant 0 : index
    %13 = vector.load %arg7[%c0_23, %c0_24] : memref<256x128xf32, #tpu.memory_space<vmem>>, vector<256x128xf32>
    %14 = vector.shape_cast %12 : vector<16x16x128xbf16> to vector<256x128xbf16>
    %c0_25 = arith.constant 0 : index
    %c0_26 = arith.constant 0 : index
    %c0_27 = arith.constant 0 : index
    %15 = vector.load %arg2[%c0_25, %c0_26, %c0_27] : memref<9x128x128xbf16, #tpu.memory_space<vmem>>, vector<1x128x128xbf16>
    %16 = vector.shape_cast %15 : vector<1x128x128xbf16> to vector<128x128xbf16>
    %cst_28 = arith.constant dense<0.000000e+00> : vector<256x128xf32>
    %17 = tpu.matmul %14, %16, %cst_28 {dimension_numbers = #tpu.dot_dimension_numbers<[1], [0], [0], [1], [0, 0, 1, 1], [], []>} : vector<256x128xbf16>, vector<128x128xbf16>, vector<256x128xf32> -> vector<256x128xf32>
    %18 = arith.addf %13, %17 : vector<256x128xf32>
    %c0_29 = arith.constant 0 : index
    %c0_30 = arith.constant 0 : index
    %19 = vector.load %arg7[%c0_29, %c0_30] : memref<256x128xf32, #tpu.memory_space<vmem>>, vector<256x128xf32>
    tpu.vector_store %arg7[%c0_29, %c0_30], %18 {strides = array<i32>} : memref<256x128xf32, #tpu.memory_space<vmem>>, vector<256x128xf32>,
    %c0_31 = arith.constant 0 : index
    %c1_32 = arith.constant 1 : index
    %c0_33 = arith.constant 0 : index
    %20 = vector.load %arg6[%c0_31, %c1_32, %c0_33] : memref<18x18x128xf32, #tpu.memory_space<vmem>>, vector<16x16x128xf32>
    %21 = arith.truncf %20 : vector<16x16x128xf32> to vector<16x16x128xbf16>
    %c0_34 = arith.constant 0 : index
    %c0_35 = arith.constant 0 : index
    %22 = vector.load %arg7[%c0_34, %c0_35] : memref<256x128xf32, #tpu.memory_space<vmem>>, vector<256x128xf32>
    %23 = vector.shape_cast %21 : vector<16x16x128xbf16> to vector<256x128xbf16>
    %c1_36 = arith.constant 1 : index
    %c0_37 = arith.constant 0 : index
    %c0_38 = arith.constant 0 : index
    %24 = vector.load %arg2[%c1_36, %c0_37, %c0_38] : memref<9x128x128xbf16, #tpu.memory_space<vmem>>, vector<1x128x128xbf16>
    %25 = vector.shape_cast %24 : vector<1x128x128xbf16> to vector<128x128xbf16>
    %cst_39 = arith.constant dense<0.000000e+00> : vector<256x128xf32>
    %26 = tpu.matmul %23, %25, %cst_39 {dimension_numbers = #tpu.dot_dimension_numbers<[1], [0], [0], [1], [0, 0, 1, 1], [], []>} : vector<256x128xbf16>, vector<128x128xbf16>, vector<256x128xf32> -> vector<256x128xf32>
    %27 = arith.addf %22, %26 : vector<256x128xf32>
    %c0_40 = arith.constant 0 : index
    %c0_41 = arith.constant 0 : index
    %28 = vector.load %arg7[%c0_40, %c0_41] : memref<256x128xf32, #tpu.memory_space<vmem>>, vector<256x128xf32>
    tpu.vector_store %arg7[%c0_40, %c0_41], %27 {strides = array<i32>} : memref<256x128xf32, #tpu.memory_space<vmem>>, vector<256x128xf32>,
    %c0_42 = arith.constant 0 : index
    %c2 = arith.constant 2 : index
    %c0_43 = arith.constant 0 : index
    %29 = vector.load %arg6[%c0_42, %c2, %c0_43] : memref<18x18x128xf32, #tpu.memory_space<vmem>>, vector<16x16x128xf32>
    %30 = arith.truncf %29 : vector<16x16x128xf32> to vector<16x16x128xbf16>
    %c0_44 = arith.constant 0 : index
    %c0_45 = arith.constant 0 : index
    %31 = vector.load %arg7[%c0_44, %c0_45] : memref<256x128xf32, #tpu.memory_space<vmem>>, vector<256x128xf32>
    %32 = vector.shape_cast %30 : vector<16x16x128xbf16> to vector<256x128xbf16>
    %c2_46 = arith.constant 2 : index
    %c0_47 = arith.constant 0 : index
    %c0_48 = arith.constant 0 : index
    %33 = vector.load %arg2[%c2_46, %c0_47, %c0_48] : memref<9x128x128xbf16, #tpu.memory_space<vmem>>, vector<1x128x128xbf16>
    %34 = vector.shape_cast %33 : vector<1x128x128xbf16> to vector<128x128xbf16>
    %cst_49 = arith.constant dense<0.000000e+00> : vector<256x128xf32>
    %35 = tpu.matmul %32, %34, %cst_49 {dimension_numbers = #tpu.dot_dimension_numbers<[1], [0], [0], [1], [0, 0, 1, 1], [], []>} : vector<256x128xbf16>, vector<128x128xbf16>, vector<256x128xf32> -> vector<256x128xf32>
    %36 = arith.addf %31, %35 : vector<256x128xf32>
    %c0_50 = arith.constant 0 : index
    %c0_51 = arith.constant 0 : index
    %37 = vector.load %arg7[%c0_50, %c0_51] : memref<256x128xf32, #tpu.memory_space<vmem>>, vector<256x128xf32>
    tpu.vector_store %arg7[%c0_50, %c0_51], %36 {strides = array<i32>} : memref<256x128xf32, #tpu.memory_space<vmem>>, vector<256x128xf32>,
    %c1_52 = arith.constant 1 : index
    %c0_53 = arith.constant 0 : index
    %c0_54 = arith.constant 0 : index
    %38 = vector.load %arg6[%c1_52, %c0_53, %c0_54] : memref<18x18x128xf32, #tpu.memory_space<vmem>>, vector<16x16x128xf32>
    %39 = arith.truncf %38 : vector<16x16x128xf32> to vector<16x16x128xbf16>
    %c0_55 = arith.constant 0 : index
    %c0_56 = arith.constant 0 : index
    %40 = vector.load %arg7[%c0_55, %c0_56] : memref<256x128xf32, #tpu.memory_space<vmem>>, vector<256x128xf32>
    %41 = vector.shape_cast %39 : vector<16x16x128xbf16> to vector<256x128xbf16>
    %c3 = arith.constant 3 : index
    %c0_57 = arith.constant 0 : index
    %c0_58 = arith.constant 0 : index
    %42 = vector.load %arg2[%c3, %c0_57, %c0_58] : memref<9x128x128xbf16, #tpu.memory_space<vmem>>, vector<1x128x128xbf16>
    %43 = vector.shape_cast %42 : vector<1x128x128xbf16> to vector<128x128xbf16>
    %cst_59 = arith.constant dense<0.000000e+00> : vector<256x128xf32>
    %44 = tpu.matmul %41, %43, %cst_59 {dimension_numbers = #tpu.dot_dimension_numbers<[1], [0], [0], [1], [0, 0, 1, 1], [], []>} : vector<256x128xbf16>, vector<128x128xbf16>, vector<256x128xf32> -> vector<256x128xf32>
    %45 = arith.addf %40, %44 : vector<256x128xf32>
    %c0_60 = arith.constant 0 : index
    %c0_61 = arith.constant 0 : index
    %46 = vector.load %arg7[%c0_60, %c0_61] : memref<256x128xf32, #tpu.memory_space<vmem>>, vector<256x128xf32>
    tpu.vector_store %arg7[%c0_60, %c0_61], %45 {strides = array<i32>} : memref<256x128xf32, #tpu.memory_space<vmem>>, vector<256x128xf32>,
    %c1_62 = arith.constant 1 : index
    %c1_63 = arith.constant 1 : index
    %c0_64 = arith.constant 0 : index
    %47 = vector.load %arg6[%c1_62, %c1_63, %c0_64] : memref<18x18x128xf32, #tpu.memory_space<vmem>>, vector<16x16x128xf32>
    %48 = arith.truncf %47 : vector<16x16x128xf32> to vector<16x16x128xbf16>
    %c0_65 = arith.constant 0 : index
    %c0_66 = arith.constant 0 : index
    %49 = vector.load %arg7[%c0_65, %c0_66] : memref<256x128xf32, #tpu.memory_space<vmem>>, vector<256x128xf32>
    %50 = vector.shape_cast %48 : vector<16x16x128xbf16> to vector<256x128xbf16>
    %c4 = arith.constant 4 : index
    %c0_67 = arith.constant 0 : index
    %c0_68 = arith.constant 0 : index
    %51 = vector.load %arg2[%c4, %c0_67, %c0_68] : memref<9x128x128xbf16, #tpu.memory_space<vmem>>, vector<1x128x128xbf16>
    %52 = vector.shape_cast %51 : vector<1x128x128xbf16> to vector<128x128xbf16>
    %cst_69 = arith.constant dense<0.000000e+00> : vector<256x128xf32>
    %53 = tpu.matmul %50, %52, %cst_69 {dimension_numbers = #tpu.dot_dimension_numbers<[1], [0], [0], [1], [0, 0, 1, 1], [], []>} : vector<256x128xbf16>, vector<128x128xbf16>, vector<256x128xf32> -> vector<256x128xf32>
    %54 = arith.addf %49, %53 : vector<256x128xf32>
    %c0_70 = arith.constant 0 : index
    %c0_71 = arith.constant 0 : index
    %55 = vector.load %arg7[%c0_70, %c0_71] : memref<256x128xf32, #tpu.memory_space<vmem>>, vector<256x128xf32>
    tpu.vector_store %arg7[%c0_70, %c0_71], %54 {strides = array<i32>} : memref<256x128xf32, #tpu.memory_space<vmem>>, vector<256x128xf32>,
    %c1_72 = arith.constant 1 : index
    %c2_73 = arith.constant 2 : index
    %c0_74 = arith.constant 0 : index
    %56 = vector.load %arg6[%c1_72, %c2_73, %c0_74] : memref<18x18x128xf32, #tpu.memory_space<vmem>>, vector<16x16x128xf32>
    %57 = arith.truncf %56 : vector<16x16x128xf32> to vector<16x16x128xbf16>
    %c0_75 = arith.constant 0 : index
    %c0_76 = arith.constant 0 : index
    %58 = vector.load %arg7[%c0_75, %c0_76] : memref<256x128xf32, #tpu.memory_space<vmem>>, vector<256x128xf32>
    %59 = vector.shape_cast %57 : vector<16x16x128xbf16> to vector<256x128xbf16>
    %c5 = arith.constant 5 : index
    %c0_77 = arith.constant 0 : index
    %c0_78 = arith.constant 0 : index
    %60 = vector.load %arg2[%c5, %c0_77, %c0_78] : memref<9x128x128xbf16, #tpu.memory_space<vmem>>, vector<1x128x128xbf16>
    %61 = vector.shape_cast %60 : vector<1x128x128xbf16> to vector<128x128xbf16>
    %cst_79 = arith.constant dense<0.000000e+00> : vector<256x128xf32>
    %62 = tpu.matmul %59, %61, %cst_79 {dimension_numbers = #tpu.dot_dimension_numbers<[1], [0], [0], [1], [0, 0, 1, 1], [], []>} : vector<256x128xbf16>, vector<128x128xbf16>, vector<256x128xf32> -> vector<256x128xf32>
    %63 = arith.addf %58, %62 : vector<256x128xf32>
    %c0_80 = arith.constant 0 : index
    %c0_81 = arith.constant 0 : index
    %64 = vector.load %arg7[%c0_80, %c0_81] : memref<256x128xf32, #tpu.memory_space<vmem>>, vector<256x128xf32>
    tpu.vector_store %arg7[%c0_80, %c0_81], %63 {strides = array<i32>} : memref<256x128xf32, #tpu.memory_space<vmem>>, vector<256x128xf32>,
    %c2_82 = arith.constant 2 : index
    %c0_83 = arith.constant 0 : index
    %c0_84 = arith.constant 0 : index
    %65 = vector.load %arg6[%c2_82, %c0_83, %c0_84] : memref<18x18x128xf32, #tpu.memory_space<vmem>>, vector<16x16x128xf32>
    %66 = arith.truncf %65 : vector<16x16x128xf32> to vector<16x16x128xbf16>
    %c0_85 = arith.constant 0 : index
    %c0_86 = arith.constant 0 : index
    %67 = vector.load %arg7[%c0_85, %c0_86] : memref<256x128xf32, #tpu.memory_space<vmem>>, vector<256x128xf32>
    %68 = vector.shape_cast %66 : vector<16x16x128xbf16> to vector<256x128xbf16>
    %c6 = arith.constant 6 : index
    %c0_87 = arith.constant 0 : index
    %c0_88 = arith.constant 0 : index
    %69 = vector.load %arg2[%c6, %c0_87, %c0_88] : memref<9x128x128xbf16, #tpu.memory_space<vmem>>, vector<1x128x128xbf16>
    %70 = vector.shape_cast %69 : vector<1x128x128xbf16> to vector<128x128xbf16>
    %cst_89 = arith.constant dense<0.000000e+00> : vector<256x128xf32>
    %71 = tpu.matmul %68, %70, %cst_89 {dimension_numbers = #tpu.dot_dimension_numbers<[1], [0], [0], [1], [0, 0, 1, 1], [], []>} : vector<256x128xbf16>, vector<128x128xbf16>, vector<256x128xf32> -> vector<256x128xf32>
    %72 = arith.addf %67, %71 : vector<256x128xf32>
    %c0_90 = arith.constant 0 : index
    %c0_91 = arith.constant 0 : index
    %73 = vector.load %arg7[%c0_90, %c0_91] : memref<256x128xf32, #tpu.memory_space<vmem>>, vector<256x128xf32>
    tpu.vector_store %arg7[%c0_90, %c0_91], %72 {strides = array<i32>} : memref<256x128xf32, #tpu.memory_space<vmem>>, vector<256x128xf32>,
    %c2_92 = arith.constant 2 : index
    %c1_93 = arith.constant 1 : index
    %c0_94 = arith.constant 0 : index
    %74 = vector.load %arg6[%c2_92, %c1_93, %c0_94] : memref<18x18x128xf32, #tpu.memory_space<vmem>>, vector<16x16x128xf32>
    %75 = arith.truncf %74 : vector<16x16x128xf32> to vector<16x16x128xbf16>
    %c0_95 = arith.constant 0 : index
    %c0_96 = arith.constant 0 : index
    %76 = vector.load %arg7[%c0_95, %c0_96] : memref<256x128xf32, #tpu.memory_space<vmem>>, vector<256x128xf32>
    %77 = vector.shape_cast %75 : vector<16x16x128xbf16> to vector<256x128xbf16>
    %c7 = arith.constant 7 : index
    %c0_97 = arith.constant 0 : index
    %c0_98 = arith.constant 0 : index
    %78 = vector.load %arg2[%c7, %c0_97, %c0_98] : memref<9x128x128xbf16, #tpu.memory_space<vmem>>, vector<1x128x128xbf16>
    %79 = vector.shape_cast %78 : vector<1x128x128xbf16> to vector<128x128xbf16>
    %cst_99 = arith.constant dense<0.000000e+00> : vector<256x128xf32>
    %80 = tpu.matmul %77, %79, %cst_99 {dimension_numbers = #tpu.dot_dimension_numbers<[1], [0], [0], [1], [0, 0, 1, 1], [], []>} : vector<256x128xbf16>, vector<128x128xbf16>, vector<256x128xf32> -> vector<256x128xf32>
    %81 = arith.addf %76, %80 : vector<256x128xf32>
    %c0_100 = arith.constant 0 : index
    %c0_101 = arith.constant 0 : index
    %82 = vector.load %arg7[%c0_100, %c0_101] : memref<256x128xf32, #tpu.memory_space<vmem>>, vector<256x128xf32>
    tpu.vector_store %arg7[%c0_100, %c0_101], %81 {strides = array<i32>} : memref<256x128xf32, #tpu.memory_space<vmem>>, vector<256x128xf32>,
    %c2_102 = arith.constant 2 : index
    %c2_103 = arith.constant 2 : index
    %c0_104 = arith.constant 0 : index
    %83 = vector.load %arg6[%c2_102, %c2_103, %c0_104] : memref<18x18x128xf32, #tpu.memory_space<vmem>>, vector<16x16x128xf32>
    %84 = arith.truncf %83 : vector<16x16x128xf32> to vector<16x16x128xbf16>
    %c0_105 = arith.constant 0 : index
    %c0_106 = arith.constant 0 : index
    %85 = vector.load %arg7[%c0_105, %c0_106] : memref<256x128xf32, #tpu.memory_space<vmem>>, vector<256x128xf32>
    %86 = vector.shape_cast %84 : vector<16x16x128xbf16> to vector<256x128xbf16>
    %c8 = arith.constant 8 : index
    %c0_107 = arith.constant 0 : index
    %c0_108 = arith.constant 0 : index
    %87 = vector.load %arg2[%c8, %c0_107, %c0_108] : memref<9x128x128xbf16, #tpu.memory_space<vmem>>, vector<1x128x128xbf16>
    %88 = vector.shape_cast %87 : vector<1x128x128xbf16> to vector<128x128xbf16>
    %cst_109 = arith.constant dense<0.000000e+00> : vector<256x128xf32>
    %89 = tpu.matmul %86, %88, %cst_109 {dimension_numbers = #tpu.dot_dimension_numbers<[1], [0], [0], [1], [0, 0, 1, 1], [], []>} : vector<256x128xbf16>, vector<128x128xbf16>, vector<256x128xf32> -> vector<256x128xf32>
    %90 = arith.addf %85, %89 : vector<256x128xf32>
    %c0_110 = arith.constant 0 : index
    %c0_111 = arith.constant 0 : index
    %91 = vector.load %arg7[%c0_110, %c0_111] : memref<256x128xf32, #tpu.memory_space<vmem>>, vector<256x128xf32>
    tpu.vector_store %arg7[%c0_110, %c0_111], %90 {strides = array<i32>} : memref<256x128xf32, #tpu.memory_space<vmem>>, vector<256x128xf32>,
    %c0_112 = arith.constant 0 : index
    %c0_113 = arith.constant 0 : index
    %92 = vector.load %arg7[%c0_112, %c0_113] : memref<256x128xf32, #tpu.memory_space<vmem>>, vector<256x128xf32>
    %93 = vector.shape_cast %92 : vector<256x128xf32> to vector<16x16x128xf32>
    %c0_114 = arith.constant 0 : index
    %c0_115 = arith.constant 0 : index
    %c0_116 = arith.constant 0 : index
    %c0_117 = arith.constant 0 : index
    %94 = vector.load %arg3[%c0_114, %c0_115, %c0_116, %c0_117] : memref<1x16x16x128xf32, #tpu.memory_space<vmem>>, vector<1x16x16x128xf32>
    %95 = vector.shape_cast %94 : vector<1x16x16x128xf32> to vector<16x16x128xf32>
    %96 = vector.shape_cast %93 : vector<16x16x128xf32> to vector<1x16x16x128xf32>
    tpu.vector_store %arg3[%c0_114, %c0_115, %c0_116, %c0_117], %96 {strides = array<i32>} : memref<1x16x16x128xf32, #tpu.memory_space<vmem>>, vector<1x16x16x128xf32>,
    %cst_118 = arith.constant dense<0.000000e+00> : vector<128xf32>
    %97 = vector.multi_reduction <add>, %92, %cst_118 [0] : vector<256x128xf32> to vector<128xf32>
    %98 = vector.shape_cast %97 : vector<128xf32> to vector<1x128xf32>
    %c0_119 = arith.constant 0 : index
    %c0_120 = arith.constant 0 : index
    %c0_121 = arith.constant 0 : index
    %99 = vector.load %arg4[%c0_119, %c0_120, %c0_121] : memref<1x1x128xf32, #tpu.memory_space<vmem>>, vector<1x1x128xf32>
    %100 = vector.shape_cast %99 : vector<1x1x128xf32> to vector<1x128xf32>
    %101 = vector.shape_cast %98 : vector<1x128xf32> to vector<1x1x128xf32>
    tpu.vector_store %arg4[%c0_119, %c0_120, %c0_121], %101 {strides = array<i32>} : memref<1x1x128xf32, #tpu.memory_space<vmem>>, vector<1x1x128xf32>,
    %102 = arith.mulf %92, %92 : vector<256x128xf32>
    %cst_122 = arith.constant dense<0.000000e+00> : vector<128xf32>
    %103 = vector.multi_reduction <add>, %102, %cst_122 [0] : vector<256x128xf32> to vector<128xf32>
    %104 = vector.shape_cast %103 : vector<128xf32> to vector<1x128xf32>
    %c0_123 = arith.constant 0 : index
    %c0_124 = arith.constant 0 : index
    %c0_125 = arith.constant 0 : index
    %105 = vector.load %arg5[%c0_123, %c0_124, %c0_125] : memref<1x1x128xf32, #tpu.memory_space<vmem>>, vector<1x1x128xf32>
    %106 = vector.shape_cast %105 : vector<1x1x128xf32> to vector<1x128xf32>
    %107 = vector.shape_cast %104 : vector<1x128xf32> to vector<1x1x128xf32>
    tpu.vector_store %arg5[%c0_123, %c0_124, %c0_125], %107 {strides = array<i32>} : memref<1x1x128xf32, #tpu.memory_space<vmem>>, vector<1x1x128xf32>,
    return
  }
  func.func @transform_0(%arg0: i32) -> (i32, i32, i32, i32) {
    %c0_i32 = arith.constant 0 : i32
    %c0_i32_0 = arith.constant 0 : i32
    %c0_i32_1 = arith.constant 0 : i32
    %c0_i32_2 = arith.constant 0 : i32
    return %arg0, %c0_i32, %c0_i32_0, %c0_i32_1 : i32, i32, i32, i32
  }
  func.func @transform_1(%arg0: i32) -> (i32, i32, i32) {
    %c0_i32 = arith.constant 0 : i32
    %c0_i32_0 = arith.constant 0 : i32
    %c0_i32_1 = arith.constant 0 : i32
    %c0_i32_2 = arith.constant 0 : i32
    return %c0_i32, %c0_i32_0, %c0_i32_1 : i32, i32, i32
  }
  func.func @transform_2(%arg0: i32) -> (i32, i32, i32, i32) {
    %c0_i32 = arith.constant 0 : i32
    %c0_i32_0 = arith.constant 0 : i32
    %c0_i32_1 = arith.constant 0 : i32
    %c0_i32_2 = arith.constant 0 : i32
    return %arg0, %c0_i32, %c0_i32_0, %c0_i32_1 : i32, i32, i32, i32
  }
  func.func @transform_3(%arg0: i32) -> (i32, i32, i32) {
    %c0_i32 = arith.constant 0 : i32
    %c0_i32_0 = arith.constant 0 : i32
    %c0_i32_1 = arith.constant 0 : i32
    return %arg0, %c0_i32, %c0_i32_0 : i32, i32, i32
  }
  func.func @transform_4(%arg0: i32) -> (i32, i32, i32) {
    %c0_i32 = arith.constant 0 : i32
    %c0_i32_0 = arith.constant 0 : i32
    %c0_i32_1 = arith.constant 0 : i32
    return %arg0, %c0_i32, %c0_i32_0 : i32, i32, i32
  }
}

</mosaic_0001>

<bundles_post_ra>
// kernel: tpu_custom_call.1
= control target key start
LH: loop header
LB: loop body
LE: loop exit
PB: predicated region body
PF: predicated region fallthrough
CT: control target
= control target key end

     0   :  { %10 = vsyncpa [#allocation5], 0  ;;  %s5750_s0 = inlined_call_operand.hbm [shape: f32[2,16,16,128], index: 0, kind: input, shape index: {}]   ;;  %s5751_s1 = inlined_call_operand.hbm [shape: bf16[9,128,128], index: 1, kind: input, shape index: {}]   ;;  %s5752_s2 = inlined_call_operand.hbm [shape: f32[2,16,16,128], index: 2, kind: output, shape index: {0}]   ;;  %s5753_s3 = inlined_call_operand.hbm [shape: f32[2,1,128], index: 3, kind: output, shape index: {1}]   ;;  %s5754_s4 = inlined_call_operand.hbm [shape: f32[2,1,128], index: 4, kind: output, shape index: {2}]  }
   0x1   :  { %12 = vsyncpa [#allocation5 + $0x1], 0 }
   0x2   :  { %13 = vsyncpa [#allocation8], 0 }
   0x3   :  { %14 = vsyncpa [#allocation6], 0 }
   0x4   :  { %16 = vsyncpa [#allocation6 + $0x1], 0 }
   0x5   :  { %17 = vsyncpa [#allocation11], 0 }
   0x6   :  { %19 = vsyncpa [#allocation11 + $0x1], 0  ;;  %s5142_s15 = smov 0   ;;  %s5144_s16 = smov 0  }
   0x7   :  { %s5146_s17 = smov 0   ;;  %s5148_s18 = smov 0  }
   0x8 LB: > { %s5163_s19 = sadd.s32 4294967295, %s5106_s18   ;;  %s4439_s20 = sadd.s32 4294967294, %s5106_s18   ;;  %s5106_s18 = sphi %s5148_s18, %s5764_s18   ;;  %s5102_s17 = sphi %s5146_s17, %s5763_s17   ;;  %s5098_s16 = sphi %s5144_s16, %s5762_s16   ;;  %s5094_s15 = sphi %s5142_s15, %s5761_s15  }
   0x9   : > { %p45_p0 = scmp.ne.s32.totalorder %s5098_s16, %s5094_s15  ;;  %p46_p1 = scmp.eq.s32.totalorder %s5163_s19, 0 }
   0xa   : > { %p90_p2 = scmp.eq.s32.totalorder %s5163_s19, 1  ;;  %p96_p3 = scmp.eq.s32.totalorder %s4439_s20, 1 }
   0xb   : > { %p5174_p4 = por %p46_p1, %p45_p0  ;;  %p4440_p5 = scmp.ge.s32.totalorder %s5106_s18, 1 }
   0xc   : > { %p5179_p6 = por %p96_p3, %p45_p0  ;;  %p155_p7 = scmp.lt.s32.totalorder %s5106_s18, 3 }
   0xd   : > { %s166_s25 = sshll.u32 %s5751_s1, 4  ;;  %s5108_s27 = smov [#allocation7]   ;;  %s167_s25 = int_to_ptr.hbm [resolvable:$true] %s166_s25 }
   0xe   : > { %p5187_p8 = pnand %p4440_p5, %p155_p7  ;;  %s168_s28 = sshll.u32 %s5108_s27, 4  ;;  %s169_s28 = int_to_ptr.vmem [resolvable:$true] %s168_s28 }
   0xf   : > { %s5197_s29 = sadd.s32 1, %s5106_s18   ;;  %s5109_s30 = smov 64  }
  0x10   : > { %p4853_p9 = pneg %p5187_p8  ;;  %s5110_s5 = smov 4  }
  0x11   : > { %s29_s6 = ssub.s32 %s5106_s18, %s5197_s29  ;;  %s32_s7 = sadd.s32 1, %s5102_s17 }
  0x12   : > { %p4854_p10 = pnand %p4853_p9, %p46_p1  ;;  %p30_p12 = scmp.eq.s32.totalorder %s29_s6, 0 }
  0x13   : > { %p39_p13 = scmp.ne.s32.totalorder %s5102_s17, %s5098_s16  ;;  %p40_p0 = scmp.eq.s32.totalorder %s5106_s18, 0 }
  0x14   : > { %4856 = dma.hbm_to_vmem [thread:$0]  (!%p4854_p10), %s167_s25, 9216, %s169_s28, [#allocation8], %s5109_s30, %s5109_s30, %s5110_s5  }
  0x15   : > { %p4872_p3 = scmp.lt.s32.totalorder %s5106_s18, 2  ;;  %p41_p5 = por %p40_p0, %p39_p13 }
  0x16   : > { %s5207_s8 = scalar_select %p30_p12, %s5102_s17, %s32_s7  }
  0x17   : > { %p5211_p7 = por %p90_p2, %p39_p13  ;;  %s182_s10 = sand.u32 1, %s5102_s17  }
  0x18   : > { %s4743_s11 = sshll.u32 %s5106_s18, 8  ;;  %s4443_s12 = sshll.u32 %s182_s10, 8 }
  0x19   : > { %s191_s23 = scalar_lea.hbm %s5750_s0, %s4743_s11  ;;  %s186_s25 = scalar_lea.vmem [#allocation4], %s4443_s12 }
  0x1a   : > { %s192_s24 = sshll.u32 %s191_s23, 4  ;;  %s194_s27 = sshll.u32 %s186_s25, 4  ;;  %s193_s24 = int_to_ptr.hbm [resolvable:$true] %s192_s24  ;;  %s195_s27 = int_to_ptr.vmem [resolvable:$true] %s194_s27 }
  0x1b   : > { %p5222_p9 = pnand %p4872_p3, %p41_p5  ;;  %s183_s30 = scalar_lea.sflag [#allocation5], %s182_s10 }
  0x1c   : > { %s4946_s5 = sshra.s32 %s193_s24, 4  ;;  %s4953_s12 = scalar_lea.hbm %s5750_s0, 512  ;;  %s4947_s5 = int_to_ptr.hbm [resolvable:$true] %s4946_s5 }
  0x1d   : > { %s4948_s6 = scalar_lea.hbm %s4947_s5, 256  ;;  %p4950_p10 = pneg %p5222_p9 }
  0x1e   : > { %p4949_p2 = scmp.ne.s32.totalorder %s4947_s5, %s4948_s6  ;;  %p4954_p0 = scmp.lt.s32.totalorder %s4947_s5, %s5750_s0 }
  0x1f   : > { %p4955_p3 = scmp.lt.s32.totalorder %s4953_s12, %s4948_s6 }
  0x20   : > { %p4951_p12 = pnand %p4950_p10, %p4949_p2 }
  0x21   : > { %p4956_p5 = por %p4955_p3, %p4954_p0 }
  0x22   : > { %p4952_p13 = pneg %p4951_p12 }
  0x24   : > { %p4957_p11 = pnand %p4956_p5, %p4952_p13 }
  0x26   : > { %4960 = shalt.err (!%p4957_p11)
}
  0x27   : > { %s5111_s10 = smov 128   ;;  %s5112_s23 = smov 8  }
  0x28   : > { %4860 = dma.hbm_to_vmem [thread:$0]  (!%p5222_p9), %s193_s24, 4096, %s195_s27, %s183_s30, %s5111_s10, %s5111_s10, %s5112_s23  }
  0x29   : > { %206 = sbr.rel (%p5187_p8) target bundleno = 848 (0x350), region = 28  ;;  %s5239_s25 = sand.u32 (!%p5187_p8), 1, %s5098_s16  }
  0x2a   : > { %s4447_s5 = sshll.u32 (!%p5187_p8), %s5239_s25, 8  ;;  %s209_s6 = scalar_lea.sflag (!%p5187_p8), [#allocation5], %s5239_s25 }
  0x2b   : > { %s5245_s7 = scalar_lea.vmem (!%p5187_p8), [#allocation4], %s4447_s5 }
  0x2e   : > { %5077 = dma.done.wait (%p5174_p4), %s209_s6, 4096  }
  0x2f   : > { %5079 = vsyncadd (%p5174_p4), %s209_s6, 4294963200 }
  0x30   : > { %5081 = dma.done.wait (%p46_p1), [#allocation8], 9216  }
  0x31   : > { %5083 = vsyncadd (%p46_p1), [#allocation8], 4294958080  ;;  %v5113_v0 = vmov 0.0   ;;  %v4751_v1 = vld [vmem:[#allocation7 + $0x38] sm:$0xff]  ;;  %v4750_v2 = vld [vmem:[#allocation7 + $0x30] sm:$0xff]  ;;  %v5114_v49 = vmov 0.0|0.0  }
  0x32   : > { %294 = vst [vmem:[#allocation2 + $0x60] sm:$0x1] %v5113_v0  ;;  %4817 = vmatpush.bf16.msra.mxu1 %v4751_v1  ;;  %4818 = vmatpush.bf16.msra.mxu2 %v4751_v1  ;;  %v5264_v3 = vld [vmem:[%s5245_s7 + $0x30] sm:$0xff]  ;;  %v5268_v4 = vld [vmem:[%s5245_s7 + $0x38] sm:$0xff]  ;;  %v4749_v5 = vld [vmem:[#allocation7 + $0x28] sm:$0xff]  ;;  %v536_v50 = vunpack.c.l.b16 %v5114_v49  ;;  %s5601_s21 = scalar_lea.vmem [#allocation9], %s4447_s5 }
  0x33   : > { %283 = vst [vmem:[#allocation2] sm:$0xff] %v5113_v0  ;;  %4819 = vmatpush.bf16.msra.mxu3 %v4751_v1  ;;  %647 = vmatpush.bf16.msra.mxu0 %v4751_v1  ;;  %v4748_v6 = vld [vmem:[#allocation7 + $0x20] sm:$0xff]  ;;  %v4747_v7 = vld [vmem:[#allocation7 + $0x18] sm:$0xff]  ;;  %v4746_v8 = vld [vmem:[#allocation7 + $0x10] sm:$0xff]  ;;  %s4816_s26 = sshll.u32 %s5163_s19, 8  ;;  %s4274_s30 = sshll.u32 %s5601_s21, 4  ;;  %s4275_s30 = int_to_ptr.vmem [resolvable:$true] %s4274_s30 }
  0x34   : > { %284 = vst [vmem:[#allocation2 + $0x8] sm:$0xff] %v5113_v0  ;;  %v4745_v13 = vld [vmem:[#allocation7 + $0x8] sm:$0xff]  ;;  %v4744_v16 = vld [vmem:[#allocation7] sm:$0xff]  ;;  %v4767_v17 = vld [vmem:[#allocation7 + $0xb8] sm:$0xff]  ;;  %s4273_s28 = scalar_lea.hbm %s5752_s2, %s4816_s26  ;;  %s4254_s12 = scalar_lea.sflag [#allocation6], %s5239_s25 }
  0x35   : > { %285 = vst [vmem:[#allocation2 + $0x10] sm:$0x3] %v5113_v0  ;;  %v4775_v18 = vld [vmem:[#allocation7 + $0xf8] sm:$0xff]  ;;  %v265_v22 = vld [vmem:[%s5245_s7 + $0x70] sm:$0xff]  ;;  %v5312_v29 = vld [vmem:[%s5245_s7 + $0x40] sm:$0xff]  ;;  %s4276_s11 = sshll.u32 %s4273_s28, 4  ;;  %s4277_s11 = int_to_ptr.hbm [resolvable:$true] %s4276_s11 }
  0x36   : > { %287 = vst [vmem:[#allocation2 + $0x198] sm:$0xff] %v5113_v0  ;;  %4820 = vmatpush.bf16.msra.mxu1 %v4750_v2  ;;  %4821 = vmatpush.bf16.msra.mxu2 %v4750_v2  ;;  %v4783_v20 = vld [vmem:[#allocation7 + $0x138] sm:$0xff]  ;;  %v4766_v24 = vld [vmem:[#allocation7 + $0xb0] sm:$0xff]  ;;  %v5315_v30 = vld [vmem:[%s5245_s7 + $0x48] sm:$0xff]  ;;  %s4990_s13 = sshra.s32 %s4277_s11, 4  ;;  %s4996_s5 = scalar_lea.hbm %s5752_s2, 512  ;;  %s4991_s13 = int_to_ptr.hbm [resolvable:$true] %s4990_s13 }
  0x37   : > { %288 = vst [vmem:[#allocation2 + $0x1a0] sm:$0xff] %v5113_v0  ;;  %4822 = vmatpush.bf16.msra.mxu3 %v4750_v2  ;;  %648 = vmatpush.bf16.msra.mxu0 %v4750_v2  ;;  %v4759_v21 = vld [vmem:[#allocation7 + $0x78] sm:$0xff]  ;;  %v4774_v25 = vld [vmem:[#allocation7 + $0xf0] sm:$0xff]  ;;  %v4765_v31 = vld [vmem:[#allocation7 + $0xa8] sm:$0xff]  ;;  %s4992_s14 = scalar_lea.hbm %s4991_s13, 256  ;;  %p4997_p11 = scmp.lt.s32.totalorder %s4991_s13, %s5752_s2 }
  0x38   : > { %289 = vst [vmem:[#allocation2 + $0x1a8] sm:$0x3] %v5113_v0  ;;  %v266_v23 = vld [vmem:[%s5245_s7 + $0x78] sm:$0xff]  ;;  %v4758_v26 = vld [vmem:[#allocation7 + $0x70] sm:$0xff]  ;;  %v4773_v32 = vld [vmem:[#allocation7 + $0xe8] sm:$0xff]  ;;  %p4993_p1 = scmp.ne.s32.totalorder %s4991_s13, %s4992_s14  ;;  %p4998_p9 = scmp.lt.s32.totalorder %s4996_s5, %s4992_s14 }
  0x39   : > { %291 = vst [vmem:[#allocation2 + $0x18] sm:$0x1] %v5113_v0  ;;  %v273_v27 = vld [vmem:[%s5245_s7 + $0xb0] sm:$0xff]  ;;  %v274_v28 = vld [vmem:[%s5245_s7 + $0xb8] sm:$0xff]  ;;  %v267_v34 = vld [vmem:[%s5245_s7 + $0x80] sm:$0xff] }
  0x3a   : > { %292 = vst [vmem:[#allocation2 + $0x30] sm:$0x1] %v5113_v0  ;;  %4823 = vmatpush.bf16.msra.mxu1 %v4749_v5  ;;  %4824 = vmatpush.bf16.msra.mxu2 %v4749_v5  ;;  %v4782_v33 = vld [vmem:[#allocation7 + $0x130] sm:$0xff]  ;;  %v268_v35 = vld [vmem:[%s5245_s7 + $0x88] sm:$0xff]  ;;  %v4764_v38 = vld [vmem:[#allocation7 + $0xa0] sm:$0xff]  ;;  %p4994_p4 = pnand %p4993_p1, %p5211_p7  ;;  %p4999_p2 = por %p4998_p9, %p4997_p11 }
  0x3b   : > { %333 = vst [vmem:[#allocation2 + $0x61] sm:$0xff] %v5264_v3  ;;  %4825 = vmatpush.bf16.msra.mxu3 %v4749_v5  ;;  %649 = vmatpush.bf16.msra.mxu0 %v4749_v5  ;;  %v4757_v36 = vld [vmem:[#allocation7 + $0x68] sm:$0xff]  ;;  %v4772_v39 = vld [vmem:[#allocation7 + $0xe0] sm:$0xff]  ;;  %v5331_v58 = vld [vmem:[%s5245_s7 + $0x50] sm:$0xff] }
  0x3c   : > { %334 = vst [vmem:[#allocation2 + $0x69] sm:$0xff] %v5268_v4  ;;  %v4781_v42 = vld [vmem:[#allocation7 + $0x128] sm:$0xff]  ;;  %v4756_v43 = vld [vmem:[#allocation7 + $0x60] sm:$0xff]  ;;  %v5335_v62 = vld [vmem:[%s5245_s7 + $0x58] sm:$0xff]  ;;  %p4995_p8 = pneg %p4994_p4 }
  0x3d   : > { %293 = vst [vmem:[#allocation2 + $0x48] sm:$0x1] %v5113_v0  ;;  %v275_v46 = vld [vmem:[%s5245_s7 + $0xc0] sm:$0xff]  ;;  %v276_v51 = vld [vmem:[%s5245_s7 + $0xc8] sm:$0xff]  ;;  %v269_v1 = vld [vmem:[%s5245_s7 + $0x90] sm:$0xff] }
  0x3e   : > { %295 = vst [vmem:[#allocation2 + $0x78] sm:$0x1] %v5113_v0  ;;  %4826 = vmatpush.bf16.msra.mxu1 %v4748_v6  ;;  %4827 = vmatpush.bf16.msra.mxu2 %v4748_v6  ;;  %v5325_v53 = vld [vmem:[%s5245_s7] sm:$0xff]  ;;  %v5328_v55 = vld [vmem:[%s5245_s7 + $0x8] sm:$0xff]  ;;  %p5000_p10 = pnand %p4999_p2, %p4995_p8 }
  0x3f   : > { %296 = vst [vmem:[#allocation2 + $0x90] sm:$0x1] %v5113_v0  ;;  %4828 = vmatpush.bf16.msra.mxu3 %v4748_v6  ;;  %650 = vmatpush.bf16.msra.mxu0 %v4748_v6  ;;  %v271_v49 = vld [vmem:[%s5245_s7 + $0xa0] sm:$0xff] }
  0x40   : > { %297 = vst [vmem:[#allocation2 + $0xa8] sm:$0x1] %v5113_v0 }
  0x41   : > { %298 = vst [vmem:[#allocation2 + $0xc0] sm:$0x1] %v5113_v0 }
  0x42   : > { %299 = vst [vmem:[#allocation2 + $0xd8] sm:$0x1] %v5113_v0  ;;  %4829 = vmatpush.bf16.msra.mxu1 %v4747_v7  ;;  %4830 = vmatpush.bf16.msra.mxu2 %v4747_v7  ;;  %v399_v9 = vld [vmem:[#allocation2 + $0x60] sm:$0xff] }
  0x43   : > { %300 = vst [vmem:[#allocation2 + $0xf0] sm:$0x1] %v5113_v0  ;;  %v400_v10 = vld [vmem:[#allocation2 + $0x68] sm:$0xff]  ;;  %4831 = vmatpush.bf16.msra.mxu3 %v4747_v7  ;;  %651 = vmatpush.bf16.msra.mxu0 %v4747_v7  ;;  %v431_v11 = vpack.c.bf16 %v399_v9, %v399_v9 }
  0x44   : > { %301 = vst [vmem:[#allocation2 + $0x108] sm:$0x1] %v5113_v0  ;;  %v432_v12 = vpack.c.bf16 %v400_v10, %v400_v10  ;;  %v270_v7 = vld [vmem:[%s5245_s7 + $0x98] sm:$0xff] }
  0x45   : > { %302 = vst [vmem:[#allocation2 + $0x120] sm:$0x1] %v5113_v0  ;;  %v543_v14 = vunpack.c.l.b16 %v431_v11  ;;  %v277_v11 = vld [vmem:[%s5245_s7 + $0xd0] sm:$0xff] }
  0x46   : > { %303 = vst [vmem:[#allocation2 + $0x138] sm:$0x1] %v5113_v0  ;;  %4832 = vmatpush.bf16.msra.mxu1 %v4746_v8  ;;  %4833 = vmatpush.bf16.msra.mxu2 %v4746_v8  ;;  %v544_v15 = vunpack.c.l.b16 %v432_v12 }
  0x47   : > { %304 = vst [vmem:[#allocation2 + $0x150] sm:$0x1] %v5113_v0  ;;  %4834 = vmatpush.bf16.msra.mxu3 %v4746_v8  ;;  %652 = vmatpush.bf16.msra.mxu0 %v4746_v8 }
  0x48   : > { %305 = vst [vmem:[#allocation2 + $0x168] sm:$0x1] %v5113_v0  ;;  %v5296_v19 = vpack.c.b16 %v544_v15, %v543_v14  ;;  %v278_v14 = vld [vmem:[%s5245_s7 + $0xd8] sm:$0xff] }
  0x49   : > { %306 = vst [vmem:[#allocation2 + $0x180] sm:$0x1] %v5113_v0 }
  0x4a   : > { %309 = vst [vmem:[#allocation2 + $0x29] sm:$0x1] %v5113_v0  ;;  %4835 = vmatpush.bf16.msra.mxu1 %v4745_v13  ;;  %4836 = vmatpush.bf16.msra.mxu2 %v4745_v13 }
  0x4b   : > { %310 = vst [vmem:[#allocation2 + $0x41] sm:$0x1] %v5113_v0  ;;  %4837 = vmatpush.bf16.msra.mxu3 %v4745_v13  ;;  %653 = vmatpush.bf16.msra.mxu0 %v4745_v13 }
  0x4c   : > { %311 = vst [vmem:[#allocation2 + $0x59] sm:$0x1] %v5113_v0 }
  0x4d   : > { %312 = vst [vmem:[#allocation2 + $0x71] sm:$0x1] %v5113_v0 }
  0x4e   : > { %313 = vst [vmem:[#allocation2 + $0x89] sm:$0x1] %v5113_v0  ;;  %4838 = vmatpush.bf16.msra.mxu1 %v4744_v16  ;;  %4839 = vmatpush.bf16.msra.mxu2 %v4744_v16 }
  0x4f   : > { %314 = vst [vmem:[#allocation2 + $0xa1] sm:$0x1] %v5113_v0  ;;  %4840 = vmatpush.bf16.msra.mxu3 %v4744_v16  ;;  %654 = vmatpush.bf16.msra.mxu0 %v4744_v16 }
  0x50   : > { %315 = vst [vmem:[#allocation2 + $0xb9] sm:$0x1] %v5113_v0 }
  0x51   : > { %316 = vst [vmem:[#allocation2 + $0xd1] sm:$0x1] %v5113_v0  ;;  %675 = vmatmul.bf16.vlgmr.msra.gmra.mxu1 %v5296_v19 }
  0x52   : > { %317 = vst [vmem:[#allocation2 + $0xe9] sm:$0x1] %v5113_v0  ;;  %1467 = vmatpush.bf16.msrb.mxu2 %v4767_v17  ;;  %1057 = vmatpush.bf16.msrb.mxu1 %v4759_v21 }
  0x53   : > { %318 = vst [vmem:[#allocation2 + $0x101] sm:$0x1] %v5113_v0  ;;  %1877 = vmatpush.bf16.msrb.mxu3 %v4775_v18  ;;  %2287 = vmatpush.bf16.msrb.mxu0 %v4783_v20  ;;  %v5345_v20 = vld [vmem:[%s5245_s7 + $0x10] sm:$0xff] }
  0x54   : > { %319 = vst [vmem:[#allocation2 + $0x119] sm:$0x1] %v5113_v0 }
  0x55   : > { %320 = vst [vmem:[#allocation2 + $0x131] sm:$0x1] %v5113_v0 }
  0x56   : > { %321 = vst [vmem:[#allocation2 + $0x149] sm:$0x1] %v5113_v0  ;;  %1468 = vmatpush.bf16.msrb.mxu2 %v4766_v24  ;;  %1058 = vmatpush.bf16.msrb.mxu1 %v4758_v26  ;;  %v4763_v26 = vld [vmem:[#allocation7 + $0x98] sm:$0xff] }
  0x57   : > { %322 = vst [vmem:[#allocation2 + $0x161] sm:$0x1] %v5113_v0  ;;  %1878 = vmatpush.bf16.msrb.mxu3 %v4774_v25  ;;  %2288 = vmatpush.bf16.msrb.mxu0 %v4782_v33  ;;  %v4755_v33 = vld [vmem:[#allocation7 + $0x58] sm:$0xff] }
  0x58   : > { %323 = vst [vmem:[#allocation2 + $0x179] sm:$0x1] %v5113_v0 }
  0x59   : > { %324 = vst [vmem:[#allocation2 + $0x191] sm:$0x1] %v5113_v0 }
  0x5a   : > { %341 = vst [vmem:[#allocation2 + $0xc1] sm:$0xff] %v265_v22  ;;  %1469 = vmatpush.bf16.msrb.mxu2 %v4765_v31  ;;  %1059 = vmatpush.bf16.msrb.mxu1 %v4757_v36 }
  0x5b   : > { %342 = vst [vmem:[#allocation2 + $0xc9] sm:$0xff] %v266_v23  ;;  %1879 = vmatpush.bf16.msrb.mxu3 %v4773_v32  ;;  %2289 = vmatpush.bf16.msrb.mxu0 %v4781_v42  ;;  %v5348_v23 = vld [vmem:[%s5245_s7 + $0x18] sm:$0xff]  ;;  %v4780_v32 = vld [vmem:[#allocation7 + $0x120] sm:$0xff] }
  0x5c   : > { %290 = vst [vmem:[#allocation2] sm:$0x1] %v5113_v0  ;;  %v4779_v42 = vld [vmem:[#allocation7 + $0x118] sm:$0xff] }
  0x5d   : > { %307 = vst [vmem:[#allocation2 + $0x198] sm:$0x1] %v5113_v0 }
  0x5e   : > { %308 = vst [vmem:[#allocation2 + $0x11] sm:$0x1] %v5113_v0  ;;  %1470 = vmatpush.bf16.msrb.mxu2 %v4764_v38  ;;  %1060 = vmatpush.bf16.msrb.mxu1 %v4756_v43  ;;  %v4762_v38 = vld [vmem:[#allocation7 + $0x90] sm:$0xff] }
  0x5f   : > { %325 = vst [vmem:[#allocation2 + $0x1a9] sm:$0x1] %v5113_v0  ;;  %1880 = vmatpush.bf16.msrb.mxu3 %v4772_v39  ;;  %2290 = vmatpush.bf16.msrb.mxu0 %v4780_v32 }
  0x60   : > { %349 = vst [vmem:[#allocation2 + $0x121] sm:$0xff] %v273_v27  ;;  %v4771_v27 = vld [vmem:[#allocation7 + $0xd8] sm:$0xff] }
  0x61   : > { %v407_v37 = vld [vmem:[#allocation2 + $0xc0] sm:$0xff]  ;;  %350 = vst [vmem:[#allocation2 + $0x129] sm:$0xff] %v274_v28 }
  0x62   : > { %v408_v40 = vld [vmem:[#allocation2 + $0xc8] sm:$0xff]  ;;  %v439_v41 = vpack.c.bf16 %v407_v37, %v407_v37  ;;  %335 = vst [vmem:[#allocation2 + $0x79] sm:$0xff] %v5312_v29  ;;  %1471 = vmatpush.bf16.msrb.mxu2 %v4763_v26  ;;  %1061 = vmatpush.bf16.msrb.mxu1 %v4755_v33 }
  0x63   : > { %v440_v44 = vpack.c.bf16 %v408_v40, %v408_v40  ;;  %v391_v45 = vld [vmem:[#allocation2] sm:$0xff]  ;;  %336 = vst [vmem:[#allocation2 + $0x81] sm:$0xff] %v5315_v30  ;;  %1881 = vmatpush.bf16.msrb.mxu3 %v4771_v27  ;;  %2291 = vmatpush.bf16.msrb.mxu0 %v4779_v42 }
  0x64   : > { %v551_v47 = vunpack.c.l.b16 %v439_v41  ;;  %v423_v48 = vpack.c.bf16 %v391_v45, %v391_v45  ;;  %343 = vst [vmem:[#allocation2 + $0xd9] sm:$0xff] %v267_v34  ;;  %v4770_v41 = vld [vmem:[#allocation7 + $0xd0] sm:$0xff] }
  0x65   : > { %v552_v52 = vunpack.c.l.b16 %v440_v44  ;;  %344 = vst [vmem:[#allocation2 + $0xe1] sm:$0xff] %v268_v35 }
  0x66   : > { %v535_v54 = vunpack.c.l.b16 %v423_v48  ;;  %351 = vst [vmem:[#allocation2 + $0x139] sm:$0xff] %v275_v46  ;;  %v4754_v46 = vld [vmem:[#allocation7 + $0x50] sm:$0xff]  ;;  %v5359_v48 = vld [vmem:[%s5245_s7 + $0x68] sm:$0xff]  ;;  %1472 = vmatpush.bf16.msrb.mxu2 %v4762_v38  ;;  %v4752_v38 = vld [vmem:[#allocation7 + $0x40] sm:$0xff] }
  0x67   : > { %v575_v56 = vpack.c.b16 %v552_v52, %v551_v47  ;;  %v415_v57 = vld [vmem:[#allocation2 + $0x120] sm:$0xff]  ;;  %352 = vst [vmem:[#allocation2 + $0x141] sm:$0xff] %v276_v51  ;;  %v5356_v47 = vld [vmem:[%s5245_s7 + $0x60] sm:$0xff]  ;;  %1882 = vmatpush.bf16.msrb.mxu3 %v4770_v41  ;;  %1062 = vmatpush.bf16.msrb.mxu1 %v4754_v46 }
  0x68   : > { %v416_v59 = vld [vmem:[#allocation2 + $0x128] sm:$0xff]  ;;  %v447_v60 = vpack.c.bf16 %v415_v57, %v415_v57  ;;  %v567_v61 = vpack.c.b16 %v536_v50, %v535_v54  ;;  %327 = vst [vmem:[#allocation2 + $0x19] sm:$0xff] %v5325_v53  ;;  %v272_v50 = vld [vmem:[%s5245_s7 + $0xa8] sm:$0xff] }
  0x69   : > { %695 = vmatmul.bf16.vlgmr.msra.gmra.mxu2 %v575_v56  ;;  %v448_v63 = vpack.c.bf16 %v416_v59, %v416_v59  ;;  %v401_v0 = vld [vmem:[#allocation2 + $0x78] sm:$0xff]  ;;  %328 = vst [vmem:[#allocation2 + $0x21] sm:$0xff] %v5328_v55  ;;  %v279_v56 = vld [vmem:[%s5245_s7 + $0xe0] sm:$0xff] }
  0x6a   : > { %v559_v2 = vunpack.c.l.b16 %v447_v60  ;;  %655 = vmatmul.bf16.vlgmr.msra.gmra.mxu0 %v567_v61  ;;  %v402_v5 = vld [vmem:[#allocation2 + $0x80] sm:$0xff]  ;;  %v433_v6 = vpack.c.bf16 %v401_v0, %v401_v0  ;;  %337 = vst [vmem:[#allocation2 + $0x91] sm:$0xff] %v5331_v58  ;;  %v280_v59 = vld [vmem:[%s5245_s7 + $0xe8] sm:$0xff] }
  0x6b   : > { %v560_v8 = vunpack.c.l.b16 %v448_v63  ;;  %v434_v9 = vpack.c.bf16 %v402_v5, %v402_v5  ;;  %v409_v10 = vld [vmem:[#allocation2 + $0xd8] sm:$0xff]  ;;  %338 = vst [vmem:[#allocation2 + $0x99] sm:$0xff] %v5335_v62  ;;  %v5370_v63 = vld [vmem:[%s5245_s7 + $0x20] sm:$0xff] }
  0x6c   : > { %v545_v12 = vunpack.c.l.b16 %v433_v6  ;;  %v410_v13 = vld [vmem:[#allocation2 + $0xe0] sm:$0xff]  ;;  %345 = vst [vmem:[#allocation2 + $0xf1] sm:$0xff] %v269_v1  ;;  %v441_v17 = vpack.c.bf16 %v409_v10, %v409_v10  ;;  %v5373_v0 = vld [vmem:[%s5245_s7 + $0x28] sm:$0xff] }
  0x6d   : > { %v579_v15 = vpack.c.b16 %v560_v8, %v559_v2  ;;  %v546_v16 = vunpack.c.l.b16 %v434_v9  ;;  %v442_v18 = vpack.c.bf16 %v410_v13, %v410_v13  ;;  %346 = vst [vmem:[#allocation2 + $0xf9] sm:$0xff] %v270_v7  ;;  %v417_v21 = vld [vmem:[#allocation2 + $0x138] sm:$0xff] }
  0x6e   : > { %v418_v22 = vld [vmem:[#allocation2 + $0x140] sm:$0xff]  ;;  %353 = vst [vmem:[#allocation2 + $0x151] sm:$0xff] %v277_v11  ;;  %v553_v34 = vunpack.c.l.b16 %v441_v17  ;;  %v449_v43 = vpack.c.bf16 %v417_v21, %v417_v21  ;;  %v4769_v17 = vld [vmem:[#allocation7 + $0xc8] sm:$0xff] }
  0x6f   : > { %715 = vmatmul.bf16.vlgmr.msra.gmra.mxu3 %v579_v15  ;;  %v5350_v24 = vpack.c.b16 %v546_v16, %v545_v12  ;;  %v393_v25 = vld [vmem:[#allocation2 + $0x18] sm:$0xff]  ;;  %354 = vst [vmem:[#allocation2 + $0x159] sm:$0xff] %v278_v14  ;;  %v554_v35 = vunpack.c.l.b16 %v442_v18  ;;  %v450_v44 = vpack.c.bf16 %v418_v22, %v418_v22  ;;  %v4778_v21 = vld [vmem:[#allocation7 + $0x110] sm:$0xff] }
  0x70   : > { %v394_v28 = vld [vmem:[#allocation2 + $0x20] sm:$0xff]  ;;  %v425_v31 = vpack.c.bf16 %v393_v25, %v393_v25  ;;  %329 = vst [vmem:[#allocation2 + $0x31] sm:$0xff] %v5345_v20  ;;  %v561_v60 = vunpack.c.l.b16 %v449_v43  ;;  %v4761_v16 = vld [vmem:[#allocation7 + $0x88] sm:$0xff]  ;;  %1883 = vmatpush.bf16.msrb.mxu3 %v4769_v17  ;;  %2292 = vmatpush.bf16.msrb.mxu0 %v4778_v21  ;;  %v801_v17 = vld [vmem:[#allocation2 + $0x9] sm:$0xff] }
  0x71   : > { %680 = vmatmul.bf16.gmra.mxu1 %v5350_v24  ;;  %v426_v36 = vpack.c.bf16 %v394_v28, %v394_v28  ;;  %v403_v37 = vld [vmem:[#allocation2 + $0x90] sm:$0xff]  ;;  %330 = vst [vmem:[#allocation2 + $0x39] sm:$0xff] %v5348_v23  ;;  %v576_v51 = vpack.c.b16 %v554_v35, %v553_v34  ;;  %v562_v61 = vunpack.c.l.b16 %v450_v44  ;;  %v4753_v22 = vld [vmem:[#allocation7 + $0x48] sm:$0xff]  ;;  %1473 = vmatpush.bf16.msrb.mxu2 %v4761_v16  ;;  %v800_v16 = vld [vmem:[#allocation2 + $0x1] sm:$0xff] }
  0x72   : > { %v537_v39 = vunpack.c.l.b16 %v425_v31  ;;  %v404_v40 = vld [vmem:[#allocation2 + $0x98] sm:$0xff]  ;;  %339 = vst [vmem:[#allocation2 + $0xa9] sm:$0xff] %v5356_v47  ;;  %v435_v52 = vpack.c.bf16 %v403_v37, %v403_v37  ;;  %v4760_v28 = vld [vmem:[#allocation7 + $0x80] sm:$0xff]  ;;  %1063 = vmatpush.bf16.msrb.mxu1 %v4753_v22 }
  0x73   : > { %v538_v45 = vunpack.c.l.b16 %v426_v36  ;;  %v436_v54 = vpack.c.bf16 %v404_v40, %v404_v40  ;;  %340 = vst [vmem:[#allocation2 + $0xb1] sm:$0xff] %v5359_v48  ;;  %v411_v5 = vld [vmem:[#allocation2 + $0xf0] sm:$0xff]  ;;  %v580_v7 = vpack.c.b16 %v562_v61, %v561_v60  ;;  %v4777_v35 = vld [vmem:[#allocation7 + $0x108] sm:$0xff] }
  0x74   : > { %347 = vst [vmem:[#allocation2 + $0x109] sm:$0xff] %v271_v49  ;;  %v547_v1 = vunpack.c.l.b16 %v435_v52  ;;  %v412_v6 = vld [vmem:[#allocation2 + $0xf8] sm:$0xff]  ;;  %v443_v11 = vpack.c.bf16 %v411_v5, %v411_v5  ;;  %v4768_v34 = vld [vmem:[#allocation7 + $0xc0] sm:$0xff]  ;;  %2293 = vmatpush.bf16.msrb.mxu0 %v4777_v35  ;;  %v4799_v5 = vld [vmem:[#allocation7 + $0x1b8] sm:$0xff] }
  0x75   : > { %v5366_v57 = vpack.c.b16 %v538_v45, %v537_v39  ;;  %348 = vst [vmem:[#allocation2 + $0x111] sm:$0xff] %v272_v50  ;;  %v548_v2 = vunpack.c.l.b16 %v436_v54  ;;  %v444_v12 = vpack.c.bf16 %v412_v6, %v412_v6  ;;  %v419_v15 = vld [vmem:[#allocation2 + $0x150] sm:$0xff]  ;;  %1474 = vmatpush.bf16.msrb.mxu2 %v4760_v28  ;;  %1884 = vmatpush.bf16.msrb.mxu3 %v4768_v34  ;;  %v4807_v6 = vld [vmem:[#allocation7 + $0x1f8] sm:$0xff] }
  0x76   : > { %355 = vst [vmem:[#allocation2 + $0x169] sm:$0xff] %v279_v56  ;;  %v420_v18 = vld [vmem:[#allocation2 + $0x158] sm:$0xff]  ;;  %v555_v25 = vunpack.c.l.b16 %v443_v11  ;;  %v451_v36 = vpack.c.bf16 %v419_v15, %v419_v15  ;;  %1064 = vmatpush.bf16.msrb.mxu1 %v4752_v38  ;;  %v4776_v45 = vld [vmem:[#allocation7 + $0x100] sm:$0xff]  ;;  %v4815_v11 = vld [vmem:[#allocation7 + $0x238] sm:$0xff]  ;;  %v2065_v38 = vpack.c.bf16 %v5348_v23, %v5348_v23 }
  0x77   : > { %356 = vst [vmem:[#allocation2 + $0x171] sm:$0xff] %v280_v59  ;;  %v395_v8 = vld [vmem:[#allocation2 + $0x30] sm:$0xff]  ;;  %v5378_v10 = vpack.c.b16 %v548_v2, %v547_v1  ;;  %v556_v26 = vunpack.c.l.b16 %v444_v12  ;;  %v452_v37 = vpack.c.bf16 %v420_v18, %v420_v18  ;;  %v1210_v34 = vld [vmem:[#allocation2 + $0x2] sm:$0xff] }
  0x78   : > { %331 = vst [vmem:[#allocation2 + $0x49] sm:$0xff] %v5370_v63  ;;  %v396_v9 = vld [vmem:[#allocation2 + $0x38] sm:$0xff]  ;;  %v427_v13 = vpack.c.bf16 %v395_v8, %v395_v8  ;;  %v563_v43 = vunpack.c.l.b16 %v451_v36  ;;  %2294 = vmatpush.bf16.msrb.mxu0 %v4776_v45  ;;  %v1211_v35 = vld [vmem:[#allocation2 + $0xa] sm:$0xff]  ;;  %v2062_v45 = vpack.c.bf16 %v5325_v53, %v5325_v53  ;;  %v2067_v53 = vpack.c.bf16 %v5373_v0, %v5373_v0 }
  0x79   : > { %700 = vmatmul.bf16.gmra.mxu2 %v576_v51  ;;  %332 = vst [vmem:[#allocation2 + $0x51] sm:$0xff] %v5373_v0  ;;  %v428_v14 = vpack.c.bf16 %v396_v9, %v396_v9  ;;  %v405_v27 = vld [vmem:[#allocation2 + $0xa8] sm:$0xff]  ;;  %v577_v39 = vpack.c.b16 %v556_v26, %v555_v25  ;;  %v564_v44 = vunpack.c.l.b16 %v452_v37  ;;  %3518 = vmatpush.bf16.msra.mxu3 %v4807_v6  ;;  %v4798_v6 = vld [vmem:[#allocation7 + $0x1b0] sm:$0xff]  ;;  %v1214_v0 = vld [vmem:[#allocation2 + $0x32] sm:$0xff] }
  0x7a   : > { %660 = vmatmul.bf16.gmra.mxu0 %v5366_v57  ;;  %v539_v31 = vunpack.c.l.b16 %v427_v13  ;;  %v406_v33 = vld [vmem:[#allocation2 + $0xb0] sm:$0xff]  ;;  %v437_v40 = vpack.c.bf16 %v405_v27, %v405_v27  ;;  %3108 = vmatpush.bf16.msra.mxu2 %v4799_v5  ;;  %v832_v25 = vpack.c.bf16 %v800_v16, %v800_v16  ;;  %v833_v26 = vpack.c.bf16 %v801_v17, %v801_v17 }
  0x7b   : > { %v540_v32 = vunpack.c.l.b16 %v428_v14  ;;  %v438_v41 = vpack.c.bf16 %v406_v33, %v406_v33  ;;  %v413_v50 = vld [vmem:[#allocation2 + $0x108] sm:$0xff]  ;;  %v581_v52 = vpack.c.b16 %v564_v44, %v563_v43  ;;  %v2064_v37 = vpack.c.bf16 %v5345_v20, %v5345_v20 }
  0x7c   : > { %v549_v46 = vunpack.c.l.b16 %v437_v40  ;;  %v414_v51 = vld [vmem:[#allocation2 + $0x110] sm:$0xff]  ;;  %v445_v60 = vpack.c.bf16 %v413_v50, %v413_v50  ;;  %3928 = vmatpush.bf16.msra.mxu0 %v4815_v11  ;;  %v946_v33 = vunpack.c.l.b16 %v833_v26  ;;  %v2178_v44 = vunpack.c.l.b16 %v2065_v38  ;;  %v4814_v11 = vld [vmem:[#allocation7 + $0x230] sm:$0xff] }
  0x7d   : > { %v5381_v42 = vpack.c.b16 %v540_v32, %v539_v31  ;;  %v550_v49 = vunpack.c.l.b16 %v438_v41  ;;  %v446_v61 = vpack.c.bf16 %v414_v51, %v414_v51  ;;  %v421_v8 = vld [vmem:[#allocation2 + $0x168] sm:$0xff]  ;;  %v945_v32 = vunpack.c.l.b16 %v832_v25 }
  0x7e   : > { %v422_v9 = vld [vmem:[#allocation2 + $0x170] sm:$0xff]  ;;  %v557_v12 = vunpack.c.l.b16 %v445_v60  ;;  %v453_v18 = vpack.c.bf16 %v421_v8, %v421_v8  ;;  %v1243_v41 = vpack.c.bf16 %v1211_v35, %v1211_v35  ;;  %v2177_v43 = vunpack.c.l.b16 %v2064_v37  ;;  %v1213_v60 = vld [vmem:[#allocation2 + $0x22] sm:$0xff]  ;;  %3109 = vmatpush.bf16.msra.mxu2 %v4798_v6 }
  0x7f   : > { %720 = vmatmul.bf16.gmra.mxu3 %v580_v7  ;;  %v397_v54 = vld [vmem:[#allocation2 + $0x48] sm:$0xff]  ;;  %v5384_v59 = vpack.c.b16 %v550_v49, %v549_v46  ;;  %v558_v13 = vunpack.c.l.b16 %v446_v61  ;;  %v454_v21 = vpack.c.bf16 %v422_v9, %v422_v9  ;;  %v977_v40 = vpack.c.b16 %v946_v33, %v945_v32  ;;  %v4806_v8 = vld [vmem:[#allocation7 + $0x1f0] sm:$0xff]  ;;  %v4797_v32 = vld [vmem:[#allocation7 + $0x1a8] sm:$0xff] }
  0x80   : > { %v398_v56 = vld [vmem:[#allocation2 + $0x50] sm:$0xff]  ;;  %v429_v1 = vpack.c.bf16 %v397_v54, %v397_v54  ;;  %v4791_v7 = vld [vmem:[#allocation7 + $0x178] sm:$0xff]  ;;  %v565_v28 = vunpack.c.l.b16 %v453_v18  ;;  %v2063_v46 = vpack.c.bf16 %v5328_v55, %v5328_v55  ;;  %v2208_v49 = vpack.c.b16 %v2178_v44, %v2177_v43  ;;  %v4790_v9 = vld [vmem:[#allocation7 + $0x170] sm:$0xff]  ;;  %3519 = vmatpush.bf16.msra.mxu3 %v4806_v8  ;;  %3929 = vmatpush.bf16.msra.mxu0 %v4814_v11 }
  0x81   : > { %685 = vmatmul.bf16.gmra.mxu1 %v5378_v10  ;;  %v430_v2 = vpack.c.bf16 %v398_v56, %v398_v56  ;;  %v578_v22 = vpack.c.b16 %v558_v13, %v557_v12  ;;  %v566_v31 = vunpack.c.l.b16 %v454_v21  ;;  %v1356_v51 = vunpack.c.l.b16 %v1243_v41  ;;  %v1212_v56 = vld [vmem:[#allocation2 + $0x1a] sm:$0xff]  ;;  %v1216_v21 = vld [vmem:[#allocation2 + $0x4a] sm:$0xff] }
  0x82   : > { %v541_v14 = vunpack.c.l.b16 %v429_v1  ;;  %2697 = vmatpush.bf16.msra.mxu1 %v4791_v7  ;;  %v2175_v20 = vunpack.c.l.b16 %v2062_v45  ;;  %v2066_v61 = vpack.c.bf16 %v5370_v63, %v5370_v63  ;;  %v1244_v55 = vpack.c.bf16 %v1212_v56, %v1212_v56  ;;  %v808_v35 = vld [vmem:[#allocation2 + $0x61] sm:$0xff]  ;;  %3110 = vmatpush.bf16.msra.mxu2 %v4797_v32  ;;  %v809_v38 = vld [vmem:[#allocation2 + $0x69] sm:$0xff] }
  0x83   : > { %v542_v15 = vunpack.c.l.b16 %v430_v2  ;;  %v582_v36 = vpack.c.b16 %v566_v31, %v565_v28  ;;  %v1245_v1 = vpack.c.bf16 %v1213_v60, %v1213_v60  ;;  %v2180_v5 = vunpack.c.l.b16 %v2067_v53 }
  0x84   : > { %v2179_v2 = vunpack.c.l.b16 %v2066_v61  ;;  %v1357_v12 = vunpack.c.l.b16 %v1244_v55  ;;  %v1248_v25 = vpack.c.bf16 %v1216_v21, %v1216_v21  ;;  %v2068_v28 = vpack.c.bf16 %v5264_v3, %v5264_v3 }
  0x85   : > { %v5387_v27 = vpack.c.b16 %v542_v15, %v541_v14  ;;  %v1358_v13 = vunpack.c.l.b16 %v1245_v1  ;;  %v1215_v14 = vld [vmem:[#allocation2 + $0x3a] sm:$0xff]  ;;  %v1246_v15 = vpack.c.bf16 %v1214_v0, %v1214_v0  ;;  %v2069_v31 = vpack.c.bf16 %v5268_v4, %v5268_v4 }
  0x86   : > { %v2209_v7 = vpack.c.b16 %v2180_v5, %v2179_v2  ;;  %2698 = vmatpush.bf16.msra.mxu1 %v4790_v9  ;;  %v1247_v16 = vpack.c.bf16 %v1215_v14, %v1215_v14  ;;  %v1361_v33 = vunpack.c.l.b16 %v1248_v25  ;;  %v840_v41 = vpack.c.bf16 %v808_v35, %v808_v35  ;;  %v1220_v5 = vld [vmem:[#allocation2 + $0x7a] sm:$0xff]  ;;  %v1222_v25 = vld [vmem:[#allocation2 + $0x92] sm:$0xff] }
  0x87   : > { %v1388_v63 = vpack.c.b16 %v1358_v13, %v1357_v12  ;;  %v2182_v37 = vunpack.c.l.b16 %v2069_v31  ;;  %v841_v4 = vpack.c.bf16 %v809_v38, %v809_v38  ;;  %v2072_v8 = vpack.c.bf16 %v5331_v58, %v5331_v58  ;;  %v4796_v12 = vld [vmem:[#allocation7 + $0x1a0] sm:$0xff] }
  0x88   : > { %v1360_v17 = vunpack.c.l.b16 %v1247_v16  ;;  %v2073_v9 = vpack.c.bf16 %v5335_v62, %v5335_v62  ;;  %v4804_v13 = vld [vmem:[#allocation7 + $0x1e0] sm:$0xff]  ;;  %3111 = vmatpush.bf16.msra.mxu2 %v4796_v12  ;;  %v1254_v31 = vpack.c.bf16 %v1222_v25, %v1222_v25  ;;  %v4787_v12 = vld [vmem:[#allocation7 + $0x158] sm:$0xff] }
  0x89   : > { %705 = vmatmul.bf16.gmra.mxu2 %v577_v39  ;;  %v1242_v39 = vpack.c.bf16 %v1210_v34, %v1210_v34  ;;  %v954_v44 = vunpack.c.l.b16 %v841_v4  ;;  %v4812_v58 = vld [vmem:[#allocation7 + $0x220] sm:$0xff] }
  0x8a   : > { %665 = vmatmul.bf16.gmra.mxu0 %v5381_v42  ;;  %v2186_v16 = vunpack.c.l.b16 %v2073_v9  ;;  %v1227_v25 = vld [vmem:[#allocation2 + $0xca] sm:$0xff] }
  0x8b   : > { %v1355_v50 = vunpack.c.l.b16 %v1242_v39  ;;  %v4789_v39 = vld [vmem:[#allocation7 + $0x168] sm:$0xff] }
  0x8c   : > { %2699 = vmatpush.bf16.msra.mxu1 %v4789_v39 }
  0x8d   : > { %v1387_v54 = vpack.c.b16 %v1356_v51, %v1355_v50 }
  0x8f   : > { %725 = vmatmul.bf16.gmra.mxu3 %v581_v52  ;;  %v2176_v52 = vunpack.c.l.b16 %v2063_v46  ;;  %v1218_v46 = vld [vmem:[#allocation2 + $0x62] sm:$0xff] }
  0x90   : > { %v1250_v51 = vpack.c.bf16 %v1218_v46, %v1218_v46  ;;  %v2045_v46 = vld [vmem:[#allocation2 + $0xc9] sm:$0xff] }
  0x91   : > { %690 = vmatmul.bf16.gmra.mxu1 %v5384_v59  ;;  %v2207_v23 = vpack.c.b16 %v2176_v52, %v2175_v20  ;;  %v2070_v52 = vpack.c.bf16 %v5312_v29, %v5312_v29  ;;  %v1221_v29 = vld [vmem:[#allocation2 + $0x82] sm:$0xff] }
  0x93   : > { %v2183_v60 = vunpack.c.l.b16 %v2070_v52 }
  0x99   : > { %710 = vmatmul.bf16.gmra.mxu2 %v578_v22  ;;  %v1217_v22 = vld [vmem:[#allocation2 + $0x52] sm:$0xff] }
  0x9a   : > { %670 = vmatmul.bf16.gmra.mxu0 %v5387_v27  ;;  %v1249_v26 = vpack.c.bf16 %v1217_v22, %v1217_v22 }
  0x9c   : > { %v1362_v34 = vunpack.c.l.b16 %v1249_v26  ;;  %v1223_v26 = vld [vmem:[#allocation2 + $0x9a] sm:$0xff] }
  0x9d   : > { %v1255_v32 = vpack.c.bf16 %v1223_v26, %v1223_v26 }
  0x9e   : > { %v1390_v3 = vpack.c.b16 %v1362_v34, %v1361_v33  ;;  %v2074_v33 = vpack.c.bf16 %v5356_v47, %v5356_v47  ;;  %v2075_v34 = vpack.c.bf16 %v5359_v48, %v5359_v48 }
  0x9f   : > { %730 = vmatmul.bf16.gmra.mxu3 %v582_v36  ;;  %v2181_v36 = vunpack.c.l.b16 %v2068_v28 }
  0xa0   : > { %v2187_v39 = vunpack.c.l.b16 %v2074_v33 }
  0xa1   : > { %1065 = vmatmul.bf16.vlgmr.msrb.gmra.mxu1 %v977_v40  ;;  %v4813_v40 = vld [vmem:[#allocation7 + $0x228] sm:$0xff]  ;;  %v2210_v43 = vpack.c.b16 %v2182_v37, %v2181_v36  ;;  %v1367_v36 = vunpack.c.l.b16 %v1254_v31  ;;  %v1368_v37 = vunpack.c.l.b16 %v1255_v32  ;;  %v2047_v32 = vld [vmem:[#allocation2 + $0xe1] sm:$0xff] }
  0xa2   : > { %3930 = vmatpush.bf16.msra.mxu0 %v4813_v40  ;;  %v2188_v40 = vunpack.c.l.b16 %v2075_v34  ;;  %v2046_v31 = vld [vmem:[#allocation2 + $0xd9] sm:$0xff] }
  0xa4   : > { %v2213_v4 = vpack.c.b16 %v2188_v40, %v2187_v39  ;;  %v2078_v39 = vpack.c.bf16 %v2046_v31, %v2046_v31  ;;  %v2079_v40 = vpack.c.bf16 %v2047_v32, %v2047_v32 }
  0xa6   : > { %3931 = vmatpush.bf16.msra.mxu0 %v4812_v58 }
  0xa9   : > { %1475 = vmatmul.bf16.vlgmr.msrb.gmra.mxu2 %v1387_v54  ;;  %v2071_v54 = vpack.c.bf16 %v5315_v30, %v5315_v30  ;;  %v1252_v30 = vpack.c.bf16 %v1220_v5, %v1220_v5 }
  0xaa   : > { %2295 = vmatmul.bf16.vlgmr.msrb.gmra.mxu0 %v2207_v23 }
  0xab   : > { %v2184_v61 = vunpack.c.l.b16 %v2071_v54  ;;  %v2077_v54 = vpack.c.bf16 %v2045_v46, %v2045_v46 }
  0xad   : > { %v2211_v1 = vpack.c.b16 %v2184_v61, %v2183_v60  ;;  %v4803_v60 = vld [vmem:[#allocation7 + $0x1d8] sm:$0xff]  ;;  %v1634_v61 = vld [vmem:[#allocation2 + $0xc0] sm:$0xff] }
  0xaf   : > { %1885 = vmatmul.bf16.vlgmr.msrb.gmra.mxu3 %v5366_v57  ;;  %v1359_v57 = vunpack.c.l.b16 %v1246_v15  ;;  %v2185_v15 = vunpack.c.l.b16 %v2072_v8  ;;  %v1666_v8 = vpack.c.bf16 %v1634_v61, %v1634_v61 }
  0xb1   : > { %1070 = vmatmul.bf16.gmra.mxu1 %v2207_v23  ;;  %v1389_v18 = vpack.c.b16 %v1360_v17, %v1359_v57  ;;  %v1363_v23 = vunpack.c.l.b16 %v1250_v51  ;;  %v4788_v57 = vld [vmem:[#allocation7 + $0x160] sm:$0xff] }
  0xb2   : > { %2700 = vmatpush.bf16.msra.mxu1 %v4788_v57  ;;  %v1779_v57 = vunpack.c.l.b16 %v1666_v8 }
  0xb6   : > { %2701 = vmatpush.bf16.msra.mxu1 %v4787_v12  ;;  %v1229_v12 = vld [vmem:[#allocation2 + $0xe2] sm:$0xff] }
  0xb9   : > { %1480 = vmatmul.bf16.gmra.mxu2 %v1388_v63  ;;  %v1365_v63 = vunpack.c.l.b16 %v1252_v30 }
  0xba   : > { %2300 = vmatmul.bf16.gmra.mxu0 %v2208_v49 }
  0xbf   : > { %1890 = vmatmul.bf16.gmra.mxu3 %v5381_v42  ;;  %v4805_v42 = vld [vmem:[#allocation7 + $0x1e8] sm:$0xff] }
  0xc0   : > { %3520 = vmatpush.bf16.msra.mxu3 %v4805_v42 }
  0xc1   : > { %1075 = vmatmul.bf16.gmra.mxu1 %v2208_v49  ;;  %v1219_v49 = vld [vmem:[#allocation2 + $0x6a] sm:$0xff] }
  0xc2   : > { %v1251_v20 = vpack.c.bf16 %v1219_v49, %v1219_v49 }
  0xc4   : > { %v1364_v56 = vunpack.c.l.b16 %v1251_v20  ;;  %3521 = vmatpush.bf16.msra.mxu3 %v4804_v13  ;;  %v4811_v13 = vld [vmem:[#allocation7 + $0x218] sm:$0xff] }
  0xc5   : > { %3932 = vmatpush.bf16.msra.mxu0 %v4811_v13 }
  0xc6   : > { %v1391_v55 = vpack.c.b16 %v1364_v56, %v1363_v23  ;;  %v4795_v56 = vld [vmem:[#allocation7 + $0x198] sm:$0xff] }
  0xc7   : > { %3112 = vmatpush.bf16.msra.mxu2 %v4795_v56 }
  0xc8   : > { %3522 = vmatpush.bf16.msra.mxu3 %v4803_v60 }
  0xc9   : > { %1485 = vmatmul.bf16.gmra.mxu2 %v1389_v18 }
  0xca   : > { %2305 = vmatmul.bf16.gmra.mxu0 %v2209_v7 }
  0xce   : > { %v5409_v45 = vpop.f32.mrf.mxu1 }
  0xcf   : > { %1895 = vmatmul.bf16.gmra.mxu3 %v5387_v27  ;;  %v953_v27 = vunpack.c.l.b16 %v840_v41  ;;  %v1393_v41 = vpack.c.b16 %v1368_v37, %v1367_v36  ;;  %v1259_v36 = vpack.c.bf16 %v1227_v25, %v1227_v25  ;;  %v1261_v25 = vpack.c.bf16 %v1229_v12, %v1229_v12 }
  0xd1   : > { %1080 = vmatmul.bf16.gmra.mxu1 %v2209_v7  ;;  %v981_v50 = vpack.c.b16 %v954_v44, %v953_v27  ;;  %v1253_v7 = vpack.c.bf16 %v1221_v29, %v1221_v29  ;;  %v1225_v27 = vld [vmem:[#allocation2 + $0xb2] sm:$0xff]  ;;  %v2044_v44 = vld [vmem:[#allocation2 + $0xc1] sm:$0xff]  ;;  %v1372_v46 = vunpack.c.l.b16 %v1259_v36 }
  0xd2   : > { %v1257_v51 = vpack.c.bf16 %v1225_v27, %v1225_v27  ;;  %v2076_v52 = vpack.c.bf16 %v2044_v44, %v2044_v44  ;;  %v1637_v27 = vld [vmem:[#allocation2 + $0xe0] sm:$0xff] }
  0xd3   : > { %v1366_v0 = vunpack.c.l.b16 %v1253_v7  ;;  %v2190_v7 = vunpack.c.l.b16 %v2077_v54  ;;  %v1669_v56 = vpack.c.bf16 %v1637_v27, %v1637_v27  ;;  %v4794_v36 = vld [vmem:[#allocation7 + $0x190] sm:$0xff]  ;;  %v1374_v27 = vunpack.c.l.b16 %v1261_v25 }
  0xd4   : > { %v1370_v5 = vunpack.c.l.b16 %v1257_v51  ;;  %v2189_v30 = vunpack.c.l.b16 %v2076_v52  ;;  %v2191_v51 = vunpack.c.l.b16 %v2078_v39  ;;  %v2192_v52 = vunpack.c.l.b16 %v2079_v40  ;;  %v1638_v39 = vld [vmem:[#allocation2 + $0xf0] sm:$0xff]  ;;  %v1639_v40 = vld [vmem:[#allocation2 + $0xf8] sm:$0xff]  ;;  %3113 = vmatpush.bf16.msra.mxu2 %v4794_v36 }
  0xd5   : > { %v1392_v62 = vpack.c.b16 %v1366_v0, %v1365_v63 }
  0xd6   : > { %v5416_v53 = vpop.f32.mrf.mxu1  ;;  %v2214_v0 = vpack.c.b16 %v2190_v7, %v2189_v30  ;;  %v1782_v7 = vunpack.c.l.b16 %v1669_v56  ;;  %v4786_v56 = vld [vmem:[#allocation7 + $0x150] sm:$0xff] }
  0xd7   : > { %2702 = vmatpush.bf16.msra.mxu1 %v4786_v56 }
  0xd9   : > { %1490 = vmatmul.bf16.gmra.mxu2 %v1390_v3 }
  0xda   : > { %2310 = vmatmul.bf16.gmra.mxu0 %v2210_v43 }
  0xdf   : > { %1900 = vmatmul.bf16.gmra.mxu3 %v5296_v19 }
  0xe1   : > { %1085 = vmatmul.bf16.gmra.mxu1 %v981_v50 }
  0xe7   : > { %v5418_v2 = vpop.f32.mrf.mxu0 }
  0xe9   : > { %1495 = vmatmul.bf16.gmra.mxu2 %v1391_v55  ;;  %v1635_v55 = vld [vmem:[#allocation2 + $0xc8] sm:$0xff] }
  0xea   : > { %2315 = vmatmul.bf16.gmra.mxu0 %v2211_v1  ;;  %v1667_v9 = vpack.c.bf16 %v1635_v55, %v1635_v55  ;;  %v2215_v55 = vpack.c.b16 %v2192_v52, %v2191_v51  ;;  %v1670_v52 = vpack.c.bf16 %v1638_v39, %v1638_v39 }
  0xec   : > { %v5420_v6 = vpop.f32.mrf.mxu2  ;;  %v1780_v58 = vunpack.c.l.b16 %v1667_v9  ;;  %v1228_v9 = vld [vmem:[#allocation2 + $0xda] sm:$0xff] }
  0xee   : > { %v5422_v19 = vpop.f32.mrf.mxu1  ;;  %v1804_v26 = vpack.c.b16 %v1780_v58, %v1779_v57 }
  0xef   : > { %1905 = vmatmul.bf16.gmra.mxu3 %v5350_v24  ;;  %v5429_v11 = vpop.f32.mrf.mxu0  ;;  %v2212_v24 = vpack.c.b16 %v2186_v16, %v2185_v15 }
  0xf1   : > { %1090 = vmatmul.bf16.gmra.mxu1 %v2211_v1 }
  0xf2   : > { %v5431_v14 = vpop.f32.mrf.mxu3 }
  0xf4   : > { %v5433_v17 = vpop.f32.mrf.mxu2 }
  0xf6   : > { %v5435_v18 = vpop.f32.mrf.mxu1 }
  0xf7   : > { %v5437_v21 = vpop.f32.mrf.mxu0 }
  0xf9   : > { %1500 = vmatmul.bf16.gmra.mxu2 %v1392_v62 }
  0xfa   : > { %v5439_v22 = vpop.f32.mrf.mxu3  ;;  %2320 = vmatmul.bf16.gmra.mxu0 %v2212_v24 }
  0xfc   : > { %v5441_v28 = vpop.f32.mrf.mxu2 }
  0xfe   : > { %v5443_v42 = vpop.f32.mrf.mxu1 }
  0xff   : > { %1910 = vmatmul.bf16.gmra.mxu3 %v5378_v10  ;;  %v5450_v35 = vpop.f32.mrf.mxu0  ;;  %v1224_v10 = vld [vmem:[#allocation2 + $0xaa] sm:$0xff] }
 0x100   : > { %v1256_v50 = vpack.c.bf16 %v1224_v10, %v1224_v10  ;;  %v1636_v10 = vld [vmem:[#allocation2 + $0xd8] sm:$0xff] }
 0x101   : > { %1095 = vmatmul.bf16.gmra.mxu1 %v2212_v24  ;;  %v1226_v24 = vld [vmem:[#allocation2 + $0xc2] sm:$0xff]  ;;  %v1668_v54 = vpack.c.bf16 %v1636_v10, %v1636_v10 }
 0x102   : > { %v5452_v38 = vpop.f32.mrf.mxu3  ;;  %v1369_v1 = vunpack.c.l.b16 %v1256_v50  ;;  %v1258_v34 = vpack.c.bf16 %v1226_v24, %v1226_v24  ;;  %v1260_v24 = vpack.c.bf16 %v1228_v9, %v1228_v9 }
 0x103   : > { %v1781_v30 = vunpack.c.l.b16 %v1668_v54  ;;  %v1671_v54 = vpack.c.bf16 %v1639_v40, %v1639_v40 }
 0x104   : > { %v5454_v3 = vpop.f32.mrf.mxu2  ;;  %v1394_v63 = vpack.c.b16 %v1370_v5, %v1369_v1  ;;  %v1371_v44 = vunpack.c.l.b16 %v1258_v34  ;;  %v1373_v10 = vunpack.c.l.b16 %v1260_v24  ;;  %v1231_v24 = vld [vmem:[#allocation2 + $0xfa] sm:$0xff] }
 0x105   : > { %v1805_v13 = vpack.c.b16 %v1782_v7, %v1781_v30 }
 0x106   : > { %v5456_v43 = vpop.f32.mrf.mxu1  ;;  %v1395_v61 = vpack.c.b16 %v1372_v46, %v1371_v44 }
 0x107   : > { %v5458_v47 = vpop.f32.mrf.mxu0 }
 0x109   : > { %1505 = vmatmul.bf16.gmra.mxu2 %v1393_v41 }
 0x10a   : > { %v5460_v48 = vpop.f32.mrf.mxu3  ;;  %2325 = vmatmul.bf16.gmra.mxu0 %v2213_v4 }
 0x10c   : > { %v5462_v49 = vpop.f32.mrf.mxu2 }
 0x10e   : > { %v5464_v20 = vpop.f32.mrf.mxu1 }
 0x10f   : > { %1915 = vmatmul.bf16.gmra.mxu3 %v5384_v59  ;;  %v5467_v23 = vpop.f32.mrf.mxu0 }
 0x111   : > { %1100 = vmatmul.bf16.gmra.mxu1 %v2213_v4 }
 0x112   : > { %v5469_v29 = vpop.f32.mrf.mxu3 }
 0x114   : > { %v5471_v59 = vpop.f32.mrf.mxu2 }
 0x116   : > { %v5473_v15 = vpop.f32.mrf.mxu1 }
 0x117   : > { %v5475_v16 = vpop.f32.mrf.mxu0 }
 0x119   : > { %1510 = vmatmul.bf16.gmra.mxu2 %v1394_v63  ;;  %v2048_v63 = vld [vmem:[#allocation2 + $0xf1] sm:$0xff] }
 0x11a   : > { %v5477_v62 = vpop.f32.mrf.mxu3  ;;  %2330 = vmatmul.bf16.gmra.mxu0 %v2214_v0  ;;  %v2080_v31 = vpack.c.bf16 %v2048_v63, %v2048_v63  ;;  %v1784_v63 = vunpack.c.l.b16 %v1671_v54 }
 0x11c   : > { %v5479_v33 = vpop.f32.mrf.mxu2  ;;  %v2193_v46 = vunpack.c.l.b16 %v2080_v31  ;;  %v2051_v31 = vld [vmem:[#allocation2 + $0x111] sm:$0xff] }
 0x11e   : > { %v1066_v37 = vpop.f32.mrf.mxu1 }
 0x11f   : > { %1920 = vmatmul.bf16.gmra.mxu3 %v1804_v26  ;;  %v5481_v41 = vpop.f32.mrf.mxu0  ;;  %v1146_v4 = vadd.f32 %v1066_v37, %v5418_v2  ;;  %v4802_v37 = vld [vmem:[#allocation7 + $0x1d0] sm:$0xff] }
 0x120   : > { %3523 = vmatpush.bf16.msra.mxu3 %v4802_v37  ;;  %v1263_v37 = vpack.c.bf16 %v1231_v24, %v1231_v24 }
 0x121   : > { %1105 = vmatmul.bf16.gmra.mxu1 %v2214_v0  ;;  %v2049_v0 = vld [vmem:[#allocation2 + $0xf9] sm:$0xff] }
 0x122   : > { %v5484_v50 = vpop.f32.mrf.mxu3  ;;  %v2081_v32 = vpack.c.bf16 %v2049_v0, %v2049_v0 }
 0x124   : > { %v5486_v60 = vpop.f32.mrf.mxu2 }
 0x126   : > { %v1068_v1 = vpop.f32.mrf.mxu1 }
 0x127   : > { %v2296_v5 = vpop.f32.mrf.mxu0  ;;  %v1147_v2 = vadd.f32 %v1068_v1, %v5429_v11 }
 0x129   : > { %1515 = vmatmul.bf16.gmra.mxu2 %v1395_v61  ;;  %v4810_v61 = vld [vmem:[#allocation7 + $0x210] sm:$0xff] }
 0x12a   : > { %v5489_v8 = vpop.f32.mrf.mxu3  ;;  %2335 = vmatmul.bf16.gmra.mxu0 %v2215_v55 }
 0x12b   : > { %3933 = vmatpush.bf16.msra.mxu0 %v4810_v61 }
 0x12c   : > { %v1476_v57 = vpop.f32.mrf.mxu2 }
 0x12d   : > { %v1556_v58 = vadd.f32 %v1476_v57, %v1146_v4  ;;  %v2194_v4 = vunpack.c.l.b16 %v2081_v32 }
 0x12e   : > { %v1071_v26 = vpop.f32.mrf.mxu1 }
 0x12f   : > { %1925 = vmatmul.bf16.gmra.mxu3 %v1805_v13  ;;  %v2298_v34 = vpop.f32.mrf.mxu0  ;;  %v1148_v11 = vadd.f32 %v1071_v26, %v5437_v21  ;;  %v1396_v21 = vpack.c.b16 %v1374_v27, %v1373_v10  ;;  %v1783_v13 = vunpack.c.l.b16 %v1670_v52  ;;  %v2083_v27 = vpack.c.bf16 %v2051_v31, %v2051_v31 }
 0x130   : > { %v1376_v52 = vunpack.c.l.b16 %v1263_v37 }
 0x131   : > { %1110 = vmatmul.bf16.gmra.mxu1 %v2215_v55  ;;  %v2216_v55 = vpack.c.b16 %v2194_v4, %v2193_v46  ;;  %v1806_v26 = vpack.c.b16 %v1784_v63, %v1783_v13  ;;  %v1640_v46 = vld [vmem:[#allocation2 + $0x108] sm:$0xff]  ;;  %v1641_v4 = vld [vmem:[#allocation2 + $0x110] sm:$0xff]  ;;  %v2196_v61 = vunpack.c.l.b16 %v2083_v27 }
 0x132   : > { %v1886_v44 = vpop.f32.mrf.mxu3 }
 0x133   : > { %v1966_v51 = vadd.f32 %v1886_v44, %v1556_v58  ;;  %v1230_v58 = vld [vmem:[#allocation2 + $0xf2] sm:$0xff] }
 0x134   : > { %v1478_v1 = vpop.f32.mrf.mxu2 }
 0x135   : > { %v1557_v30 = vadd.f32 %v1478_v1, %v1147_v2  ;;  %v5492_v7 = vadd.f32 %v2296_v5, %v1966_v51  ;;  %v2050_v2 = vld [vmem:[#allocation2 + $0x109] sm:$0xff]  ;;  %v1262_v5 = vpack.c.bf16 %v1230_v58, %v1230_v58  ;;  %v1672_v1 = vpack.c.bf16 %v1640_v46, %v1640_v46 }
 0x136   : > { %v1073_v9 = vpop.f32.mrf.mxu1  ;;  %v2082_v10 = vpack.c.bf16 %v2050_v2, %v2050_v2  ;;  %v1233_v2 = vld [vmem:[#allocation2 + $0x112] sm:$0xff] }
 0x137   : > { %v2301_v12 = vpop.f32.mrf.mxu0  ;;  %v1149_v0 = vadd.f32 %v1073_v9, %v5450_v35  ;;  %v1375_v51 = vunpack.c.l.b16 %v1262_v5  ;;  %v2053_v5 = vld [vmem:[#allocation2 + $0x129] sm:$0xff] }
 0x138   : > { %v2195_v56 = vunpack.c.l.b16 %v2082_v10 }
 0x139   : > { %1520 = vmatmul.bf16.gmra.mxu2 %v1396_v21  ;;  %v1397_v9 = vpack.c.b16 %v1376_v52, %v1375_v51  ;;  %v4793_v52 = vld [vmem:[#allocation7 + $0x188] sm:$0xff] }
 0x13a   : > { %v1888_v57 = vpop.f32.mrf.mxu3  ;;  %2340 = vmatmul.bf16.gmra.mxu0 %v2216_v55  ;;  %v2217_v63 = vpack.c.b16 %v2196_v61, %v2195_v56  ;;  %v1642_v56 = vld [vmem:[#allocation2 + $0x120] sm:$0xff]  ;;  %v1643_v61 = vld [vmem:[#allocation2 + $0x128] sm:$0xff]  ;;  %3114 = vmatpush.bf16.msra.mxu2 %v4793_v52 }
 0x13b   : > { %v1967_v25 = vadd.f32 %v1888_v57, %v1557_v30  ;;  %v1673_v30 = vpack.c.bf16 %v1641_v4, %v1641_v4  ;;  %v2085_v4 = vpack.c.bf16 %v2053_v5, %v2053_v5 }
 0x13c   : > { %v1481_v32 = vpop.f32.mrf.mxu2 }
 0x13d   : > { %v1558_v36 = vadd.f32 %v1481_v32, %v1148_v11  ;;  %v5495_v39 = vadd.f32 %v2298_v34, %v1967_v25  ;;  %v1786_v24 = vunpack.c.l.b16 %v1673_v30 }
 0x13e   : > { %v1076_v40 = vpop.f32.mrf.mxu1 }
 0x13f   : > { %1930 = vmatmul.bf16.gmra.mxu3 %v1806_v26  ;;  %v2303_v35 = vpop.f32.mrf.mxu0  ;;  %v1150_v44 = vadd.f32 %v1076_v40, %v5458_v47  ;;  %v1785_v47 = vunpack.c.l.b16 %v1672_v1  ;;  %v1232_v26 = vld [vmem:[#allocation2 + $0x10a] sm:$0xff]  ;;  %v1265_v40 = vpack.c.bf16 %v1233_v2, %v1233_v2 }
 0x141   : > { %1115 = vmatmul.bf16.gmra.mxu1 %v2216_v55  ;;  %v1807_v32 = vpack.c.b16 %v1786_v24, %v1785_v47  ;;  %v1378_v1 = vunpack.c.l.b16 %v1265_v40  ;;  %v4809_v47 = vld [vmem:[#allocation7 + $0x208] sm:$0xff] }
 0x142   : > { %v1891_v54 = vpop.f32.mrf.mxu3  ;;  %3934 = vmatpush.bf16.msra.mxu0 %v4809_v47 }
 0x143   : > { %v1968_v11 = vadd.f32 %v1891_v54, %v1558_v36  ;;  %v2052_v36 = vld [vmem:[#allocation2 + $0x121] sm:$0xff]  ;;  %v4801_v54 = vld [vmem:[#allocation7 + $0x1c8] sm:$0xff] }
 0x144   : > { %v1483_v34 = vpop.f32.mrf.mxu2  ;;  %v2084_v46 = vpack.c.bf16 %v2052_v36, %v2052_v36  ;;  %3524 = vmatpush.bf16.msra.mxu3 %v4801_v54 }
 0x145   : > { %v1559_v21 = vadd.f32 %v1483_v34, %v1149_v0  ;;  %v5498_v13 = vadd.f32 %v2301_v12, %v1968_v11  ;;  %v1264_v12 = vpack.c.bf16 %v1232_v26, %v1232_v26  ;;  %v2198_v34 = vunpack.c.l.b16 %v2085_v4 }
 0x146   : > { %v1078_v57 = vpop.f32.mrf.mxu1  ;;  %v2197_v30 = vunpack.c.l.b16 %v2084_v46  ;;  %v2055_v46 = vld [vmem:[#allocation2 + $0x141] sm:$0xff] }
 0x147   : > { %v2306_v58 = vpop.f32.mrf.mxu0  ;;  %v1151_v55 = vadd.f32 %v1078_v57, %v5467_v23  ;;  %v1377_v11 = vunpack.c.l.b16 %v1264_v12  ;;  %v4785_v57 = vld [vmem:[#allocation7 + $0x148] sm:$0xff]  ;;  %v1235_v12 = vld [vmem:[#allocation2 + $0x12a] sm:$0xff] }
 0x148   : > { %2703 = vmatpush.bf16.msra.mxu1 %v4785_v57  ;;  %v1267_v54 = vpack.c.bf16 %v1235_v12, %v1235_v12 }
 0x149   : > { %1525 = vmatmul.bf16.gmra.mxu2 %v1397_v9  ;;  %v1675_v9 = vpack.c.bf16 %v1643_v61, %v1643_v61 }
 0x14a   : > { %v1893_v25 = vpop.f32.mrf.mxu3  ;;  %2345 = vmatmul.bf16.gmra.mxu0 %v2217_v63 }
 0x14b   : > { %v1969_v31 = vadd.f32 %v1893_v25, %v1559_v21  ;;  %v1674_v21 = vpack.c.bf16 %v1642_v56, %v1642_v56  ;;  %v1788_v36 = vunpack.c.l.b16 %v1675_v9 }
 0x14c   : > { %v1486_v0 = vpop.f32.mrf.mxu2 }
 0x14d   : > { %v1560_v37 = vadd.f32 %v1486_v0, %v1150_v44  ;;  %v5501_v10 = vadd.f32 %v2303_v35, %v1969_v31 }
 0x14e   : > { %v1081_v27 = vpop.f32.mrf.mxu1 }
 0x14f   : > { %1935 = vmatmul.bf16.gmra.mxu3 %v1807_v32  ;;  %v2308_v23 = vpop.f32.mrf.mxu0  ;;  %v1152_v51 = vadd.f32 %v1081_v27, %v5475_v16  ;;  %v1398_v16 = vpack.c.b16 %v1378_v1, %v1377_v11  ;;  %v1787_v32 = vunpack.c.l.b16 %v1674_v21  ;;  %v2087_v1 = vpack.c.bf16 %v2055_v46, %v2055_v46 }
 0x151   : > { %1120 = vmatmul.bf16.gmra.mxu1 %v2217_v63  ;;  %v2218_v63 = vpack.c.b16 %v2198_v34, %v2197_v30  ;;  %v1808_v27 = vpack.c.b16 %v1788_v36, %v1787_v32  ;;  %v1645_v30 = vld [vmem:[#allocation2 + $0x140] sm:$0xff]  ;;  %v2200_v57 = vunpack.c.l.b16 %v2087_v1 }
 0x152   : > { %v1896_v44 = vpop.f32.mrf.mxu3 }
 0x153   : > { %v1970_v35 = vadd.f32 %v1896_v44, %v1560_v37  ;;  %v1234_v37 = vld [vmem:[#allocation2 + $0x122] sm:$0xff]  ;;  %v1644_v44 = vld [vmem:[#allocation2 + $0x138] sm:$0xff] }
 0x154   : > { %v1488_v24 = vpop.f32.mrf.mxu2 }
 0x155   : > { %v1561_v25 = vadd.f32 %v1488_v24, %v1151_v55  ;;  %v5504_v26 = vadd.f32 %v2306_v58, %v1970_v35  ;;  %v2054_v55 = vld [vmem:[#allocation2 + $0x139] sm:$0xff]  ;;  %v1266_v58 = vpack.c.bf16 %v1234_v37, %v1234_v37  ;;  %v1380_v35 = vunpack.c.l.b16 %v1267_v54 }
 0x156   : > { %v1083_v2 = vpop.f32.mrf.mxu1  ;;  %v2086_v11 = vpack.c.bf16 %v2054_v55, %v2054_v55  ;;  %v1676_v24 = vpack.c.bf16 %v1644_v44, %v1644_v44 }
 0x157   : > { %v2311_v31 = vpop.f32.mrf.mxu0  ;;  %v1153_v5 = vadd.f32 %v1083_v2, %v5481_v41  ;;  %v1379_v34 = vunpack.c.l.b16 %v1266_v58 }
 0x158   : > { %v2199_v9 = vunpack.c.l.b16 %v2086_v11  ;;  %v1789_v37 = vunpack.c.l.b16 %v1676_v24 }
 0x159   : > { %1530 = vmatmul.bf16.gmra.mxu2 %v1398_v16 }
 0x15a   : > { %v1898_v0 = vpop.f32.mrf.mxu3  ;;  %2350 = vmatmul.bf16.gmra.mxu0 %v2218_v63  ;;  %v2219_v32 = vpack.c.b16 %v2200_v57, %v2199_v9  ;;  %v4792_v9 = vld [vmem:[#allocation7 + $0x180] sm:$0xff] }
 0x15b   : > { %v1971_v40 = vadd.f32 %v1898_v0, %v1561_v25  ;;  %v4800_v57 = vld [vmem:[#allocation7 + $0x1c0] sm:$0xff]  ;;  %3115 = vmatpush.bf16.msra.mxu2 %v4792_v9 }
 0x15c   : > { %v1491_v4 = vpop.f32.mrf.mxu2  ;;  %3525 = vmatpush.bf16.msra.mxu3 %v4800_v57  ;;  %v2058_v9 = vld [vmem:[#allocation2 + $0x169] sm:$0xff]  ;;  %v2059_v57 = vld [vmem:[#allocation2 + $0x171] sm:$0xff] }
 0x15d   : > { %v1562_v52 = vadd.f32 %v1491_v4, %v1152_v51  ;;  %v5507_v56 = vadd.f32 %v2308_v23, %v1971_v40  ;;  %v1677_v51 = vpack.c.bf16 %v1645_v30, %v1645_v30  ;;  %v1399_v23 = vpack.c.b16 %v1380_v35, %v1379_v34  ;;  %v1236_v40 = vld [vmem:[#allocation2 + $0x13a] sm:$0xff] }
 0x15e   : > { %v1086_v61 = vpop.f32.mrf.mxu1  ;;  %v1268_v54 = vpack.c.bf16 %v1236_v40, %v1236_v40  ;;  %v4784_v40 = vld [vmem:[#allocation7 + $0x140] sm:$0xff] }
 0x15f   : > { %1940 = vmatmul.bf16.gmra.mxu3 %v1808_v27  ;;  %v2313_v41 = vpop.f32.mrf.mxu0  ;;  %v1790_v12 = vunpack.c.l.b16 %v1677_v51  ;;  %v1237_v27 = vld [vmem:[#allocation2 + $0x142] sm:$0xff]  ;;  %v1154_v46 = vadd.f32 %v1086_v61, %v5409_v45  ;;  %v1647_v45 = vld [vmem:[#allocation2 + $0x158] sm:$0xff]  ;;  %2704 = vmatpush.bf16.msra.mxu1 %v4784_v40 }
 0x160   : > { %v1269_v11 = vpack.c.bf16 %v1237_v27, %v1237_v27  ;;  %v5515_v61 = vld [vmem:[%s5245_s7 + $0xf0] sm:$0xff]  ;;  %v1381_v24 = vunpack.c.l.b16 %v1268_v54  ;;  %v4808_v27 = vld [vmem:[#allocation7 + $0x200] sm:$0xff] }
 0x161   : > { %1125 = vmatmul.bf16.gmra.mxu1 %v2218_v63  ;;  %v1809_v4 = vpack.c.b16 %v1790_v12, %v1789_v37  ;;  %357 = vst [vmem:[#allocation2 + $0x181] sm:$0xff] %v5515_v61  ;;  %3935 = vmatpush.bf16.msra.mxu0 %v4808_v27 }
 0x162   : > { %v1901_v21 = vpop.f32.mrf.mxu3  ;;  %v1382_v51 = vunpack.c.l.b16 %v1269_v11 }
 0x163   : > { %v1972_v47 = vadd.f32 %v1901_v21, %v1562_v52  ;;  %v2056_v52 = vld [vmem:[#allocation2 + $0x151] sm:$0xff] }
 0x164   : > { %v1493_v25 = vpop.f32.mrf.mxu2  ;;  %v2088_v30 = vpack.c.bf16 %v2056_v52, %v2056_v52  ;;  %v1646_v21 = vld [vmem:[#allocation2 + $0x150] sm:$0xff] }
 0x165   : > { %v1563_v16 = vadd.f32 %v1493_v25, %v1153_v5  ;;  %v5509_v2 = vadd.f32 %v2311_v31, %v1972_v47  ;;  %v2057_v5 = vld [vmem:[#allocation2 + $0x159] sm:$0xff]  ;;  %v5518_v47 = vld [vmem:[%s5245_s7 + $0xf8] sm:$0xff]  ;;  %v1678_v12 = vpack.c.bf16 %v1646_v21, %v1646_v21 }
 0x166   : > { %v1088_v36 = vpop.f32.mrf.mxu1  ;;  %v2089_v34 = vpack.c.bf16 %v2057_v5, %v2057_v5  ;;  %v2201_v25 = vunpack.c.l.b16 %v2088_v30  ;;  %358 = vst [vmem:[#allocation2 + $0x189] sm:$0xff] %v5518_v47 }
 0x167   : > { %v2316_v0 = vpop.f32.mrf.mxu0  ;;  %v1155_v37 = vadd.f32 %v1088_v36, %v5416_v53  ;;  %v1791_v54 = vunpack.c.l.b16 %v1678_v12  ;;  %v1238_v53 = vld [vmem:[#allocation2 + $0x152] sm:$0xff]  ;;  %v1239_v36 = vld [vmem:[#allocation2 + $0x15a] sm:$0xff]  ;;  %v1648_v12 = vld [vmem:[#allocation2 + $0x168] sm:$0xff] }
 0x169   : > { %1535 = vmatmul.bf16.gmra.mxu2 %v1399_v23 }
 0x16a   : > { %v1903_v63 = vpop.f32.mrf.mxu3  ;;  %2355 = vmatmul.bf16.gmra.mxu0 %v2219_v32 }
 0x16b   : > { %v1973_v55 = vadd.f32 %v1903_v63, %v1563_v16  ;;  %v2202_v16 = vunpack.c.l.b16 %v2089_v34  ;;  %v1679_v63 = vpack.c.bf16 %v1647_v45, %v1647_v45 }
 0x16c   : > { %v1496_v31 = vpop.f32.mrf.mxu2 }
 0x16d   : > { %v1564_v58 = vadd.f32 %v1496_v31, %v1154_v46  ;;  %v5512_v1 = vadd.f32 %v2313_v41, %v1973_v55  ;;  %v1400_v46 = vpack.c.b16 %v1382_v51, %v1381_v24  ;;  %v2220_v52 = vpack.c.b16 %v2202_v16, %v2201_v25 }
 0x16e   : > { %v1091_v44 = vpop.f32.mrf.mxu1  ;;  %v1792_v11 = vunpack.c.l.b16 %v1679_v63  ;;  %v1271_v51 = vpack.c.bf16 %v1239_v36, %v1239_v36  ;;  %v2090_v16 = vpack.c.bf16 %v2058_v9, %v2058_v9  ;;  %v1649_v63 = vld [vmem:[#allocation2 + $0x170] sm:$0xff] }
 0x16f   : > { %1945 = vmatmul.bf16.gmra.mxu3 %v1809_v4  ;;  %v2318_v35 = vpop.f32.mrf.mxu0  ;;  %v1156_v34 = vadd.f32 %v1091_v44, %v5422_v19 }
 0x170   : > { %v1810_v21 = vpack.c.b16 %v1792_v11, %v1791_v54  ;;  %v1384_v27 = vunpack.c.l.b16 %v1271_v51  ;;  %v2203_v44 = vunpack.c.l.b16 %v2090_v16  ;;  %v1680_v54 = vpack.c.bf16 %v1648_v12, %v1648_v12 }
 0x171   : > { %1130 = vmatmul.bf16.gmra.mxu1 %v2219_v32  ;;  %v1681_v11 = vpack.c.bf16 %v1649_v63, %v1649_v63 }
 0x172   : > { %v1906_v41 = vpop.f32.mrf.mxu3  ;;  %v1793_v9 = vunpack.c.l.b16 %v1680_v54 }
 0x173   : > { %v1974_v23 = vadd.f32 %v1906_v41, %v1564_v58 }
 0x174   : > { %v1498_v55 = vpop.f32.mrf.mxu2 }
 0x175   : > { %v1565_v32 = vadd.f32 %v1498_v55, %v1155_v37  ;;  %v5523_v4 = vadd.f32 %v2316_v0, %v1974_v23  ;;  %v1270_v0 = vpack.c.bf16 %v1238_v53, %v1238_v53  ;;  %v2091_v23 = vpack.c.bf16 %v2059_v57, %v2059_v57  ;;  %v1240_v57 = vld [vmem:[#allocation2 + $0x16a] sm:$0xff] }
 0x176   : > { %v1093_v5 = vpop.f32.mrf.mxu1  ;;  %v1272_v16 = vpack.c.bf16 %v1240_v57, %v1240_v57 }
 0x177   : > { %v2321_v31 = vpop.f32.mrf.mxu0  ;;  %v1383_v40 = vunpack.c.l.b16 %v1270_v0  ;;  %v2204_v55 = vunpack.c.l.b16 %v2091_v23 }
 0x179   : > { %1540 = vmatmul.bf16.gmra.mxu2 %v1400_v46  ;;  %v1157_v46 = vadd.f32 %v1093_v5, %v5435_v18  ;;  %v1401_v53 = vpack.c.b16 %v1384_v27, %v1383_v40  ;;  %v2092_v40 = vpack.c.bf16 %v5515_v61, %v5515_v61  ;;  %v2093_v27 = vpack.c.bf16 %v5518_v47, %v5518_v47 }
 0x17a   : > { %v1908_v58 = vpop.f32.mrf.mxu3  ;;  %2360 = vmatmul.bf16.gmra.mxu0 %v2220_v52 }
 0x17b   : > { %v1975_v30 = vadd.f32 %v1908_v58, %v1565_v32  ;;  %v2206_v54 = vunpack.c.l.b16 %v2093_v27 }
 0x17c   : > { %v1501_v45 = vpop.f32.mrf.mxu2 }
 0x17d   : > { %v1566_v24 = vadd.f32 %v1501_v45, %v1156_v34  ;;  %v5526_v41 = vadd.f32 %v2318_v35, %v1975_v30  ;;  %v2221_v30 = vpack.c.b16 %v2204_v55, %v2203_v44  ;;  %v1241_v45 = vld [vmem:[#allocation2 + $0x172] sm:$0xff]  ;;  %v1385_v44 = vunpack.c.l.b16 %v1272_v16 }
 0x17e   : > { %v1096_v25 = vpop.f32.mrf.mxu1  ;;  %v1273_v23 = vpack.c.bf16 %v1241_v45, %v1241_v45 }
 0x17f   : > { %1950 = vmatmul.bf16.gmra.mxu3 %v1810_v21  ;;  %v2323_v37 = vpop.f32.mrf.mxu0  ;;  %v1158_v18 = vadd.f32 %v1096_v25, %v5443_v42  ;;  %v1651_v42 = vld [vmem:[#allocation2 + $0x188] sm:$0xff] }
 0x180   : > { %v1386_v55 = vunpack.c.l.b16 %v1273_v23  ;;  %v1683_v61 = vpack.c.bf16 %v1651_v42, %v1651_v42 }
 0x181   : > { %1135 = vmatmul.bf16.gmra.mxu1 %v2220_v52  ;;  %v1794_v52 = vunpack.c.l.b16 %v1681_v11  ;;  %v2440_v11 = vld [vmem:[#allocation2 + $0x1a] sm:$0xff] }
 0x182   : > { %v1911_v19 = vpop.f32.mrf.mxu3  ;;  %v2472_v57 = vpack.c.bf16 %v2440_v11, %v2440_v11 }
 0x183   : > { %v1976_v32 = vadd.f32 %v1911_v19, %v1566_v24  ;;  %v1811_v5 = vpack.c.b16 %v1794_v52, %v1793_v9  ;;  %v1402_v52 = vpack.c.b16 %v1386_v55, %v1385_v44  ;;  %v3671_v55 = vld [vmem:[#allocation2 + $0x32] sm:$0xff] }
 0x184   : > { %v1503_v35 = vpop.f32.mrf.mxu2  ;;  %v2585_v16 = vunpack.c.l.b16 %v2472_v57 }
 0x185   : > { %v1567_v58 = vadd.f32 %v1503_v35, %v1157_v46  ;;  %v5529_v36 = vadd.f32 %v2321_v31, %v1976_v32  ;;  %v1650_v32 = vld [vmem:[#allocation2 + $0x180] sm:$0xff]  ;;  %v2205_v46 = vunpack.c.l.b16 %v2092_v40 }
 0x186   : > { %v1098_v34 = vpop.f32.mrf.mxu1 }
 0x187   : > { %v2326_v21 = vpop.f32.mrf.mxu0 }
 0x189   : > { %1545 = vmatmul.bf16.gmra.mxu2 %v1401_v53  ;;  %v1682_v53 = vpack.c.bf16 %v1650_v32, %v1650_v32  ;;  %v3672_v32 = vld [vmem:[#allocation2 + $0x3a] sm:$0xff] }
 0x18a   : > { %v1913_v0 = vpop.f32.mrf.mxu3  ;;  %2365 = vmatmul.bf16.gmra.mxu0 %v2221_v30 }
 0x18b   : > { %v1977_v24 = vadd.f32 %v1913_v0, %v1567_v58  ;;  %v1159_v58 = vadd.f32 %v1098_v34, %v5456_v43  ;;  %v2852_v43 = vld [vmem:[#allocation2 + $0x38] sm:$0xff] }
 0x18c   : > { %v1506_v51 = vpop.f32.mrf.mxu2 }
 0x18d   : > { %v1568_v12 = vadd.f32 %v1506_v51, %v1158_v18  ;;  %v5532_v31 = vadd.f32 %v2323_v37, %v1977_v24  ;;  %v2441_v37 = vld [vmem:[#allocation2 + $0x22] sm:$0xff]  ;;  %v2222_v24 = vpack.c.b16 %v2206_v54, %v2205_v46  ;;  %v1796_v51 = vunpack.c.l.b16 %v1683_v61  ;;  %v3261_v61 = vld [vmem:[#allocation2 + $0x31] sm:$0xff] }
 0x18e   : > { %v1101_v63 = vpop.f32.mrf.mxu1  ;;  %v2473_v45 = vpack.c.bf16 %v2441_v37, %v2441_v37  ;;  %v2884_v54 = vpack.c.bf16 %v2852_v43, %v2852_v43 }
 0x18f   : > { %1955 = vmatmul.bf16.gmra.mxu3 %v1811_v5  ;;  %v2328_v19 = vpop.f32.mrf.mxu0  ;;  %v1795_v5 = vunpack.c.l.b16 %v1682_v53  ;;  %v1160_v27 = vadd.f32 %v1101_v63, %v5464_v20 }
 0x190   : > { %v2586_v23 = vunpack.c.l.b16 %v2473_v45  ;;  %v2997_v20 = vunpack.c.l.b16 %v2884_v54 }
 0x191   : > { %1140 = vmatmul.bf16.gmra.mxu1 %v2221_v30  ;;  %v1812_v44 = vpack.c.b16 %v1796_v51, %v1795_v5  ;;  %v3293_v5 = vpack.c.bf16 %v3261_v61, %v3261_v61 }
 0x192   : > { %v1916_v25 = vpop.f32.mrf.mxu3  ;;  %v2617_v46 = vpack.c.b16 %v2586_v23, %v2585_v16 }
 0x193   : > { %v1978_v35 = vadd.f32 %v1916_v25, %v1568_v12  ;;  %v2851_v12 = vld [vmem:[#allocation2 + $0x30] sm:$0xff] }
 0x194   : > { %v1508_v9 = vpop.f32.mrf.mxu2  ;;  %v2883_v42 = vpack.c.bf16 %v2851_v12, %v2851_v12 }
 0x195   : > { %v1569_v47 = vadd.f32 %v1508_v9, %v1159_v58  ;;  %v5539_v0 = vadd.f32 %v2326_v21, %v1978_v35  ;;  %v3703_v35 = vpack.c.bf16 %v3671_v55, %v3671_v55  ;;  %v3704_v58 = vpack.c.bf16 %v3672_v32, %v3672_v32  ;;  %v3262_v9 = vld [vmem:[#allocation2 + $0x39] sm:$0xff]  ;;  %v2853_v32 = vld [vmem:[#allocation2 + $0x48] sm:$0xff] }
 0x196   : > { %v1103_v18 = vpop.f32.mrf.mxu1  ;;  %v3294_v51 = vpack.c.bf16 %v3262_v9, %v3262_v9 }
 0x197   : > { %v2331_v30 = vpop.f32.mrf.mxu0  ;;  %v3817_v57 = vunpack.c.l.b16 %v3704_v58 }
 0x199   : > { %1550 = vmatmul.bf16.gmra.mxu2 %v1402_v52  ;;  %v2996_v52 = vunpack.c.l.b16 %v2883_v42 }
 0x19a   : > { %v1918_v40 = vpop.f32.mrf.mxu3  ;;  %2370 = vmatmul.bf16.gmra.mxu0 %v2222_v24  ;;  %v1161_v24 = vadd.f32 %v1103_v18, %v5473_v15 }
 0x19b   : > { %v1979_v34 = vadd.f32 %v1918_v40, %v1569_v47  ;;  %v3816_v47 = vunpack.c.l.b16 %v3703_v35  ;;  %v3028_v23 = vpack.c.b16 %v2997_v20, %v2996_v52 }
 0x19c   : > { %v1511_v21 = vpop.f32.mrf.mxu2 }
 0x19d   : > { %v1570_v25 = vadd.f32 %v1511_v21, %v1160_v27  ;;  %v5542_v11 = vadd.f32 %v2328_v19, %v1979_v34  ;;  %v3848_v40 = vpack.c.b16 %v3817_v57, %v3816_v47  ;;  %v3406_v27 = vunpack.c.l.b16 %v3293_v5  ;;  %v2854_v21 = vld [vmem:[#allocation2 + $0x50] sm:$0xff] }
 0x19e   : > { %v1106_v37 = vpop.f32.mrf.mxu1  ;;  %v2886_v58 = vpack.c.bf16 %v2854_v21, %v2854_v21  ;;  %v3263_v47 = vld [vmem:[#allocation2 + $0x49] sm:$0xff]  ;;  %v3264_v57 = vld [vmem:[#allocation2 + $0x51] sm:$0xff] }
 0x19f   : > { %1960 = vmatmul.bf16.gmra.mxu3 %v1812_v44  ;;  %v2333_v53 = vpop.f32.mrf.mxu0  ;;  %v3407_v44 = vunpack.c.l.b16 %v3294_v51  ;;  %v1162_v15 = vadd.f32 %v1106_v37, %v5420_v6 }
 0x1a1   : > { %2705 = vmatmul.bf16.vlgmr.msra.gmra.mxu1 %v2617_v46  ;;  %v3438_v18 = vpack.c.b16 %v3407_v44, %v3406_v27  ;;  %v3674_v46 = vld [vmem:[#allocation2 + $0x52] sm:$0xff] }
 0x1a2   : > { %v1921_v63 = vpop.f32.mrf.mxu3  ;;  %v3706_v20 = vpack.c.bf16 %v3674_v46, %v3674_v46  ;;  %v2856_v46 = vld [vmem:[#allocation2 + $0x68] sm:$0xff] }
 0x1a3   : > { %v1980_v45 = vadd.f32 %v1921_v63, %v1570_v25  ;;  %v3673_v25 = vld [vmem:[#allocation2 + $0x4a] sm:$0xff] }
 0x1a4   : > { %v1513_v19 = vpop.f32.mrf.mxu2  ;;  %v3705_v52 = vpack.c.bf16 %v3673_v25, %v3673_v25  ;;  %v3819_v5 = vunpack.c.l.b16 %v3706_v20  ;;  %v2855_v25 = vld [vmem:[#allocation2 + $0x60] sm:$0xff]  ;;  %v2888_v20 = vpack.c.bf16 %v2856_v46, %v2856_v46 }
 0x1a5   : > { %v1571_v16 = vadd.f32 %v1513_v19, %v1161_v24  ;;  %v5545_v12 = vadd.f32 %v2331_v30, %v1980_v45  ;;  %v2885_v30 = vpack.c.bf16 %v2853_v32, %v2853_v32  ;;  %v2999_v24 = vunpack.c.l.b16 %v2886_v58 }
 0x1a6   : > { %v1108_v43 = vpop.f32.mrf.mxu1  ;;  %v3818_v37 = vunpack.c.l.b16 %v3705_v52 }
 0x1a7   : > { %v2336_v34 = vpop.f32.mrf.mxu0  ;;  %v2998_v45 = vunpack.c.l.b16 %v2885_v30  ;;  %v1163_v19 = vadd.f32 %v1108_v43, %v5433_v17  ;;  %v3676_v30 = vld [vmem:[#allocation2 + $0x6a] sm:$0xff] }
 0x1a8   : > { %v3849_v32 = vpack.c.b16 %v3819_v5, %v3818_v37  ;;  %v3265_v37 = vld [vmem:[#allocation2 + $0x61] sm:$0xff]  ;;  %v3266_v5 = vld [vmem:[#allocation2 + $0x69] sm:$0xff] }
 0x1a9   : > { %3116 = vmatmul.bf16.vlgmr.msra.gmra.mxu2 %v3028_v23  ;;  %v3296_v23 = vpack.c.bf16 %v3264_v57, %v3264_v57  ;;  %v3029_v44 = vpack.c.b16 %v2999_v24, %v2998_v45  ;;  %v3708_v24 = vpack.c.bf16 %v3676_v30, %v3676_v30  ;;  %v2858_v30 = vld [vmem:[#allocation2 + $0x80] sm:$0xff] }
 0x1aa   : > { %v1923_v55 = vpop.f32.mrf.mxu3  ;;  %3936 = vmatmul.bf16.vlgmr.msra.gmra.mxu0 %v3848_v40 }
 0x1ab   : > { %v1981_v42 = vadd.f32 %v1923_v55, %v1571_v16  ;;  %v3295_v16 = vpack.c.bf16 %v3263_v47, %v3263_v47 }
 0x1ac   : > { %v1516_v54 = vpop.f32.mrf.mxu2 }
 0x1ad   : > { %v1572_v35 = vadd.f32 %v1516_v54, %v1162_v15  ;;  %v5548_v61 = vadd.f32 %v2333_v53, %v1981_v42  ;;  %v3408_v15 = vunpack.c.l.b16 %v3295_v16  ;;  %v3821_v16 = vunpack.c.l.b16 %v3708_v24 }
 0x1ae   : > { %v1111_v9 = vpop.f32.mrf.mxu1  ;;  %v2890_v24 = vpack.c.bf16 %v2858_v30, %v2858_v30 }
 0x1af   : > { %3526 = vmatmul.bf16.vlgmr.msra.gmra.mxu3 %v3438_v18  ;;  %v2338_v63 = vpop.f32.mrf.mxu0  ;;  %v1164_v17 = vadd.f32 %v1111_v9, %v5441_v28 }
 0x1b1   : > { %2710 = vmatmul.bf16.gmra.mxu1 %v3848_v40  ;;  %v3409_v40 = vunpack.c.l.b16 %v3296_v23 }
 0x1b2   : > { %v1926_v6 = vpop.f32.mrf.mxu3 }
 0x1b3   : > { %v1982_v51 = vadd.f32 %v1926_v6, %v1572_v35  ;;  %v3439_v43 = vpack.c.b16 %v3409_v40, %v3408_v15  ;;  %v3675_v35 = vld [vmem:[#allocation2 + $0x62] sm:$0xff] }
 0x1b4   : > { %v1518_v53 = vpop.f32.mrf.mxu2  ;;  %v3707_v45 = vpack.c.bf16 %v3675_v35, %v3675_v35  ;;  %v2857_v35 = vld [vmem:[#allocation2 + $0x78] sm:$0xff] }
 0x1b5   : > { %v1573_v27 = vadd.f32 %v1518_v53, %v1163_v19  ;;  %v5551_v55 = vadd.f32 %v2336_v34, %v1982_v51  ;;  %v2887_v34 = vpack.c.bf16 %v2855_v25, %v2855_v25  ;;  %v3001_v19 = vunpack.c.l.b16 %v2888_v20 }
 0x1b6   : > { %v1113_v21 = vpop.f32.mrf.mxu1  ;;  %v3820_v9 = vunpack.c.l.b16 %v3707_v45 }
 0x1b7   : > { %v2341_v42 = vpop.f32.mrf.mxu0  ;;  %v3000_v51 = vunpack.c.l.b16 %v2887_v34  ;;  %v1165_v53 = vadd.f32 %v1113_v21, %v5454_v3  ;;  %v3678_v34 = vld [vmem:[#allocation2 + $0x82] sm:$0xff] }
 0x1b8   : > { %v3850_v25 = vpack.c.b16 %v3821_v16, %v3820_v9  ;;  %v3267_v9 = vld [vmem:[#allocation2 + $0x79] sm:$0xff]  ;;  %v3268_v16 = vld [vmem:[#allocation2 + $0x81] sm:$0xff] }
 0x1b9   : > { %3121 = vmatmul.bf16.gmra.mxu2 %v3029_v44  ;;  %v3298_v44 = vpack.c.bf16 %v3266_v5, %v3266_v5  ;;  %v3030_v40 = vpack.c.b16 %v3001_v19, %v3000_v51  ;;  %v3710_v19 = vpack.c.bf16 %v3678_v34, %v3678_v34  ;;  %v2860_v34 = vld [vmem:[#allocation2 + $0x98] sm:$0xff] }
 0x1ba   : > { %v1928_v18 = vpop.f32.mrf.mxu3  ;;  %3941 = vmatmul.bf16.gmra.mxu0 %v3849_v32 }
 0x1bb   : > { %v1983_v54 = vadd.f32 %v1928_v18, %v1573_v27  ;;  %v3297_v27 = vpack.c.bf16 %v3265_v37, %v3265_v37 }
 0x1bc   : > { %v1521_v58 = vpop.f32.mrf.mxu2 }
 0x1bd   : > { %v1574_v52 = vadd.f32 %v1521_v58, %v1164_v17  ;;  %v5554_v47 = vadd.f32 %v2338_v63, %v1983_v54  ;;  %v3410_v17 = vunpack.c.l.b16 %v3297_v27  ;;  %v3823_v27 = vunpack.c.l.b16 %v3710_v19 }
 0x1be   : > { %v1116_v57 = vpop.f32.mrf.mxu1  ;;  %v2892_v19 = vpack.c.bf16 %v2860_v34, %v2860_v34 }
 0x1bf   : > { %3531 = vmatmul.bf16.gmra.mxu3 %v3439_v43  ;;  %v2343_v6 = vpop.f32.mrf.mxu0  ;;  %v1166_v3 = vadd.f32 %v1116_v57, %v5462_v49 }
 0x1c1   : > { %2715 = vmatmul.bf16.gmra.mxu1 %v3849_v32  ;;  %v3411_v32 = vunpack.c.l.b16 %v3298_v44 }
 0x1c2   : > { %v1931_v28 = vpop.f32.mrf.mxu3 }
 0x1c3   : > { %v1984_v23 = vadd.f32 %v1931_v28, %v1574_v52  ;;  %v3440_v21 = vpack.c.b16 %v3411_v32, %v3410_v17  ;;  %v3677_v52 = vld [vmem:[#allocation2 + $0x7a] sm:$0xff] }
 0x1c4   : > { %v1523_v63 = vpop.f32.mrf.mxu2  ;;  %v3709_v51 = vpack.c.bf16 %v3677_v52, %v3677_v52  ;;  %v2859_v52 = vld [vmem:[#allocation2 + $0x90] sm:$0xff] }
 0x1c5   : > { %v1575_v15 = vadd.f32 %v1523_v63, %v1165_v53  ;;  %v5557_v18 = vadd.f32 %v2341_v42, %v1984_v23  ;;  %v2889_v42 = vpack.c.bf16 %v2857_v35, %v2857_v35  ;;  %v3003_v53 = vunpack.c.l.b16 %v2890_v24 }
 0x1c6   : > { %v1118_v46 = vpop.f32.mrf.mxu1  ;;  %v3822_v57 = vunpack.c.l.b16 %v3709_v51 }
 0x1c7   : > { %v2346_v54 = vpop.f32.mrf.mxu0  ;;  %v3002_v23 = vunpack.c.l.b16 %v2889_v42  ;;  %v1167_v63 = vadd.f32 %v1118_v46, %v5471_v59  ;;  %v3680_v42 = vld [vmem:[#allocation2 + $0x9a] sm:$0xff] }
 0x1c8   : > { %v3851_v35 = vpack.c.b16 %v3823_v27, %v3822_v57  ;;  %v3269_v57 = vld [vmem:[#allocation2 + $0x91] sm:$0xff]  ;;  %v3270_v27 = vld [vmem:[#allocation2 + $0x99] sm:$0xff] }
 0x1c9   : > { %3126 = vmatmul.bf16.gmra.mxu2 %v3030_v40  ;;  %v3300_v40 = vpack.c.bf16 %v3268_v16, %v3268_v16  ;;  %v3031_v32 = vpack.c.b16 %v3003_v53, %v3002_v23  ;;  %v3712_v53 = vpack.c.bf16 %v3680_v42, %v3680_v42  ;;  %v2862_v42 = vld [vmem:[#allocation2 + $0xb0] sm:$0xff] }
 0x1ca   : > { %v1933_v43 = vpop.f32.mrf.mxu3  ;;  %3946 = vmatmul.bf16.gmra.mxu0 %v3850_v25 }
 0x1cb   : > { %v1985_v58 = vadd.f32 %v1933_v43, %v1575_v15  ;;  %v3299_v15 = vpack.c.bf16 %v3267_v9, %v3267_v9 }
 0x1cc   : > { %v1526_v20 = vpop.f32.mrf.mxu2 }
 0x1cd   : > { %v1576_v45 = vadd.f32 %v1526_v20, %v1166_v3  ;;  %v5560_v37 = vadd.f32 %v2343_v6, %v1985_v58  ;;  %v3412_v3 = vunpack.c.l.b16 %v3299_v15  ;;  %v3825_v15 = vunpack.c.l.b16 %v3712_v53 }
 0x1ce   : > { %v1121_v5 = vpop.f32.mrf.mxu1  ;;  %v2894_v53 = vpack.c.bf16 %v2862_v42, %v2862_v42 }
 0x1cf   : > { %3536 = vmatmul.bf16.gmra.mxu3 %v3440_v21  ;;  %v2348_v28 = vpop.f32.mrf.mxu0  ;;  %v1168_v59 = vadd.f32 %v1121_v5, %v5479_v33 }
 0x1d1   : > { %2720 = vmatmul.bf16.gmra.mxu1 %v3850_v25  ;;  %v3413_v25 = vunpack.c.l.b16 %v3300_v40 }
 0x1d2   : > { %v1936_v49 = vpop.f32.mrf.mxu3 }
 0x1d3   : > { %v1986_v44 = vadd.f32 %v1936_v49, %v1576_v45  ;;  %v3441_v46 = vpack.c.b16 %v3413_v25, %v3412_v3  ;;  %v3679_v45 = vld [vmem:[#allocation2 + $0x92] sm:$0xff] }
 0x1d4   : > { %v1528_v6 = vpop.f32.mrf.mxu2  ;;  %v3711_v23 = vpack.c.bf16 %v3679_v45, %v3679_v45  ;;  %v2861_v45 = vld [vmem:[#allocation2 + $0xa8] sm:$0xff] }
 0x1d5   : > { %v1577_v17 = vadd.f32 %v1528_v6, %v1167_v63  ;;  %v5563_v43 = vadd.f32 %v2346_v54, %v1986_v44  ;;  %v2891_v54 = vpack.c.bf16 %v2859_v52, %v2859_v52  ;;  %v3005_v63 = vunpack.c.l.b16 %v2892_v19 }
 0x1d6   : > { %v1123_v30 = vpop.f32.mrf.mxu1  ;;  %v3824_v5 = vunpack.c.l.b16 %v3711_v23 }
 0x1d7   : > { %v2351_v58 = vpop.f32.mrf.mxu0  ;;  %v3004_v44 = vunpack.c.l.b16 %v2891_v54  ;;  %v1169_v6 = vadd.f32 %v1123_v30, %v5486_v60  ;;  %v3682_v54 = vld [vmem:[#allocation2 + $0xb2] sm:$0xff] }
 0x1d8   : > { %v3852_v52 = vpack.c.b16 %v3825_v15, %v3824_v5  ;;  %v3271_v5 = vld [vmem:[#allocation2 + $0xa9] sm:$0xff]  ;;  %v3272_v15 = vld [vmem:[#allocation2 + $0xb1] sm:$0xff] }
 0x1d9   : > { %3131 = vmatmul.bf16.gmra.mxu2 %v3031_v32  ;;  %v3302_v32 = vpack.c.bf16 %v3270_v27, %v3270_v27  ;;  %v3032_v25 = vpack.c.b16 %v3005_v63, %v3004_v44  ;;  %v3714_v63 = vpack.c.bf16 %v3682_v54, %v3682_v54  ;;  %v2864_v54 = vld [vmem:[#allocation2 + $0xc8] sm:$0xff] }
 0x1da   : > { %v1938_v21 = vpop.f32.mrf.mxu3  ;;  %3951 = vmatmul.bf16.gmra.mxu0 %v3851_v35 }
 0x1db   : > { %v1987_v20 = vadd.f32 %v1938_v21, %v1577_v17  ;;  %v3301_v17 = vpack.c.bf16 %v3269_v57, %v3269_v57 }
 0x1dc   : > { %v1531_v24 = vpop.f32.mrf.mxu2 }
 0x1dd   : > { %v1578_v51 = vadd.f32 %v1531_v24, %v1168_v59  ;;  %v5566_v9 = vadd.f32 %v2348_v28, %v1987_v20  ;;  %v3414_v59 = vunpack.c.l.b16 %v3301_v17  ;;  %v3827_v17 = vunpack.c.l.b16 %v3714_v63 }
 0x1de   : > { %v1126_v16 = vpop.f32.mrf.mxu1  ;;  %v2896_v63 = vpack.c.bf16 %v2864_v54, %v2864_v54 }
 0x1df   : > { %3541 = vmatmul.bf16.gmra.mxu3 %v3441_v46  ;;  %v2353_v49 = vpop.f32.mrf.mxu0  ;;  %v1170_v60 = vadd.f32 %v1126_v16, %v5431_v14 }
 0x1e1   : > { %2725 = vmatmul.bf16.gmra.mxu1 %v3851_v35  ;;  %v3415_v35 = vunpack.c.l.b16 %v3302_v32 }
 0x1e2   : > { %v1941_v33 = vpop.f32.mrf.mxu3 }
 0x1e3   : > { %v1988_v40 = vadd.f32 %v1941_v33, %v1578_v51  ;;  %v3442_v30 = vpack.c.b16 %v3415_v35, %v3414_v59  ;;  %v3681_v51 = vld [vmem:[#allocation2 + $0xaa] sm:$0xff] }
 0x1e4   : > { %v1533_v28 = vpop.f32.mrf.mxu2  ;;  %v3713_v44 = vpack.c.bf16 %v3681_v51, %v3681_v51  ;;  %v2863_v51 = vld [vmem:[#allocation2 + $0xc0] sm:$0xff] }
 0x1e5   : > { %v1579_v3 = vadd.f32 %v1533_v28, %v1169_v6  ;;  %v5569_v21 = vadd.f32 %v2351_v58, %v1988_v40  ;;  %v2893_v58 = vpack.c.bf16 %v2861_v45, %v2861_v45  ;;  %v3007_v6 = vunpack.c.l.b16 %v2894_v53 }
 0x1e6   : > { %v1128_v34 = vpop.f32.mrf.mxu1  ;;  %v3826_v16 = vunpack.c.l.b16 %v3713_v44 }
 0x1e7   : > { %v2356_v20 = vpop.f32.mrf.mxu0  ;;  %v3006_v40 = vunpack.c.l.b16 %v2893_v58  ;;  %v1171_v28 = vadd.f32 %v1128_v34, %v5439_v22  ;;  %v3684_v58 = vld [vmem:[#allocation2 + $0xca] sm:$0xff] }
 0x1e8   : > { %v3853_v45 = vpack.c.b16 %v3827_v17, %v3826_v16  ;;  %v3273_v16 = vld [vmem:[#allocation2 + $0xc1] sm:$0xff]  ;;  %v3274_v17 = vld [vmem:[#allocation2 + $0xc9] sm:$0xff] }
 0x1e9   : > { %3136 = vmatmul.bf16.gmra.mxu2 %v3032_v25  ;;  %v3304_v25 = vpack.c.bf16 %v3272_v15, %v3272_v15  ;;  %v3033_v35 = vpack.c.b16 %v3007_v6, %v3006_v40  ;;  %v3716_v6 = vpack.c.bf16 %v3684_v58, %v3684_v58  ;;  %v2866_v58 = vld [vmem:[#allocation2 + $0xe0] sm:$0xff] }
 0x1ea   : > { %v1943_v46 = vpop.f32.mrf.mxu3  ;;  %3956 = vmatmul.bf16.gmra.mxu0 %v3852_v52 }
 0x1eb   : > { %v1989_v24 = vadd.f32 %v1943_v46, %v1579_v3  ;;  %v3303_v3 = vpack.c.bf16 %v3271_v5, %v3271_v5 }
 0x1ec   : > { %v1536_v19 = vpop.f32.mrf.mxu2 }
 0x1ed   : > { %v1580_v23 = vadd.f32 %v1536_v19, %v1170_v60  ;;  %v5572_v57 = vadd.f32 %v2353_v49, %v1989_v24  ;;  %v3416_v60 = vunpack.c.l.b16 %v3303_v3  ;;  %v3829_v3 = vunpack.c.l.b16 %v3716_v6 }
 0x1ee   : > { %v1131_v27 = vpop.f32.mrf.mxu1  ;;  %v2898_v6 = vpack.c.bf16 %v2866_v58, %v2866_v58 }
 0x1ef   : > { %3546 = vmatmul.bf16.gmra.mxu3 %v3442_v30  ;;  %v2358_v33 = vpop.f32.mrf.mxu0  ;;  %v1172_v22 = vadd.f32 %v1131_v27, %v5452_v38 }
 0x1f1   : > { %2730 = vmatmul.bf16.gmra.mxu1 %v3852_v52  ;;  %v3417_v52 = vunpack.c.l.b16 %v3304_v25 }
 0x1f2   : > { %v1946_v14 = vpop.f32.mrf.mxu3 }
 0x1f3   : > { %v1990_v32 = vadd.f32 %v1946_v14, %v1580_v23  ;;  %v3443_v34 = vpack.c.b16 %v3417_v52, %v3416_v60  ;;  %v3683_v23 = vld [vmem:[#allocation2 + $0xc2] sm:$0xff] }
 0x1f4   : > { %v1538_v49 = vpop.f32.mrf.mxu2  ;;  %v3715_v40 = vpack.c.bf16 %v3683_v23, %v3683_v23  ;;  %v2865_v23 = vld [vmem:[#allocation2 + $0xd8] sm:$0xff] }
 0x1f5   : > { %v1581_v59 = vadd.f32 %v1538_v49, %v1171_v28  ;;  %v5575_v46 = vadd.f32 %v2356_v20, %v1990_v32  ;;  %v2895_v20 = vpack.c.bf16 %v2863_v51, %v2863_v51  ;;  %v3009_v28 = vunpack.c.l.b16 %v2896_v63 }
 0x1f6   : > { %v1133_v42 = vpop.f32.mrf.mxu1  ;;  %v3828_v27 = vunpack.c.l.b16 %v3715_v40 }
 0x1f7   : > { %v2361_v24 = vpop.f32.mrf.mxu0  ;;  %v3008_v32 = vunpack.c.l.b16 %v2895_v20  ;;  %v1173_v49 = vadd.f32 %v1133_v42, %v5460_v48  ;;  %v3686_v20 = vld [vmem:[#allocation2 + $0xe2] sm:$0xff] }
 0x1f8   : > { %v3854_v51 = vpack.c.b16 %v3829_v3, %v3828_v27  ;;  %v3275_v27 = vld [vmem:[#allocation2 + $0xd9] sm:$0xff]  ;;  %v3276_v3 = vld [vmem:[#allocation2 + $0xe1] sm:$0xff] }
 0x1f9   : > { %3141 = vmatmul.bf16.gmra.mxu2 %v3033_v35  ;;  %v3306_v35 = vpack.c.bf16 %v3274_v17, %v3274_v17  ;;  %v3034_v52 = vpack.c.b16 %v3009_v28, %v3008_v32  ;;  %v3718_v28 = vpack.c.bf16 %v3686_v20, %v3686_v20  ;;  %v2868_v20 = vld [vmem:[#allocation2 + $0xf8] sm:$0xff] }
 0x1fa   : > { %v1948_v30 = vpop.f32.mrf.mxu3  ;;  %3961 = vmatmul.bf16.gmra.mxu0 %v3853_v45 }
 0x1fb   : > { %v1991_v19 = vadd.f32 %v1948_v30, %v1581_v59  ;;  %v3305_v59 = vpack.c.bf16 %v3273_v16, %v3273_v16 }
 0x1fc   : > { %v1541_v53 = vpop.f32.mrf.mxu2 }
 0x1fd   : > { %v1582_v44 = vadd.f32 %v1541_v53, %v1172_v22  ;;  %v5578_v5 = vadd.f32 %v2358_v33, %v1991_v19  ;;  %v3418_v22 = vunpack.c.l.b16 %v3305_v59  ;;  %v3831_v59 = vunpack.c.l.b16 %v3718_v28 }
 0x1fe   : > { %v1136_v15 = vpop.f32.mrf.mxu1  ;;  %v2900_v28 = vpack.c.bf16 %v2868_v20, %v2868_v20 }
 0x1ff   : > { %3551 = vmatmul.bf16.gmra.mxu3 %v3443_v34  ;;  %v2363_v14 = vpop.f32.mrf.mxu0  ;;  %v1174_v48 = vadd.f32 %v1136_v15, %v5469_v29 }
 0x201   : > { %2735 = vmatmul.bf16.gmra.mxu1 %v3853_v45  ;;  %v3419_v45 = vunpack.c.l.b16 %v3306_v35 }
 0x202   : > { %v1951_v38 = vpop.f32.mrf.mxu3 }
 0x203   : > { %v1992_v25 = vadd.f32 %v1951_v38, %v1582_v44  ;;  %v3444_v42 = vpack.c.b16 %v3419_v45, %v3418_v22  ;;  %v3685_v44 = vld [vmem:[#allocation2 + $0xda] sm:$0xff] }
 0x204   : > { %v1543_v33 = vpop.f32.mrf.mxu2  ;;  %v3717_v32 = vpack.c.bf16 %v3685_v44, %v3685_v44  ;;  %v2867_v44 = vld [vmem:[#allocation2 + $0xf0] sm:$0xff] }
 0x205   : > { %v1583_v60 = vadd.f32 %v1543_v33, %v1173_v49  ;;  %v5581_v30 = vadd.f32 %v2361_v24, %v1992_v25  ;;  %v2897_v24 = vpack.c.bf16 %v2865_v23, %v2865_v23  ;;  %v3011_v49 = vunpack.c.l.b16 %v2898_v6 }
 0x206   : > { %v1138_v54 = vpop.f32.mrf.mxu1  ;;  %v3830_v15 = vunpack.c.l.b16 %v3717_v32 }
 0x207   : > { %v2366_v19 = vpop.f32.mrf.mxu0  ;;  %v3010_v25 = vunpack.c.l.b16 %v2897_v24  ;;  %v1175_v33 = vadd.f32 %v1138_v54, %v5477_v62  ;;  %v3688_v24 = vld [vmem:[#allocation2 + $0xfa] sm:$0xff] }
 0x208   : > { %v3855_v23 = vpack.c.b16 %v3831_v59, %v3830_v15  ;;  %v3277_v15 = vld [vmem:[#allocation2 + $0xf1] sm:$0xff]  ;;  %v3278_v59 = vld [vmem:[#allocation2 + $0xf9] sm:$0xff] }
 0x209   : > { %3146 = vmatmul.bf16.gmra.mxu2 %v3034_v52  ;;  %v3308_v52 = vpack.c.bf16 %v3276_v3, %v3276_v3  ;;  %v3035_v45 = vpack.c.b16 %v3011_v49, %v3010_v25  ;;  %v3720_v49 = vpack.c.bf16 %v3688_v24, %v3688_v24  ;;  %v2870_v24 = vld [vmem:[#allocation2 + $0x110] sm:$0xff] }
 0x20a   : > { %v1953_v34 = vpop.f32.mrf.mxu3  ;;  %3966 = vmatmul.bf16.gmra.mxu0 %v3854_v51 }
 0x20b   : > { %v1993_v53 = vadd.f32 %v1953_v34, %v1583_v60  ;;  %v3307_v60 = vpack.c.bf16 %v3275_v27, %v3275_v27 }
 0x20c   : > { %v1546_v63 = vpop.f32.mrf.mxu2 }
 0x20d   : > { %v1584_v40 = vadd.f32 %v1546_v63, %v1174_v48  ;;  %v5584_v16 = vadd.f32 %v2363_v14, %v1993_v53  ;;  %v3420_v48 = vunpack.c.l.b16 %v3307_v60  ;;  %v3833_v60 = vunpack.c.l.b16 %v3720_v49 }
 0x20e   : > { %v1141_v17 = vpop.f32.mrf.mxu1 }
 0x20f   : > { %3556 = vmatmul.bf16.gmra.mxu3 %v3444_v42  ;;  %v2368_v38 = vpop.f32.mrf.mxu0  ;;  %v1176_v62 = vadd.f32 %v1141_v17, %v5484_v50 }
 0x211   : > { %2740 = vmatmul.bf16.gmra.mxu1 %v3854_v51  ;;  %v3421_v51 = vunpack.c.l.b16 %v3308_v52 }
 0x212   : > { %v1956_v29 = vpop.f32.mrf.mxu3 }
 0x213   : > { %v1994_v35 = vadd.f32 %v1956_v29, %v1584_v40  ;;  %v3445_v54 = vpack.c.b16 %v3421_v51, %v3420_v48  ;;  %v3687_v40 = vld [vmem:[#allocation2 + $0xf2] sm:$0xff] }
 0x214   : > { %v1548_v14 = vpop.f32.mrf.mxu2  ;;  %v3719_v25 = vpack.c.bf16 %v3687_v40, %v3687_v40  ;;  %v2869_v40 = vld [vmem:[#allocation2 + $0x108] sm:$0xff] }
 0x215   : > { %v1585_v22 = vadd.f32 %v1548_v14, %v1175_v33  ;;  %v5587_v34 = vadd.f32 %v2366_v19, %v1994_v35  ;;  %v2899_v19 = vpack.c.bf16 %v2867_v44, %v2867_v44  ;;  %v3013_v33 = vunpack.c.l.b16 %v2900_v28 }
 0x216   : > { %v1143_v58 = vpop.f32.mrf.mxu1  ;;  %v3832_v17 = vunpack.c.l.b16 %v3719_v25  ;;  %v2901_v25 = vpack.c.bf16 %v2869_v40, %v2869_v40 }
 0x217   : > { %v2371_v53 = vpop.f32.mrf.mxu0  ;;  %v3012_v35 = vunpack.c.l.b16 %v2899_v19  ;;  %v1177_v14 = vadd.f32 %v1143_v58, %v5489_v8  ;;  %v3689_v8 = vld [vmem:[#allocation2 + $0x10a] sm:$0xff]  ;;  %v3690_v58 = vld [vmem:[#allocation2 + $0x112] sm:$0xff] }
 0x218   : > { %v3856_v44 = vpack.c.b16 %v3833_v60, %v3832_v17  ;;  %v3279_v17 = vld [vmem:[#allocation2 + $0x109] sm:$0xff]  ;;  %v3280_v60 = vld [vmem:[#allocation2 + $0x111] sm:$0xff] }
 0x219   : > { %3151 = vmatmul.bf16.gmra.mxu2 %v3035_v45  ;;  %v3310_v45 = vpack.c.bf16 %v3278_v59, %v3278_v59  ;;  %v3036_v51 = vpack.c.b16 %v3013_v33, %v3012_v35  ;;  %v3721_v59 = vpack.c.bf16 %v3689_v8, %v3689_v8  ;;  %v3722_v35 = vpack.c.bf16 %v3690_v58, %v3690_v58  ;;  %v2871_v58 = vld [vmem:[#allocation2 + $0x120] sm:$0xff] }
 0x21a   : > { %v1958_v42 = vpop.f32.mrf.mxu3  ;;  %3971 = vmatmul.bf16.gmra.mxu0 %v3855_v23 }
 0x21b   : > { %v1995_v63 = vadd.f32 %v1958_v42, %v1585_v22  ;;  %v3309_v22 = vpack.c.bf16 %v3277_v15, %v3277_v15 }
 0x21c   : > { %v1551_v6 = vpop.f32.mrf.mxu2 }
 0x21d   : > { %v1586_v32 = vadd.f32 %v1551_v6, %v1176_v62  ;;  %v5590_v27 = vadd.f32 %v2368_v38, %v1995_v63  ;;  %v3422_v62 = vunpack.c.l.b16 %v3309_v22 }
 0x21e   : > { %v2706_v3 = vpop.f32.mrf.mxu1 }
 0x21f   : > { %3561 = vmatmul.bf16.gmra.mxu3 %v3445_v54  ;;  %v2373_v29 = vpop.f32.mrf.mxu0  ;;  %v2786_v28 = vadd.f32 %v2706_v3, %v5492_v7  ;;  %v3311_v3 = vpack.c.bf16 %v3279_v17, %v3279_v17 }
 0x221   : > { %2745 = vmatmul.bf16.gmra.mxu1 %v3855_v23  ;;  %v3423_v23 = vunpack.c.l.b16 %v3310_v45  ;;  %v3834_v45 = vunpack.c.l.b16 %v3721_v59 }
 0x222   : > { %v1961_v50 = vpop.f32.mrf.mxu3 }
 0x223   : > { %v1996_v52 = vadd.f32 %v1961_v50, %v1586_v32  ;;  %v3446_v32 = vpack.c.b16 %v3423_v23, %v3422_v62 }
 0x224   : > { %v1553_v38 = vpop.f32.mrf.mxu2 }
 0x225   : > { %v1587_v48 = vadd.f32 %v1553_v38, %v1177_v14  ;;  %v5593_v42 = vadd.f32 %v2371_v53, %v1996_v52  ;;  %v2902_v53 = vpack.c.bf16 %v2870_v24, %v2870_v24  ;;  %v3014_v52 = vunpack.c.l.b16 %v2901_v25 }
 0x226   : > { %v2708_v20 = vpop.f32.mrf.mxu1  ;;  %v3835_v38 = vunpack.c.l.b16 %v3722_v35  ;;  %v2903_v35 = vpack.c.bf16 %v2871_v58, %v2871_v58 }
 0x227   : > { %v3937_v63 = vpop.f32.mrf.mxu0  ;;  %v3015_v14 = vunpack.c.l.b16 %v2902_v53  ;;  %v2787_v62 = vadd.f32 %v2708_v20, %v5495_v39  ;;  %v3691_v20 = vld [vmem:[#allocation2 + $0x122] sm:$0xff] }
 0x229   : > { %3156 = vmatmul.bf16.gmra.mxu2 %v3036_v51  ;;  %v3037_v23 = vpack.c.b16 %v3015_v14, %v3014_v52  ;;  %v3723_v52 = vpack.c.bf16 %v3691_v20, %v3691_v20 }
 0x22a   : > { %v1963_v54 = vpop.f32.mrf.mxu3  ;;  %3976 = vmatmul.bf16.gmra.mxu0 %v3856_v44 }
 0x22b   : > { %v1997_v6 = vadd.f32 %v1963_v54, %v1587_v48  ;;  %v3312_v48 = vpack.c.bf16 %v3280_v60, %v3280_v60  ;;  %v3857_v54 = vpack.c.b16 %v3835_v38, %v3834_v45 }
 0x22c   : > { %v3117_v19 = vpop.f32.mrf.mxu2 }
 0x22d   : > { %v5596_v49 = vadd.f32 %v2373_v29, %v1997_v6  ;;  %v3197_v33 = vadd.f32 %v3117_v19, %v2786_v28  ;;  %v3424_v6 = vunpack.c.l.b16 %v3311_v3  ;;  %v3692_v28 = vld [vmem:[#allocation2 + $0x12a] sm:$0xff]  ;;  %v3281_v3 = vld [vmem:[#allocation2 + $0x121] sm:$0xff] }
 0x22e   : > { %v2711_v15 = vpop.f32.mrf.mxu1  ;;  %v3724_v14 = vpack.c.bf16 %v3692_v28, %v3692_v28 }
 0x22f   : > { %3566 = vmatmul.bf16.gmra.mxu3 %v3446_v32  ;;  %v3939_v50 = vpop.f32.mrf.mxu0  ;;  %v3425_v32 = vunpack.c.l.b16 %v3312_v48  ;;  %v2788_v59 = vadd.f32 %v2711_v15, %v5498_v13  ;;  %v3282_v48 = vld [vmem:[#allocation2 + $0x129] sm:$0xff]  ;;  %v3313_v15 = vpack.c.bf16 %v3281_v3, %v3281_v3 }
 0x231   : > { %2750 = vmatmul.bf16.gmra.mxu1 %v3856_v44  ;;  %v3447_v39 = vpack.c.b16 %v3425_v32, %v3424_v6  ;;  %v3314_v32 = vpack.c.bf16 %v3282_v48, %v3282_v48 }
 0x232   : > { %v3527_v22 = vpop.f32.mrf.mxu3 }
 0x233   : > { %v3607_v7 = vadd.f32 %v3527_v22, %v3197_v33 }
 0x234   : > { %v3119_v29 = vpop.f32.mrf.mxu2 }
 0x235   : > { %v4017_v51 = vadd.f32 %v3937_v63, %v3607_v7  ;;  %v3198_v44 = vadd.f32 %v3119_v29, %v2787_v62  ;;  %v2872_v63 = vld [vmem:[#allocation2 + $0x128] sm:$0xff] }
 0x236   : > { %v2713_v40 = vpop.f32.mrf.mxu1  ;;  %v2904_v33 = vpack.c.bf16 %v2872_v63, %v2872_v63 }
 0x237   : > { %4113 = vst [vmem:[%s5601_s21] sm:$0xff] %v4017_v51  ;;  %v3942_v24 = vpop.f32.mrf.mxu0  ;;  %v4183_v17 = vmul.f32 %v4017_v51, %v4017_v51 }
 0x238   : > { %v3017_v62 = vunpack.c.l.b16 %v2904_v33 }
 0x239   : > { %3161 = vmatmul.bf16.gmra.mxu2 %v3037_v23  ;;  %v3836_v23 = vunpack.c.l.b16 %v3723_v52  ;;  %v2874_v52 = vld [vmem:[#allocation2 + $0x140] sm:$0xff] }
 0x23a   : > { %v3529_v8 = vpop.f32.mrf.mxu3  ;;  %3981 = vmatmul.bf16.gmra.mxu0 %v3857_v54  ;;  %v2906_v48 = vpack.c.bf16 %v2874_v52, %v2874_v52 }
 0x23b   : > { %v3608_v19 = vadd.f32 %v3529_v8, %v3198_v44  ;;  %v3837_v44 = vunpack.c.l.b16 %v3724_v14 }
 0x23c   : > { %v3122_v25 = vpop.f32.mrf.mxu2 }
 0x23d   : > { %v4018_v53 = vadd.f32 %v3939_v50, %v3608_v19  ;;  %v3199_v38 = vadd.f32 %v3122_v25, %v2788_v59  ;;  %v3016_v50 = vunpack.c.l.b16 %v2903_v35  ;;  %v3426_v19 = vunpack.c.l.b16 %v3313_v15 }
 0x23e   : > { %v2716_v60 = vpop.f32.mrf.mxu1  ;;  %v3427_v59 = vunpack.c.l.b16 %v3314_v32  ;;  %v3284_v32 = vld [vmem:[#allocation2 + $0x141] sm:$0xff] }
 0x23f   : > { %4114 = vst [vmem:[%s5601_s21 + $0x8] sm:$0xff] %v4018_v53  ;;  %v4145_v22 = vadd.f32 %v4018_v53, %v4017_v51  ;;  %v4184_v45 = vmul.f32 %v4018_v53, %v4018_v53  ;;  %3571 = vmatmul.bf16.gmra.mxu3 %v3447_v39  ;;  %v3944_v7 = vpop.f32.mrf.mxu0  ;;  %v2789_v51 = vadd.f32 %v2713_v40, %v5501_v10  ;;  %v3693_v10 = vld [vmem:[#allocation2 + $0x13a] sm:$0xff]  ;;  %v3694_v40 = vld [vmem:[#allocation2 + $0x142] sm:$0xff] }
 0x240   : > { %v3038_v63 = vpack.c.b16 %v3017_v62, %v3016_v50  ;;  %v3858_v39 = vpack.c.b16 %v3837_v44, %v3836_v23  ;;  %v3448_v14 = vpack.c.b16 %v3427_v59, %v3426_v19  ;;  %v2790_v3 = vadd.f32 %v2716_v60, %v5504_v26 }
 0x241   : > { %v4215_v29 = vadd.f32 %v4184_v45, %v4183_v17  ;;  %2755 = vmatmul.bf16.gmra.mxu1 %v3857_v54  ;;  %v2873_v17 = vld [vmem:[#allocation2 + $0x138] sm:$0xff]  ;;  %v3725_v62 = vpack.c.bf16 %v3693_v10, %v3693_v10 }
 0x242   : > { %v3532_v13 = vpop.f32.mrf.mxu3 }
 0x243   : > { %v3609_v6 = vadd.f32 %v3532_v13, %v3199_v38  ;;  %v3726_v13 = vpack.c.bf16 %v3694_v40, %v3694_v40  ;;  %v3838_v60 = vunpack.c.l.b16 %v3725_v62 }
 0x244   : > { %v3124_v8 = vpop.f32.mrf.mxu2 }
 0x245   : > { %v4019_v58 = vadd.f32 %v3942_v24, %v3609_v6  ;;  %v3200_v25 = vadd.f32 %v3124_v8, %v2789_v51  ;;  %v3283_v6 = vld [vmem:[#allocation2 + $0x139] sm:$0xff] }
 0x246   : > { %v2718_v20 = vpop.f32.mrf.mxu1  ;;  %v3315_v26 = vpack.c.bf16 %v3283_v6, %v3283_v6 }
 0x247   : > { %4115 = vst [vmem:[%s5601_s21 + $0x10] sm:$0xff] %v4019_v58  ;;  %v4146_v28 = vadd.f32 %v4145_v22, %v4019_v58  ;;  %v4185_v54 = vmul.f32 %v4019_v58, %v4019_v58  ;;  %v3947_v53 = vpop.f32.mrf.mxu0  ;;  %v2905_v22 = vpack.c.bf16 %v2873_v17, %v2873_v17 }
 0x248   : > { %v3428_v17 = vunpack.c.l.b16 %v3315_v26 }
 0x249   : > { %v4216_v35 = vadd.f32 %v4215_v29, %v4185_v54  ;;  %3166 = vmatmul.bf16.gmra.mxu2 %v3038_v63  ;;  %v3018_v58 = vunpack.c.l.b16 %v2905_v22  ;;  %v3839_v63 = vunpack.c.l.b16 %v3726_v13  ;;  %v3316_v54 = vpack.c.bf16 %v3284_v32, %v3284_v32  ;;  %v2876_v22 = vld [vmem:[#allocation2 + $0x158] sm:$0xff] }
 0x24a   : > { %v3534_v33 = vpop.f32.mrf.mxu3  ;;  %3986 = vmatmul.bf16.gmra.mxu0 %v3858_v39 }
 0x24b   : > { %v3610_v24 = vadd.f32 %v3534_v33, %v3200_v25  ;;  %v3859_v52 = vpack.c.b16 %v3839_v63, %v3838_v60  ;;  %v3429_v40 = vunpack.c.l.b16 %v3316_v54  ;;  %v3285_v60 = vld [vmem:[#allocation2 + $0x151] sm:$0xff]  ;;  %v3286_v63 = vld [vmem:[#allocation2 + $0x159] sm:$0xff] }
 0x24c   : > { %v3127_v45 = vpop.f32.mrf.mxu2 }
 0x24d   : > { %v4020_v38 = vadd.f32 %v3944_v7, %v3610_v24  ;;  %v3201_v23 = vadd.f32 %v3127_v45, %v2790_v3  ;;  %v3019_v7 = vunpack.c.l.b16 %v2906_v48  ;;  %v2875_v3 = vld [vmem:[#allocation2 + $0x150] sm:$0xff]  ;;  %v3449_v48 = vpack.c.b16 %v3429_v40, %v3428_v17 }
 0x24e   : > { %v2721_v50 = vpop.f32.mrf.mxu1 }
 0x24f   : > { %4116 = vst [vmem:[%s5601_s21 + $0x18] sm:$0xff] %v4020_v38  ;;  %v4147_v29 = vadd.f32 %v4146_v28, %v4020_v38  ;;  %v4186_v15 = vmul.f32 %v4020_v38, %v4020_v38  ;;  %3576 = vmatmul.bf16.gmra.mxu3 %v3448_v14  ;;  %v3949_v44 = vpop.f32.mrf.mxu0  ;;  %v2791_v28 = vadd.f32 %v2718_v20, %v5507_v56  ;;  %v3695_v56 = vld [vmem:[#allocation2 + $0x152] sm:$0xff]  ;;  %v3696_v20 = vld [vmem:[#allocation2 + $0x15a] sm:$0xff] }
 0x250   : > { %v3039_v33 = vpack.c.b16 %v3019_v7, %v3018_v58  ;;  %v3727_v32 = vpack.c.bf16 %v3695_v56, %v3695_v56  ;;  %v3728_v58 = vpack.c.bf16 %v3696_v20, %v3696_v20 }
 0x251   : > { %v4217_v8 = vadd.f32 %v4216_v35, %v4186_v15  ;;  %2760 = vmatmul.bf16.gmra.mxu1 %v3858_v39  ;;  %v2792_v15 = vadd.f32 %v2721_v50, %v5509_v2  ;;  %v3317_v2 = vpack.c.bf16 %v3285_v60, %v3285_v60 }
 0x252   : > { %v3537_v51 = vpop.f32.mrf.mxu3  ;;  %v3840_v50 = vunpack.c.l.b16 %v3727_v32 }
 0x253   : > { %v3611_v19 = vadd.f32 %v3537_v51, %v3201_v23  ;;  %v2908_v23 = vpack.c.bf16 %v2876_v22, %v2876_v22  ;;  %v3430_v40 = vunpack.c.l.b16 %v3317_v2  ;;  %v3288_v2 = vld [vmem:[#allocation2 + $0x171] sm:$0xff] }
 0x254   : > { %v3129_v25 = vpop.f32.mrf.mxu2 }
 0x255   : > { %v4021_v59 = vadd.f32 %v3947_v53, %v3611_v19  ;;  %v3202_v14 = vadd.f32 %v3129_v25, %v2791_v28 }
 0x256   : > { %v2723_v24 = vpop.f32.mrf.mxu1 }
 0x257   : > { %4117 = vst [vmem:[%s5601_s21 + $0x20] sm:$0xff] %v4021_v59  ;;  %v4148_v35 = vadd.f32 %v4147_v29, %v4021_v59  ;;  %v4187_v39 = vmul.f32 %v4021_v59, %v4021_v59  ;;  %v3952_v10 = vpop.f32.mrf.mxu0  ;;  %v2907_v29 = vpack.c.bf16 %v2875_v3, %v2875_v3  ;;  %v3841_v59 = vunpack.c.l.b16 %v3728_v58 }
 0x259   : > { %v4218_v45 = vadd.f32 %v4217_v8, %v4187_v39  ;;  %3171 = vmatmul.bf16.gmra.mxu2 %v3039_v33  ;;  %v3020_v54 = vunpack.c.l.b16 %v2907_v29  ;;  %v3318_v33 = vpack.c.bf16 %v3286_v63, %v3286_v63 }
 0x25a   : > { %v3539_v38 = vpop.f32.mrf.mxu3  ;;  %3991 = vmatmul.bf16.gmra.mxu0 %v3859_v52 }
 0x25b   : > { %v3612_v53 = vadd.f32 %v3539_v38, %v3202_v14  ;;  %v3860_v38 = vpack.c.b16 %v3841_v59, %v3840_v50 }
 0x25c   : > { %v3132_v62 = vpop.f32.mrf.mxu2 }
 0x25d   : > { %v4022_v13 = vadd.f32 %v3949_v44, %v3612_v53  ;;  %v3203_v51 = vadd.f32 %v3132_v62, %v2792_v15  ;;  %v3021_v44 = vunpack.c.l.b16 %v2908_v23  ;;  %v2877_v62 = vld [vmem:[#allocation2 + $0x168] sm:$0xff] }
 0x25e   : > { %v2726_v6 = vpop.f32.mrf.mxu1  ;;  %v2909_v58 = vpack.c.bf16 %v2877_v62, %v2877_v62 }
 0x25f   : > { %4118 = vst [vmem:[%s5601_s21 + $0x28] sm:$0xff] %v4022_v13  ;;  %v4149_v8 = vadd.f32 %v4148_v35, %v4022_v13  ;;  %v4188_v7 = vmul.f32 %v4022_v13, %v4022_v13  ;;  %3581 = vmatmul.bf16.gmra.mxu3 %v3449_v48  ;;  %v3954_v26 = vpop.f32.mrf.mxu0  ;;  %v2793_v35 = vadd.f32 %v2723_v24, %v5512_v1  ;;  %v3431_v48 = vunpack.c.l.b16 %v3318_v33  ;;  %v2878_v13 = vld [vmem:[#allocation2 + $0x170] sm:$0xff] }
 0x260   : > { %v3040_v14 = vpack.c.b16 %v3021_v44, %v3020_v54  ;;  %v3697_v1 = vld [vmem:[#allocation2 + $0x16a] sm:$0xff]  ;;  %v3698_v24 = vld [vmem:[#allocation2 + $0x172] sm:$0xff]  ;;  %v2794_v32 = vadd.f32 %v2726_v6, %v5523_v4  ;;  %v3022_v59 = vunpack.c.l.b16 %v2909_v58 }
 0x261   : > { %v4219_v19 = vadd.f32 %v4218_v45, %v4188_v7  ;;  %2765 = vmatmul.bf16.gmra.mxu1 %v3859_v52  ;;  %v3450_v15 = vpack.c.b16 %v3431_v48, %v3430_v40  ;;  %v3730_v60 = vpack.c.bf16 %v3698_v24, %v3698_v24  ;;  %v2880_v24 = vld [vmem:[#allocation2 + $0x188] sm:$0xff] }
 0x262   : > { %v3542_v25 = vpop.f32.mrf.mxu3 }
 0x263   : > { %v3613_v28 = vadd.f32 %v3542_v25, %v3203_v51  ;;  %v3729_v51 = vpack.c.bf16 %v3697_v1, %v3697_v1  ;;  %v3287_v25 = vld [vmem:[#allocation2 + $0x169] sm:$0xff]  ;;  %v3843_v33 = vunpack.c.l.b16 %v3730_v60  ;;  %v2879_v1 = vld [vmem:[#allocation2 + $0x180] sm:$0xff] }
 0x264   : > { %v3134_v17 = vpop.f32.mrf.mxu2  ;;  %v3319_v4 = vpack.c.bf16 %v3287_v25, %v3287_v25 }
 0x265   : > { %v4023_v39 = vadd.f32 %v3952_v10, %v3613_v28  ;;  %v3204_v22 = vadd.f32 %v3134_v17, %v2793_v35  ;;  %v3842_v6 = vunpack.c.l.b16 %v3729_v51  ;;  %v2912_v51 = vpack.c.bf16 %v2880_v24, %v2880_v24 }
 0x266   : > { %v2728_v3 = vpop.f32.mrf.mxu1 }
 0x267   : > { %4119 = vst [vmem:[%s5601_s21 + $0x30] sm:$0xff] %v4023_v39  ;;  %v4150_v45 = vadd.f32 %v4149_v8, %v4023_v39  ;;  %v4189_v52 = vmul.f32 %v4023_v39, %v4023_v39  ;;  %v3957_v53 = vpop.f32.mrf.mxu0  ;;  %v2910_v8 = vpack.c.bf16 %v2878_v13, %v2878_v13  ;;  %v3320_v39 = vpack.c.bf16 %v3288_v2, %v3288_v2 }
 0x268   : > { %v2795_v40 = vadd.f32 %v2728_v3, %v5526_v41  ;;  %v3699_v41 = vld [vmem:[#allocation2 + $0x182] sm:$0xff]  ;;  %v3700_v3 = vld [vmem:[#allocation2 + $0x18a] sm:$0xff] }
 0x269   : > { %v4220_v56 = vadd.f32 %v4219_v19, %v4189_v52  ;;  %3176 = vmatmul.bf16.gmra.mxu2 %v3040_v14  ;;  %v3432_v52 = vunpack.c.l.b16 %v3319_v4  ;;  %v3433_v13 = vunpack.c.l.b16 %v3320_v39 }
 0x26a   : > { %v3544_v20 = vpop.f32.mrf.mxu3  ;;  %3996 = vmatmul.bf16.gmra.mxu0 %v3860_v38 }
 0x26b   : > { %v3614_v10 = vadd.f32 %v3544_v20, %v3204_v22  ;;  %v3861_v22 = vpack.c.b16 %v3843_v33, %v3842_v6 }
 0x26c   : > { %v3137_v29 = vpop.f32.mrf.mxu2 }
 0x26d   : > { %v4024_v23 = vadd.f32 %v3954_v26, %v3614_v10  ;;  %v3205_v54 = vadd.f32 %v3137_v29, %v2794_v32  ;;  %v3023_v26 = vunpack.c.l.b16 %v2910_v8  ;;  %v3451_v29 = vpack.c.b16 %v3433_v13, %v3432_v52 }
 0x26e   : > { %v2731_v7 = vpop.f32.mrf.mxu1  ;;  %v2911_v8 = vpack.c.bf16 %v2879_v1, %v2879_v1 }
 0x26f   : > { %4120 = vst [vmem:[%s5601_s21 + $0x38] sm:$0xff] %v4024_v23  ;;  %v4151_v63 = vadd.f32 %v4150_v45, %v4024_v23  ;;  %v4190_v19 = vmul.f32 %v4024_v23, %v4024_v23  ;;  %3586 = vmatmul.bf16.gmra.mxu3 %v3450_v15  ;;  %v3959_v44 = vpop.f32.mrf.mxu0  ;;  %v3041_v45 = vpack.c.b16 %v3023_v26, %v3022_v59  ;;  %v3289_v59 = vld [vmem:[#allocation2 + $0x181] sm:$0xff]  ;;  %v3290_v26 = vld [vmem:[#allocation2 + $0x189] sm:$0xff] }
 0x270   : > { %v2796_v58 = vadd.f32 %v2731_v7, %v5529_v36  ;;  %v3024_v4 = vunpack.c.l.b16 %v2911_v8  ;;  %v3321_v36 = vpack.c.bf16 %v3289_v59, %v3289_v59  ;;  %v3322_v39 = vpack.c.bf16 %v3290_v26, %v3290_v26  ;;  %v3291_v26 = vld [vmem:[#allocation2 + $0x199] sm:$0xff] }
 0x271   : > { %v4221_v50 = vadd.f32 %v4220_v56, %v4190_v19  ;;  %2770 = vmatmul.bf16.gmra.mxu1 %v3860_v38  ;;  %v3732_v19 = vpack.c.bf16 %v3700_v3, %v3700_v3 }
 0x272   : > { %v3547_v28 = vpop.f32.mrf.mxu3  ;;  %v3434_v52 = vunpack.c.l.b16 %v3321_v36 }
 0x273   : > { %v3615_v17 = vadd.f32 %v3547_v28, %v3205_v54  ;;  %v3845_v33 = vunpack.c.l.b16 %v3732_v19 }
 0x274   : > { %v3139_v35 = vpop.f32.mrf.mxu2 }
 0x275   : > { %v4025_v14 = vadd.f32 %v3957_v53, %v3615_v17  ;;  %v3206_v20 = vadd.f32 %v3139_v35, %v2795_v40 }
 0x276   : > { %v2733_v48 = vpop.f32.mrf.mxu1 }
 0x277   : > { %4121 = vst [vmem:[%s5601_s21 + $0x40] sm:$0xff] %v4025_v14  ;;  %v4152_v56 = vadd.f32 %v4151_v63, %v4025_v14  ;;  %v4191_v38 = vmul.f32 %v4025_v14, %v4025_v14  ;;  %v3962_v62 = vpop.f32.mrf.mxu0  ;;  %v3731_v63 = vpack.c.bf16 %v3699_v41, %v3699_v41  ;;  %v2797_v40 = vadd.f32 %v2733_v48, %v5532_v31  ;;  %v3701_v41 = vld [vmem:[#allocation2 + $0x19a] sm:$0xff]  ;;  %v3702_v31 = vld [vmem:[#allocation2 + $0x1a2] sm:$0xff] }
 0x278   : > { %v3734_v19 = vpack.c.bf16 %v3702_v31, %v3702_v31 }
 0x279   : > { %v4222_v10 = vadd.f32 %v4221_v50, %v4191_v38  ;;  %3181 = vmatmul.bf16.gmra.mxu2 %v3041_v45  ;;  %v3844_v7 = vunpack.c.l.b16 %v3731_v63  ;;  %v3733_v63 = vpack.c.bf16 %v3701_v41, %v3701_v41 }
 0x27a   : > { %v3549_v15 = vpop.f32.mrf.mxu3  ;;  %4001 = vmatmul.bf16.gmra.mxu0 %v3861_v22  ;;  %v3847_v36 = vunpack.c.l.b16 %v3734_v19 }
 0x27b   : > { %v3616_v53 = vadd.f32 %v3549_v15, %v3206_v20  ;;  %v3435_v15 = vunpack.c.l.b16 %v3322_v39 }
 0x27c   : > { %v3142_v23 = vpop.f32.mrf.mxu2 }
 0x27d   : > { %v4026_v32 = vadd.f32 %v3959_v44, %v3616_v53  ;;  %v3207_v2 = vadd.f32 %v3142_v23, %v2796_v58  ;;  %v3025_v44 = vunpack.c.l.b16 %v2912_v51  ;;  %v2881_v53 = vld [vmem:[#allocation2 + $0x198] sm:$0xff]  ;;  %v4915_v58 = vld [vmem:[#allocation2 + $0x8] sm:$0xff] }
 0x27e   : > { %v2736_v60 = vpop.f32.mrf.mxu1  ;;  %v2914_v8 = vpack.c.bf16 %v4915_v58, %v4915_v58 }
 0x27f   : > { %4122 = vst [vmem:[%s5601_s21 + $0x48] sm:$0xff] %v4026_v32  ;;  %v4153_v54 = vadd.f32 %v4152_v56, %v4026_v32  ;;  %v4192_v25 = vmul.f32 %v4026_v32, %v4026_v32  ;;  %3591 = vmatmul.bf16.gmra.mxu3 %v3451_v29  ;;  %v3964_v50 = vpop.f32.mrf.mxu0  ;;  %v3042_v45 = vpack.c.b16 %v3025_v44, %v3024_v4 }
 0x280   : > { %v3862_v56 = vpack.c.b16 %v3845_v33, %v3844_v7  ;;  %v2798_v23 = vadd.f32 %v2736_v60, %v5539_v0  ;;  %v2913_v32 = vpack.c.bf16 %v2881_v53, %v2881_v53  ;;  %v3027_v44 = vunpack.c.l.b16 %v2914_v8 }
 0x281   : > { %v4223_v28 = vadd.f32 %v4222_v10, %v4192_v25  ;;  %2775 = vmatmul.bf16.gmra.mxu1 %v3861_v22  ;;  %v3323_v60 = vpack.c.bf16 %v3291_v26, %v3291_v26 }
 0x282   : > { %v3552_v6 = vpop.f32.mrf.mxu3 }
 0x283   : > { %v3617_v17 = vadd.f32 %v3552_v6, %v3207_v2  ;;  %v3846_v6 = vunpack.c.l.b16 %v3733_v63 }
 0x284   : > { %v3144_v35 = vpop.f32.mrf.mxu2 }
 0x285   : > { %v4027_v14 = vadd.f32 %v3962_v62, %v3617_v17  ;;  %v3208_v13 = vadd.f32 %v3144_v35, %v2797_v40  ;;  %v3452_v62 = vpack.c.b16 %v3435_v15, %v3434_v52  ;;  %v3436_v40 = vunpack.c.l.b16 %v3323_v60 }
 0x286   : > { %v2738_v38 = vpop.f32.mrf.mxu1 }
 0x287   : > { %4123 = vst [vmem:[%s5601_s21 + $0x50] sm:$0xff] %v4027_v14  ;;  %v4154_v20 = vadd.f32 %v4153_v54, %v4027_v14  ;;  %v4193_v22 = vmul.f32 %v4027_v14, %v4027_v14  ;;  %v3967_v10 = vpop.f32.mrf.mxu0  ;;  %v2799_v35 = vadd.f32 %v2738_v38, %v5542_v11 }
 0x289   : > { %v4224_v1 = vadd.f32 %v4223_v28, %v4193_v22  ;;  %3186 = vmatmul.bf16.gmra.mxu2 %v3042_v45  ;;  %v3292_v28 = vld [vmem:[#allocation2 + $0x1a1] sm:$0xff]  ;;  %v3863_v45 = vpack.c.b16 %v3847_v36, %v3846_v6 }
 0x28a   : > { %v3554_v24 = vpop.f32.mrf.mxu3  ;;  %4006 = vmatmul.bf16.gmra.mxu0 %v3862_v56  ;;  %v3324_v33 = vpack.c.bf16 %v3292_v28, %v3292_v28 }
 0x28b   : > { %v3618_v29 = vadd.f32 %v3554_v24, %v3208_v13 }
 0x28c   : > { %v3147_v48 = vpop.f32.mrf.mxu2  ;;  %v3437_v15 = vunpack.c.l.b16 %v3324_v33 }
 0x28d   : > { %v4028_v3 = vadd.f32 %v3964_v50, %v3618_v29  ;;  %v3209_v2 = vadd.f32 %v3147_v48, %v2798_v23  ;;  %v3026_v50 = vunpack.c.l.b16 %v2913_v32 }
 0x28e   : > { %v2741_v51 = vpop.f32.mrf.mxu1  ;;  %v3453_v29 = vpack.c.b16 %v3437_v15, %v3436_v40 }
 0x28f   : > { %4124 = vst [vmem:[%s5601_s21 + $0x58] sm:$0xff] %v4028_v3  ;;  %v4155_v54 = vadd.f32 %v4154_v20, %v4028_v3  ;;  %v4194_v25 = vmul.f32 %v4028_v3, %v4028_v3  ;;  %3596 = vmatmul.bf16.gmra.mxu3 %v3452_v62  ;;  %v3969_v59 = vpop.f32.mrf.mxu0  ;;  %v3043_v14 = vpack.c.b16 %v3027_v44, %v3026_v50 }
 0x290   : > { %v2800_v11 = vadd.f32 %v2741_v51, %v5545_v12 }
 0x291   : > { %v4225_v4 = vadd.f32 %v4224_v1, %v4194_v25  ;;  %2780 = vmatmul.bf16.gmra.mxu1 %v3862_v56 }
 0x292   : > { %v3557_v0 = vpop.f32.mrf.mxu3 }
 0x293   : > { %v3619_v7 = vadd.f32 %v3557_v0, %v3209_v2 }
 0x294   : > { %v3149_v17 = vpop.f32.mrf.mxu2 }
 0x295   : > { %v4029_v39 = vadd.f32 %v3967_v10, %v3619_v7  ;;  %v3210_v22 = vadd.f32 %v3149_v17, %v2799_v35 }
 0x296   : > { %v2743_v52 = vpop.f32.mrf.mxu1 }
 0x297   : > { %4125 = vst [vmem:[%s5601_s21 + $0x60] sm:$0xff] %v4029_v39  ;;  %v4156_v56 = vadd.f32 %v4155_v54, %v4029_v39  ;;  %v4195_v20 = vmul.f32 %v4029_v39, %v4029_v39  ;;  %v3972_v13 = vpop.f32.mrf.mxu0  ;;  %v2801_v19 = vadd.f32 %v2743_v52, %v5548_v61 }
 0x299   : > { %v4226_v1 = vadd.f32 %v4225_v4, %v4195_v20  ;;  %3191 = vmatmul.bf16.gmra.mxu2 %v3043_v14 }
 0x29a   : > { %v3559_v24 = vpop.f32.mrf.mxu3  ;;  %4011 = vmatmul.bf16.gmra.mxu0 %v3863_v45 }
 0x29b   : > { %v3620_v53 = vadd.f32 %v3559_v24, %v3210_v22 }
 0x29c   : > { %v3152_v10 = vpop.f32.mrf.mxu2 }
 0x29d   : > { %v4030_v62 = vadd.f32 %v3969_v59, %v3620_v53  ;;  %v3211_v48 = vadd.f32 %v3152_v10, %v2800_v11 }
 0x29e   : > { %v2746_v38 = vpop.f32.mrf.mxu1 }
 0x29f   : > { %4126 = vst [vmem:[%s5601_s21 + $0x68] sm:$0xff] %v4030_v62  ;;  %v4157_v41 = vadd.f32 %v4156_v56, %v4030_v62  ;;  %v4196_v31 = vmul.f32 %v4030_v62, %v4030_v62  ;;  %3601 = vmatmul.bf16.gmra.mxu3 %v3453_v29  ;;  %v3974_v3 = vpop.f32.mrf.mxu0  ;;  %v2802_v44 = vadd.f32 %v2746_v38, %v5551_v55 }
 0x2a1   : > { %v4227_v23 = vadd.f32 %v4226_v1, %v4196_v31 }
 0x2a2   : > { %v3562_v32 = vpop.f32.mrf.mxu3 }
 0x2a3   : > { %v3621_v58 = vadd.f32 %v3562_v32, %v3211_v48 }
 0x2a4   : > { %v3154_v8 = vpop.f32.mrf.mxu2 }
 0x2a5   : > { %v4031_v63 = vadd.f32 %v3972_v13, %v3621_v58  ;;  %v3212_v12 = vadd.f32 %v3154_v8, %v2801_v19 }
 0x2a6   : > { %v2748_v54 = vpop.f32.mrf.mxu1 }
 0x2a7   : > { %4127 = vst [vmem:[%s5601_s21 + $0x70] sm:$0xff] %v4031_v63  ;;  %v4158_v25 = vadd.f32 %v4157_v41, %v4031_v63  ;;  %v4197_v2 = vmul.f32 %v4031_v63, %v4031_v63  ;;  %v3977_v51 = vpop.f32.mrf.mxu0  ;;  %v2803_v14 = vadd.f32 %v2748_v54, %v5554_v47 }
 0x2a9   : > { %v4228_v59 = vadd.f32 %v4227_v23, %v4197_v2 }
 0x2aa   : > { %v3564_v26 = vpop.f32.mrf.mxu3 }
 0x2ab   : > { %v3622_v28 = vadd.f32 %v3564_v26, %v3212_v12 }
 0x2ac   : > { %v3157_v4 = vpop.f32.mrf.mxu2 }
 0x2ad   : > { %v4032_v50 = vadd.f32 %v3974_v3, %v3622_v28  ;;  %v3213_v36 = vadd.f32 %v3157_v4, %v2802_v44 }
 0x2ae   : > { %v2751_v0 = vpop.f32.mrf.mxu1 }
 0x2af   : > { %4128 = vst [vmem:[%s5601_s21 + $0x78] sm:$0xff] %v4032_v50  ;;  %v4159_v60 = vadd.f32 %v4158_v25, %v4032_v50  ;;  %v4198_v6 = vmul.f32 %v4032_v50, %v4032_v50  ;;  %v3979_v61 = vpop.f32.mrf.mxu0  ;;  %v2804_v24 = vadd.f32 %v2751_v0, %v5557_v18 }
 0x2b1   : > { %v4229_v7 = vadd.f32 %v4228_v59, %v4198_v6 }
 0x2b2   : > { %v3567_v33 = vpop.f32.mrf.mxu3 }
 0x2b3   : > { %v3623_v17 = vadd.f32 %v3567_v33, %v3213_v36 }
 0x2b4   : > { %v3159_v39 = vpop.f32.mrf.mxu2 }
 0x2b5   : > { %v4033_v35 = vadd.f32 %v3977_v51, %v3623_v17  ;;  %v3214_v56 = vadd.f32 %v3159_v39, %v2803_v14 }
 0x2b6   : > { %v2753_v40 = vpop.f32.mrf.mxu1 }
 0x2b7   : > { %4129 = vst [vmem:[%s5601_s21 + $0x80] sm:$0xff] %v4033_v35  ;;  %v4160_v45 = vadd.f32 %v4159_v60, %v4033_v35  ;;  %v4199_v52 = vmul.f32 %v4033_v35, %v4033_v35  ;;  %v3982_v55 = vpop.f32.mrf.mxu0  ;;  %v2805_v3 = vadd.f32 %v2753_v40, %v5560_v37 }
 0x2b9   : > { %v4230_v20 = vadd.f32 %v4229_v7, %v4199_v52 }
 0x2ba   : > { %v3569_v22 = vpop.f32.mrf.mxu3 }
 0x2bb   : > { %v3624_v13 = vadd.f32 %v3569_v22, %v3214_v56 }
 0x2bc   : > { %v3162_v15 = vpop.f32.mrf.mxu2 }
 0x2bd   : > { %v4034_v1 = vadd.f32 %v3979_v61, %v3624_v13  ;;  %v3215_v62 = vadd.f32 %v3162_v15, %v2804_v24 }
 0x2be   : > { %v2756_v53 = vpop.f32.mrf.mxu1 }
 0x2bf   : > { %4130 = vst [vmem:[%s5601_s21 + $0x88] sm:$0xff] %v4034_v1  ;;  %v4161_v29 = vadd.f32 %v4160_v45, %v4034_v1  ;;  %v4200_v10 = vmul.f32 %v4034_v1, %v4034_v1  ;;  %v3984_v47 = vpop.f32.mrf.mxu0  ;;  %v2806_v12 = vadd.f32 %v2756_v53, %v5563_v43 }
 0x2c1   : > { %v4231_v11 = vadd.f32 %v4230_v20, %v4200_v10 }
 0x2c2   : > { %v3572_v38 = vpop.f32.mrf.mxu3 }
 0x2c3   : > { %v3625_v41 = vadd.f32 %v3572_v38, %v3215_v62 }
 0x2c4   : > { %v3164_v31 = vpop.f32.mrf.mxu2 }
 0x2c5   : > { %v4035_v48 = vadd.f32 %v3982_v55, %v3625_v41  ;;  %v3216_v8 = vadd.f32 %v3164_v31, %v2805_v3 }
 0x2c6   : > { %v2758_v23 = vpop.f32.mrf.mxu1 }
 0x2c7   : > { %4131 = vst [vmem:[%s5601_s21 + $0x90] sm:$0xff] %v4035_v48  ;;  %v4162_v32 = vadd.f32 %v4161_v29, %v4035_v48  ;;  %v4201_v58 = vmul.f32 %v4035_v48, %v4035_v48  ;;  %v3987_v18 = vpop.f32.mrf.mxu0  ;;  %v2807_v6 = vadd.f32 %v2758_v23, %v5566_v9 }
 0x2c9   : > { %v4232_v63 = vadd.f32 %v4231_v11, %v4201_v58 }
 0x2ca   : > { %v3574_v19 = vpop.f32.mrf.mxu3 }
 0x2cb   : > { %v3626_v54 = vadd.f32 %v3574_v19, %v3216_v8 }
 0x2cc   : > { %v3167_v25 = vpop.f32.mrf.mxu2 }
 0x2cd   : > { %v4036_v2 = vadd.f32 %v3984_v47, %v3626_v54  ;;  %v3217_v28 = vadd.f32 %v3167_v25, %v2806_v12 }
 0x2ce   : > { %v2761_v51 = vpop.f32.mrf.mxu1 }
 0x2cf   : > { %4132 = vst [vmem:[%s5601_s21 + $0x98] sm:$0xff] %v4036_v2  ;;  %v4163_v59 = vadd.f32 %v4162_v32, %v4036_v2  ;;  %v4202_v26 = vmul.f32 %v4036_v2, %v4036_v2  ;;  %v3989_v37 = vpop.f32.mrf.mxu0  ;;  %v2808_v45 = vadd.f32 %v2761_v51, %v5569_v21 }
 0x2d1   : > { %v4233_v4 = vadd.f32 %v4232_v63, %v4202_v26 }
 0x2d2   : > { %v3577_v50 = vpop.f32.mrf.mxu3 }
 0x2d3   : > { %v3627_v44 = vadd.f32 %v3577_v50, %v3217_v28 }
 0x2d4   : > { %v3169_v0 = vpop.f32.mrf.mxu2 }
 0x2d5   : > { %v4037_v60 = vadd.f32 %v3987_v18, %v3627_v44  ;;  %v3218_v33 = vadd.f32 %v3169_v0, %v2807_v6 }
 0x2d6   : > { %v2763_v36 = vpop.f32.mrf.mxu1 }
 0x2d7   : > { %4133 = vst [vmem:[%s5601_s21 + $0xa0] sm:$0xff] %v4037_v60  ;;  %v4164_v61 = vadd.f32 %v4163_v59, %v4037_v60  ;;  %v4203_v7 = vmul.f32 %v4037_v60, %v4037_v60  ;;  %v3992_v43 = vpop.f32.mrf.mxu0  ;;  %v2809_v53 = vadd.f32 %v2763_v36, %v5572_v57 }
 0x2d9   : > { %v4234_v17 = vadd.f32 %v4233_v4, %v4203_v7 }
 0x2da   : > { %v3579_v39 = vpop.f32.mrf.mxu3 }
 0x2db   : > { %v3628_v35 = vadd.f32 %v3579_v39, %v3218_v33 }
 0x2dc   : > { %v3172_v14 = vpop.f32.mrf.mxu2 }
 0x2dd   : > { %v4038_v40 = vadd.f32 %v3989_v37, %v3628_v35  ;;  %v3219_v20 = vadd.f32 %v3172_v14, %v2808_v45 }
 0x2de   : > { %v2766_v52 = vpop.f32.mrf.mxu1 }
 0x2df   : > { %4134 = vst [vmem:[%s5601_s21 + $0xa8] sm:$0xff] %v4038_v40  ;;  %v4165_v56 = vadd.f32 %v4164_v61, %v4038_v40  ;;  %v4204_v55 = vmul.f32 %v4038_v40, %v4038_v40  ;;  %v3994_v9 = vpop.f32.mrf.mxu0  ;;  %v2810_v3 = vadd.f32 %v2766_v52, %v5575_v46 }
 0x2e1   : > { %v4235_v22 = vadd.f32 %v4234_v17, %v4204_v55 }
 0x2e2   : > { %v3582_v13 = vpop.f32.mrf.mxu3 }
 0x2e3   : > { %v3629_v15 = vadd.f32 %v3582_v13, %v3219_v20 }
 0x2e4   : > { %v3174_v1 = vpop.f32.mrf.mxu2 }
 0x2e5   : > { %v4039_v24 = vadd.f32 %v3992_v43, %v3629_v15  ;;  %v3220_v47 = vadd.f32 %v3174_v1, %v2809_v53 }
 0x2e6   : > { %v2768_v29 = vpop.f32.mrf.mxu1 }
 0x2e7   : > { %4135 = vst [vmem:[%s5601_s21 + $0xb0] sm:$0xff] %v4039_v24  ;;  %v4166_v10 = vadd.f32 %v4165_v56, %v4039_v24  ;;  %v4205_v62 = vmul.f32 %v4039_v24, %v4039_v24  ;;  %v3997_v21 = vpop.f32.mrf.mxu0  ;;  %v2811_v2 = vadd.f32 %v2768_v29, %v5578_v5 }
 0x2e9   : > { %v4236_v11 = vadd.f32 %v4235_v22, %v4205_v62 }
 0x2ea   : > { %v3584_v38 = vpop.f32.mrf.mxu3 }
 0x2eb   : > { %v3630_v41 = vadd.f32 %v3584_v38, %v3220_v47 }
 0x2ec   : > { %v3177_v31 = vpop.f32.mrf.mxu2 }
 0x2ed   : > { %v4040_v48 = vadd.f32 %v3994_v9, %v3630_v41  ;;  %v3221_v58 = vadd.f32 %v3177_v31, %v2810_v3 }
 0x2ee   : > { %v2771_v8 = vpop.f32.mrf.mxu1 }
 0x2ef   : > { %4136 = vst [vmem:[%s5601_s21 + $0xb8] sm:$0xff] %v4040_v48  ;;  %v4167_v23 = vadd.f32 %v4166_v10, %v4040_v48  ;;  %v4206_v32 = vmul.f32 %v4040_v48, %v4040_v48  ;;  %v3999_v57 = vpop.f32.mrf.mxu0  ;;  %v2812_v0 = vadd.f32 %v2771_v8, %v5581_v30 }
 0x2f1   : > { %v4237_v18 = vadd.f32 %v4236_v11, %v4206_v32 }
 0x2f2   : > { %v3587_v63 = vpop.f32.mrf.mxu3 }
 0x2f3   : > { %v3631_v19 = vadd.f32 %v3587_v63, %v3221_v58 }
 0x2f4   : > { %v3179_v54 = vpop.f32.mrf.mxu2 }
 0x2f5   : > { %v4041_v25 = vadd.f32 %v3997_v21, %v3631_v19  ;;  %v3222_v59 = vadd.f32 %v3179_v54, %v2811_v2 }
 0x2f6   : > { %v2773_v46 = vpop.f32.mrf.mxu1 }
 0x2f7   : > { %4137 = vst [vmem:[%s5601_s21 + $0xc0] sm:$0xff] %v4041_v25  ;;  %v4168_v12 = vadd.f32 %v4167_v23, %v4041_v25  ;;  %v4207_v51 = vmul.f32 %v4041_v25, %v4041_v25  ;;  %v4002_v37 = vpop.f32.mrf.mxu0  ;;  %v2813_v35 = vadd.f32 %v2773_v46, %v5584_v16 }
 0x2f9   : > { %v4238_v26 = vadd.f32 %v4237_v18, %v4207_v51 }
 0x2fa   : > { %v3589_v28 = vpop.f32.mrf.mxu3 }
 0x2fb   : > { %v3632_v4 = vadd.f32 %v3589_v28, %v3222_v59 }
 0x2fc   : > { %v3182_v50 = vpop.f32.mrf.mxu2 }
 0x2fd   : > { %v4042_v44 = vadd.f32 %v3999_v57, %v3632_v4  ;;  %v3223_v36 = vadd.f32 %v3182_v50, %v2812_v0 }
 0x2fe   : > { %v2776_v33 = vpop.f32.mrf.mxu1 }
 0x2ff   : > { %4138 = vst [vmem:[%s5601_s21 + $0xc8] sm:$0xff] %v4042_v44  ;;  %v4169_v60 = vadd.f32 %v4168_v12, %v4042_v44  ;;  %v4208_v6 = vmul.f32 %v4042_v44, %v4042_v44  ;;  %v4004_v43 = vpop.f32.mrf.mxu0  ;;  %v2814_v9 = vadd.f32 %v2776_v33, %v5587_v34 }
 0x301   : > { %v4239_v61 = vadd.f32 %v4238_v26, %v4208_v6 }
 0x302   : > { %v3592_v5 = vpop.f32.mrf.mxu3 }
 0x303   : > { %v3633_v7 = vadd.f32 %v3592_v5, %v3223_v36 }
 0x304   : > { %v3184_v17 = vpop.f32.mrf.mxu2 }
 0x305   : > { %v4043_v39 = vadd.f32 %v4002_v37, %v3633_v7  ;;  %v3224_v45 = vadd.f32 %v3184_v17, %v2813_v35 }
 0x306   : > { %v2778_v22 = vpop.f32.mrf.mxu1 }
 0x307   : > { %4139 = vst [vmem:[%s5601_s21 + $0xd0] sm:$0xff] %v4043_v39  ;;  %v4170_v14 = vadd.f32 %v4169_v60, %v4043_v39  ;;  %v4209_v40 = vmul.f32 %v4043_v39, %v4043_v39  ;;  %v4007_v13 = vpop.f32.mrf.mxu0  ;;  %v2815_v47 = vadd.f32 %v2778_v22, %v5590_v27 }
 0x309   : > { %v4240_v52 = vadd.f32 %v4239_v61, %v4209_v40 }
 0x30a   : > { %v3594_v30 = vpop.f32.mrf.mxu3 }
 0x30b   : > { %v3634_v56 = vadd.f32 %v3594_v30, %v3224_v45 }
 0x30c   : > { %v3187_v55 = vpop.f32.mrf.mxu2 }
 0x30d   : > { %v4044_v20 = vadd.f32 %v4004_v43, %v3634_v56  ;;  %v3225_v24 = vadd.f32 %v3187_v55, %v2814_v9 }
 0x30e   : > { %v2781_v41 = vpop.f32.mrf.mxu1 }
 0x30f   : > { %4140 = vst [vmem:[%s5601_s21 + $0xd8] sm:$0xff] %v4044_v20  ;;  %v4171_v15 = vadd.f32 %v4170_v14, %v4044_v20  ;;  %v4210_v1 = vmul.f32 %v4044_v20, %v4044_v20  ;;  %v4009_v34 = vpop.f32.mrf.mxu0  ;;  %v2816_v58 = vadd.f32 %v2781_v41, %v5593_v42 }
 0x311   : > { %v4241_v53 = vadd.f32 %v4240_v52, %v4210_v1 }
 0x312   : > { %v3597_v16 = vpop.f32.mrf.mxu3 }
 0x313   : > { %v3635_v29 = vadd.f32 %v3597_v16, %v3225_v24 }
 0x314   : > { %v3189_v10 = vpop.f32.mrf.mxu2 }
 0x315   : > { %v4045_v62 = vadd.f32 %v4007_v13, %v3635_v29  ;;  %v3226_v38 = vadd.f32 %v3189_v10, %v2815_v47 }
 0x316   : > { %v2783_v63 = vpop.f32.mrf.mxu1 }
 0x317   : > { %4141 = vst [vmem:[%s5601_s21 + $0xe0] sm:$0xff] %v4045_v62  ;;  %v4172_v21 = vadd.f32 %v4171_v15, %v4045_v62  ;;  %v4211_v11 = vmul.f32 %v4045_v62, %v4045_v62  ;;  %v4012_v19 = vpop.f32.mrf.mxu0  ;;  %v2817_v51 = vadd.f32 %v2783_v63, %v5596_v49 }
 0x319   : > { %v4242_v31 = vadd.f32 %v4241_v53, %v4211_v11 }
 0x31a   : > { %v3599_v48 = vpop.f32.mrf.mxu3 }
 0x31b   : > { %v3636_v3 = vadd.f32 %v3599_v48, %v3226_v38 }
 0x31c   : > { %v3192_v23 = vpop.f32.mrf.mxu2 }
 0x31d   : > { %v4046_v32 = vadd.f32 %v4009_v34, %v3636_v3  ;;  %v3227_v18 = vadd.f32 %v3192_v23, %v2816_v58 }
 0x31f   : > { %4142 = vst [vmem:[%s5601_s21 + $0xe8] sm:$0xff] %v4046_v32  ;;  %v4173_v8 = vadd.f32 %v4172_v21, %v4046_v32  ;;  %v4212_v57 = vmul.f32 %v4046_v32, %v4046_v32  ;;  %v4014_v4 = vpop.f32.mrf.mxu0 }
 0x321   : > { %v4243_v27 = vadd.f32 %v4242_v31, %v4212_v57 }
 0x322   : > { %v3602_v54 = vpop.f32.mrf.mxu3 }
 0x323   : > { %v3637_v25 = vadd.f32 %v3602_v54, %v3227_v18 }
 0x324   : > { %v3194_v2 = vpop.f32.mrf.mxu2 }
 0x325   : > { %v4047_v12 = vadd.f32 %v4012_v19, %v3637_v25  ;;  %v3228_v26 = vadd.f32 %v3194_v2, %v2817_v51 }
 0x327   : > { %4143 = vst [vmem:[%s5601_s21 + $0xf0] sm:$0xff] %v4047_v12  ;;  %v4174_v59 = vadd.f32 %v4173_v8, %v4047_v12  ;;  %v4213_v42 = vmul.f32 %v4047_v12, %v4047_v12 }
 0x329   : > { %v4244_v46 = vadd.f32 %v4243_v27, %v4213_v42 }
 0x32a   : > { %v3604_v28 = vpop.f32.mrf.mxu3 }
 0x32b   : > { %v3638_v37 = vadd.f32 %v3604_v28, %v3228_v26 }
 0x32d   : > { %v4048_v50 = vadd.f32 %v4014_v4, %v3638_v37 }
 0x32f   : > { %4144 = vst [vmem:[%s5601_s21 + $0xf8] sm:$0xff] %v4048_v50  ;;  %v4175_v49 = vadd.f32 %v4174_v59, %v4048_v50  ;;  %v4214_v44 = vmul.f32 %v4048_v50, %v4048_v50 }
 0x330   : > { %5003 = shalt.err (!%p5000_p10)
}
 0x331   : > { %s5115_s21 = smov 128   ;;  %s5116_s26 = smov 8   ;;  %v4176_v0 = vrot.slane %v4175_v49, 4  ;;  %v4245_v60 = vadd.f32 %v4244_v46, %v4214_v44 }
 0x332   : > { %4847 = dma.vmem_to_hbm [thread:$0]  (%p5211_p7), %s4275_s30, 4096, %s4277_s11, %s4254_s12, %s5115_s21, %s5115_s21, %s5116_s26  }
 0x333   : > { %v4177_v6 = vadd.f32 %v4176_v0, %v4175_v49  ;;  %v4246_v36 = vrot.slane %v4245_v60, 4  ;;  %s4288_s28 = scalar_lea.hbm %s5753_s3, %s5163_s19  ;;  %s4258_s13 = sand.u32 1, %s5163_s19  }
 0x334   : > { %s4301_s23 = scalar_lea.hbm %s5754_s4, %s5163_s19  ;;  %s244_s5 = scalar_lea.vmem [#allocation10], %s5239_s25 }
 0x335   : > { %v4178_v61 = vrot.slane %v4177_v6, 2  ;;  %v4247_v5 = vadd.f32 %v4246_v36, %v4245_v60  ;;  %s5691_s30 = sshll.u32 %s244_s5, 4  ;;  %s5693_s11 = sshll.u32 %s4288_s28, 4  ;;  %s4291_s30 = int_to_ptr.vmem [resolvable:$true] %s5691_s30  ;;  %s4293_s11 = int_to_ptr.hbm [resolvable:$true] %s5693_s11 }
 0x336   : > { %s250_s12 = scalar_lea.vmem [#allocation12], %s5239_s25  ;;  %s5698_s7 = sshll.u32 %s4301_s23, 4  ;;  %s4306_s7 = int_to_ptr.hbm [resolvable:$true] %s5698_s7 }
 0x337   : > { %v4179_v7 = vadd.f32 %v4178_v61, %v4177_v6  ;;  %v4248_v33 = vrot.slane %v4247_v5, 2  ;;  %s5696_s6 = sshll.u32 %s250_s12, 4  ;;  %s4259_s19 = scalar_lea.sflag [#allocation11], %s4258_s13  ;;  %s4304_s6 = int_to_ptr.vmem [resolvable:$true] %s5696_s6 }
 0x338   : > { %s5018_s21 = sshra.s32 %s4293_s11, 4  ;;  %s5024_s27 = scalar_lea.hbm %s5753_s3, 2  ;;  %s5019_s21 = int_to_ptr.hbm [resolvable:$true] %s5018_s21 }
 0x339   : > { %v4249_v43 = vadd.f32 %v4248_v33, %v4247_v5  ;;  %v4180_v17 = vrot.slane %v4179_v7, 1  ;;  %s5020_s26 = scalar_lea.hbm %s5019_s21, 1  ;;  %p5025_p3 = scmp.lt.s32.totalorder %s5019_s21, %s5753_s3 }
 0x33a   : > { %p5021_p12 = scmp.ne.s32.totalorder %s5019_s21, %s5020_s26  ;;  %p5026_p5 = scmp.lt.s32.totalorder %s5024_s27, %s5020_s26 }
 0x33b   : > { %v4181_v39 = vadd.f32 %v4180_v17, %v4179_v7  ;;  %v4250_v35 = vrot.slane %v4249_v43, 1 }
 0x33c   : > { %p5022_p13 = pnand %p5021_p12, %p5211_p7  ;;  %p5027_p1 = por %p5026_p5, %p5025_p3 }
 0x33d   : > { %4182 = vst [vmem:[%s244_s5] sm:$0x1] %v4181_v39  ;;  %v4251_v14 = vadd.f32 %v4250_v35, %v4249_v43 }
 0x33e   : > { %p5023_p0 = pneg %p5022_p13 }
 0x340   : > { %p5028_p4 = pnand %p5027_p1, %p5023_p0 }
 0x342   : > { %5031 = shalt.err (!%p5028_p4)
}
 0x343   : > { %4848 = dma.vmem_to_hbm [thread:$0]  (%p5211_p7), %s4291_s30, 16, %s4293_s11, %s4259_s19   ;;  %4252 = vst [vmem:[%s250_s12] sm:$0x1] %v4251_v14 }
 0x344   : > { %s5046_s13 = sshra.s32 %s4306_s7, 4  ;;  %s5052_s21 = scalar_lea.hbm %s5754_s4, 2  ;;  %s5047_s13 = int_to_ptr.hbm [resolvable:$true] %s5046_s13 }
 0x345   : > { %s5048_s10 = scalar_lea.hbm %s5047_s13, 1  ;;  %p5053_p2 = scmp.lt.s32.totalorder %s5047_s13, %s5754_s4 }
 0x346   : > { %p5049_p8 = scmp.ne.s32.totalorder %s5047_s13, %s5048_s10  ;;  %p5054_p10 = scmp.lt.s32.totalorder %s5052_s21, %s5048_s10 }
 0x348   : > { %p5050_p11 = pnand %p5049_p8, %p5211_p7  ;;  %p5055_p12 = por %p5054_p10, %p5053_p2 }
 0x34a   : > { %p5051_p9 = pneg %p5050_p11 }
 0x34c   : > { %p5056_p13 = pnand %p5055_p12, %p5051_p9 }
 0x34e   : > { %5059 = shalt.err (!%p5056_p13)
}
 0x34f   : > { %4849 = dma.vmem_to_hbm [thread:$0]  (%p5211_p7), %s4304_s6, 16, %s4306_s7, %s4259_s19  }
 0x350 PF: > { %s4317_s30 = sand.u32 1, %s5094_s15   ;;  %p5760_p0 = scmp.ge.s32.totalorder %s5106_s18, 2 }
 0x351   : > { %s4318_s11 = scalar_lea.sflag [#allocation6], %s4317_s30 }
 0x352   : > { %p4862_p3 = pnand %p5760_p0, %p5179_p6 }
 0x354   : > { %p4863_p5 = pneg %p4862_p3 }
 0x356   : > { %5085 = dma.done.wait (%p4863_p5), %s4318_s11, 4096  }
 0x357   : > { %5087 = vsyncadd (%p4863_p5), %s4318_s11, 4294963200  ;;  %s4327_s9 = sand.u32 1, %s4439_s20  }
 0x358   : > { %s4328_s12 = scalar_lea.sflag [#allocation11], %s4327_s9 }
 0x359   : > { %5089 = dma.done.wait (%p4863_p5), %s4328_s12, 32  }
 0x35a   : > { %5091 = vsyncadd (%p4863_p5), %s4328_s12, 4294967264  ;;  %p22_p7 = scmp.ge.s32.totalorder %s5197_s29, 4   ;;  %s5761_s15 = smov %s5098_s16 }
 0x35b   : > { %s5762_s16 = smov %s5102_s17  ;;  %s5763_s17 = smov %s5207_s8 }
 0x35c   : > { %s5764_s18 = smov %s5197_s29  ;;  %24 = sbr.rel (!%p22_p7) target bundleno = 8 (0x8), region = 120 }
 0x361   :  { %4342 = vsyncpa [#allocation5], 1 }
 0x362   :  { %4344 = vsyncpa [#allocation5 + $0x1], 1 }
 0x363   :  { %4345 = vsyncpa [#allocation8], 1 }
 0x364   :  { %4346 = vsyncpa [#allocation6], 1 }
 0x365   :  { %4348 = vsyncpa [#allocation6 + $0x1], 1 }
 0x366   :  { %4349 = vsyncpa [#allocation11], 1 }
 0x367   :  { %4351 = vsyncpa [#allocation11 + $0x1], 1 }

</bundles_post_ra>
